<compile_context>
chip_gen: v7x
topology: tpu7x:2x2x1
jax: 0.10.0
libtpu: 0.0.40
codegen_flags: <defaults>
</compile_context>

<pallas_src>
import functools

import jax
import jax.numpy as jnp
from jax.experimental import pallas as pl
from jax.experimental.pallas import tpu as pltpu

KSIZE = 7
PAD = (KSIZE - 1) // 2


def _round_up(x, m):
    return (x + m - 1) // m * m


def _choose_tc(C, H, W, max_block_bytes):
    """Largest divisor of C whose (TC, H, W) f32 block stays under the budget."""
    cap = max(1, max_block_bytes // (H * W * 4))
    tc = 1
    for d in range(1, C + 1):
        if C % d == 0 and d <= cap:
            tc = d
    return tc


def _chunk_sum_max(x_ref):
    """Fused running (sum, max) over the channel axis of one (TC, H, W) chunk.

    Reads each channel plane exactly once; accumulates in f32.
    """
    TC, H, W = x_ref.shape

    def body(c, carry):
        s, m = carry
        row = x_ref[c].astype(jnp.float32)            # (H, W)
        return s + row, jnp.maximum(m, row)

    s0 = jnp.zeros((H, W), jnp.float32)
    m0 = jnp.full((H, W), -jnp.inf, jnp.float32)
    return jax.lax.fori_loop(0, TC, body, (s0, m0), unroll=min(TC, 8))


def _conv7x7_sigmoid(avg, mx, w_ref, pad_ref, o_ref):
    """7x7 'same' conv over the two (H, W) planes + sigmoid, stored to o_ref."""
    H, W = avg.shape

    # Zero the lane-padded scratch (tiny), then write only the interior.
    # The zero border provides the conv 'same' padding; extra lane columns
    # beyond W + 2*PAD are never read.
    pad_ref[...] = jnp.zeros_like(pad_ref)
    pad_ref[0, PAD:PAD + H, PAD:PAD + W] = avg
    pad_ref[1, PAD:PAD + H, PAD:PAD + W] = mx

    acc = jnp.zeros((H, W), jnp.float32)
    for c in range(2):
        plane = pad_ref[c]                            # (H+2*PAD, WPAD), one load
        for dj in range(KSIZE):
            # one lane-direction (XLU) shift per (c, dj): 14 total, not 98
            cols = plane[:, dj:dj + W]                # (H+2*PAD, W)
            for di in range(KSIZE):
                w_tap = w_ref[c * KSIZE * KSIZE + di * KSIZE + dj]  # SMEM scalar
                acc = acc + w_tap * cols[di:di + H, :]
    o_ref[...] = jax.nn.sigmoid(acc)[None, :, :].astype(o_ref.dtype)


def _spatial_attention_kernel(x_ref, w_ref, o_ref, *scratch, inv_c, multi):
    # x_ref:   (TC, H, W)          channel chunk of one batch element (VMEM)
    # w_ref:   (98,)               flattened conv weight (SMEM scalars)
    # o_ref:   (1, H, W)           output attention map for this batch element
    # scratch: [sum, max,] pad     (sum/max only present when multi=True)
    if multi:
        sum_ref, max_ref, pad_ref = scratch
    else:
        (pad_ref,) = scratch

    # ---- fused sum + max over this channel chunk ----
    s, m = _chunk_sum_max(x_ref)

    if not multi:
        # Whole channel extent in one chunk: feed the conv straight from regs.
        _conv7x7_sigmoid(s * inv_c, m, w_ref, pad_ref, o_ref)
        return

    k = pl.program_id(1)
    nk = pl.num_programs(1)

    @pl.when(k == 0)
    def _first():
        sum_ref[...] = s
        max_ref[...] = m

    @pl.when(k > 0)
    def _accumulate():
        sum_ref[...] = sum_ref[...] + s
        max_ref[...] = jnp.maximum(max_ref[...], m)

    # ---- final channel chunk: 7x7 conv over [mean, max] planes + sigmoid ----
    @pl.when(k == nk - 1)
    def _finalize():
        _conv7x7_sigmoid(sum_ref[...] * inv_c, max_ref[...], w_ref, pad_ref, o_ref)


def spatial_attention(x, weight, *, max_block_bytes=4 * 1024 * 1024):
    """x: (N, C, H, W) float; weight: (1, 2, 7, 7) float (PyTorch OIHW, no bias)."""
    N, C, H, W = x.shape
    assert weight.shape == (1, 2, KSIZE, KSIZE)
    w_flat = weight.astype(jnp.float32).reshape(-1)            # (98,) -> SMEM

    TC = _choose_tc(C, H, W, max_block_bytes)
    kblocks = C // TC
    multi = kblocks > 1
    WPAD = _round_up(W + 2 * PAD, 128)

    kernel = functools.partial(_spatial_attention_kernel, inv_c=1.0 / C, multi=multi)

    scratch_shapes = []
    if multi:
        scratch_shapes += [
            pltpu.VMEM((H, W), jnp.float32),                   # running sum
            pltpu.VMEM((H, W), jnp.float32),                   # running max
        ]
    scratch_shapes += [
        pltpu.VMEM((2, H + 2 * PAD, WPAD), jnp.float32),       # lane-padded conv in
    ]

    itemsize = jnp.dtype(x.dtype).itemsize
    cost = pl.CostEstimate(
        flops=2 * N * C * H * W + 4 * N * KSIZE * KSIZE * H * W,
        transcendentals=N * H * W,
        bytes_accessed=N * C * H * W * itemsize + N * H * W * itemsize + 98 * 4,
    )

    return pl.pallas_call(
        kernel,
        out_shape=jax.ShapeDtypeStruct((N, 1, H, W), x.dtype),
        grid=(N, kblocks),
        in_specs=[
            pl.BlockSpec((None, TC, H, W), lambda n, k: (n, k, 0, 0)),
            pl.BlockSpec(memory_space=pltpu.MemorySpace.SMEM),
        ],
        out_specs=pl.BlockSpec((None, 1, H, W), lambda n, k: (n, 0, 0, 0)),
        scratch_shapes=scratch_shapes,
        compiler_params=pltpu.CompilerParams(
            dimension_semantics=("parallel", "arbitrary"),
            vmem_limit_bytes=32 * 1024 * 1024,
        ),
        cost_estimate=cost,
    )(x, w_flat)


def spatial_attention_ref(x, weight):
    """Pure-JAX reference matching the PyTorch module semantics."""
    avg = jnp.mean(x, axis=1, keepdims=True)
    mx = jnp.max(x, axis=1, keepdims=True)
    feat = jnp.concatenate([avg, mx], axis=1)                  # (N, 2, H, W)
    y = jax.lax.conv_general_dilated(
        feat, weight,
        window_strides=(1, 1),
        padding=((PAD, PAD), (PAD, PAD)),
        dimension_numbers=("NCHW", "OIHW", "NCHW"),
    )
    return jax.nn.sigmoid(y)


if __name__ == "__main__":
    key = jax.random.PRNGKey(0)
    kx, kw, kx2 = jax.random.split(key, 3)

    # deterministic conv weight, shape (out=1, in=2, 7, 7), no bias
    weight = 0.05 * jax.random.normal(kw, (1, 2, KSIZE, KSIZE), dtype=jnp.float32)

    # --- case 1: whole channel extent fits in one chunk (single-step path) ---
    N, C, H, W = 2, 4, 16, 16
    x = jax.random.normal(kx, (N, C, H, W), dtype=jnp.float32)
    out = jax.block_until_ready(spatial_attention(x, weight))
    ref = spatial_attention_ref(x, weight)
    assert out.shape == (N, 1, H, W)
    err = jnp.max(jnp.abs(out - ref))
    assert jnp.allclose(out, ref, atol=1e-5, rtol=1e-5), f"single-step max abs err {err}"

    # --- case 2: force channel chunking to exercise the accumulator path ---
    C2 = 12
    x2 = jax.random.normal(kx2, (N, C2, H, W), dtype=jnp.float32)
    out2 = jax.block_until_ready(
        spatial_attention(x2, weight, max_block_bytes=2 * H * W * 4))  # TC=2, 6 chunks
    ref2 = spatial_attention_ref(x2, weight)
    err2 = jnp.max(jnp.abs(out2 - ref2))
    assert jnp.allclose(out2, ref2, atol=1e-5, rtol=1e-5), f"multi-step max abs err {err2}"

    print("KERNEL_OK")
</pallas_src>

<mosaic_0001>
module attributes {stable_mosaic.version = 11 : i64} {
  func.func @_spatial_attention_kernel(%arg0: i32, %arg1: i32, %arg2: memref<1x4x16x16xf32, #tpu.memory_space<vmem>>, %arg3: memref<98xf32, #tpu.memory_space<smem>>, %arg4: memref<1x1x16x16xf32, #tpu.memory_space<vmem>>, %arg5: memref<2x22x128xf32, #tpu.memory_space<vmem>>) attributes {dimension_semantics = [#tpu.dimension_semantics<parallel>, #tpu.dimension_semantics<arbitrary>], iteration_bounds = array<i64: 2, 1>, scalar_prefetch = 0 : i64, scratch_operands = 1 : i64, tpu.core_type = #tpu.core_type<tc>, window_params = [{transform_indices = @transform_0, window_bounds = array<i64: 1, 4, 16, 16>}, {transform_indices = @transform_1, window_bounds = array<i64: 98>}, {transform_indices = @transform_2, window_bounds = array<i64: 1, 1, 16, 16>}]} {
    %cst = arith.constant 0.000000e+00 : f32
    %0 = vector.broadcast %cst : f32 to vector<16x16xf32>
    %cst_0 = arith.constant 0xFF800000 : f32
    %1 = vector.broadcast %cst_0 : f32 to vector<16x16xf32>
    %c0_i32 = arith.constant 0 : i32
    %c0 = arith.constant 0 : index
    %2 = arith.index_cast %c0_i32 : i32 to index
    %c0_1 = arith.constant 0 : index
    %c0_2 = arith.constant 0 : index
    %3 = vector.load %arg2[%c0, %2, %c0_1, %c0_2] : memref<1x4x16x16xf32, #tpu.memory_space<vmem>>, vector<1x1x16x16xf32>
    %4 = vector.shape_cast %3 : vector<1x1x16x16xf32> to vector<16x16xf32>
    %5 = arith.addf %0, %4 : vector<16x16xf32>
    %6 = arith.maximumf %1, %4 : vector<16x16xf32>
    %c1_i32 = arith.constant 1 : i32
    %c0_3 = arith.constant 0 : index
    %7 = arith.index_cast %c1_i32 : i32 to index
    %c0_4 = arith.constant 0 : index
    %c0_5 = arith.constant 0 : index
    %8 = vector.load %arg2[%c0_3, %7, %c0_4, %c0_5] : memref<1x4x16x16xf32, #tpu.memory_space<vmem>>, vector<1x1x16x16xf32>
    %9 = vector.shape_cast %8 : vector<1x1x16x16xf32> to vector<16x16xf32>
    %10 = arith.addf %5, %9 : vector<16x16xf32>
    %11 = arith.maximumf %6, %9 : vector<16x16xf32>
    %c2_i32 = arith.constant 2 : i32
    %c0_6 = arith.constant 0 : index
    %12 = arith.index_cast %c2_i32 : i32 to index
    %c0_7 = arith.constant 0 : index
    %c0_8 = arith.constant 0 : index
    %13 = vector.load %arg2[%c0_6, %12, %c0_7, %c0_8] : memref<1x4x16x16xf32, #tpu.memory_space<vmem>>, vector<1x1x16x16xf32>
    %14 = vector.shape_cast %13 : vector<1x1x16x16xf32> to vector<16x16xf32>
    %15 = arith.addf %10, %14 : vector<16x16xf32>
    %16 = arith.maximumf %11, %14 : vector<16x16xf32>
    %c3_i32 = arith.constant 3 : i32
    %c0_9 = arith.constant 0 : index
    %17 = arith.index_cast %c3_i32 : i32 to index
    %c0_10 = arith.constant 0 : index
    %c0_11 = arith.constant 0 : index
    %18 = vector.load %arg2[%c0_9, %17, %c0_10, %c0_11] : memref<1x4x16x16xf32, #tpu.memory_space<vmem>>, vector<1x1x16x16xf32>
    %19 = vector.shape_cast %18 : vector<1x1x16x16xf32> to vector<16x16xf32>
    %20 = arith.addf %15, %19 : vector<16x16xf32>
    %21 = arith.maximumf %16, %19 : vector<16x16xf32>
    %c4_i32 = arith.constant 4 : i32
    %cst_12 = arith.constant 2.500000e-01 : f32
    %22 = vector.broadcast %cst_12 : f32 to vector<16x16xf32>
    %23 = arith.mulf %20, %22 : vector<16x16xf32>
    %cst_13 = arith.constant 0.000000e+00 : f32
    %24 = vector.broadcast %cst_13 : f32 to vector<2x22x128xf32>
    %c0_14 = arith.constant 0 : index
    %c0_15 = arith.constant 0 : index
    %c0_16 = arith.constant 0 : index
    %25 = vector.load %arg5[%c0_14, %c0_15, %c0_16] : memref<2x22x128xf32, #tpu.memory_space<vmem>>, vector<2x22x128xf32>
    tpu.vector_store %arg5[%c0_14, %c0_15, %c0_16], %24 {strides = array<i32>} : memref<2x22x128xf32, #tpu.memory_space<vmem>>, vector<2x22x128xf32>,
    %c0_17 = arith.constant 0 : index
    %c3 = arith.constant 3 : index
    %c3_18 = arith.constant 3 : index
    %26 = vector.load %arg5[%c0_17, %c3, %c3_18] : memref<2x22x128xf32, #tpu.memory_space<vmem>>, vector<1x16x16xf32>
    %27 = vector.shape_cast %26 : vector<1x16x16xf32> to vector<16x16xf32>
    %28 = vector.shape_cast %23 : vector<16x16xf32> to vector<1x16x16xf32>
    tpu.vector_store %arg5[%c0_17, %c3, %c3_18], %28 {strides = array<i32>} : memref<2x22x128xf32, #tpu.memory_space<vmem>>, vector<1x16x16xf32>,
    %c1 = arith.constant 1 : index
    %c3_19 = arith.constant 3 : index
    %c3_20 = arith.constant 3 : index
    %29 = vector.load %arg5[%c1, %c3_19, %c3_20] : memref<2x22x128xf32, #tpu.memory_space<vmem>>, vector<1x16x16xf32>
    %30 = vector.shape_cast %29 : vector<1x16x16xf32> to vector<16x16xf32>
    %31 = vector.shape_cast %21 : vector<16x16xf32> to vector<1x16x16xf32>
    tpu.vector_store %arg5[%c1, %c3_19, %c3_20], %31 {strides = array<i32>} : memref<2x22x128xf32, #tpu.memory_space<vmem>>, vector<1x16x16xf32>,
    %cst_21 = arith.constant 0.000000e+00 : f32
    %32 = vector.broadcast %cst_21 : f32 to vector<16x16xf32>
    %c0_22 = arith.constant 0 : index
    %c0_23 = arith.constant 0 : index
    %c0_24 = arith.constant 0 : index
    %33 = vector.load %arg5[%c0_22, %c0_23, %c0_24] : memref<2x22x128xf32, #tpu.memory_space<vmem>>, vector<1x22x128xf32>
    %34 = vector.shape_cast %33 : vector<1x22x128xf32> to vector<22x128xf32>
    %35 = vector.extract_strided_slice %34 {offsets = [0, 0], sizes = [22, 16], strides = [1, 1]} : vector<22x128xf32> to vector<22x16xf32>
    %c0_25 = arith.constant 0 : index
    %36 = memref.load %arg3[%c0_25] : memref<98xf32, #tpu.memory_space<smem>>
    %37 = vector.extract_strided_slice %35 {offsets = [0, 0], sizes = [16, 16], strides = [1, 1]} : vector<22x16xf32> to vector<16x16xf32>
    %38 = vector.broadcast %36 : f32 to vector<16x16xf32>
    %39 = arith.mulf %38, %37 : vector<16x16xf32>
    %40 = arith.addf %32, %39 : vector<16x16xf32>
    %c7 = arith.constant 7 : index
    %41 = memref.load %arg3[%c7] : memref<98xf32, #tpu.memory_space<smem>>
    %42 = vector.extract_strided_slice %35 {offsets = [1, 0], sizes = [16, 16], strides = [1, 1]} : vector<22x16xf32> to vector<16x16xf32>
    %43 = vector.broadcast %41 : f32 to vector<16x16xf32>
    %44 = arith.mulf %43, %42 : vector<16x16xf32>
    %45 = arith.addf %40, %44 : vector<16x16xf32>
    %c14 = arith.constant 14 : index
    %46 = memref.load %arg3[%c14] : memref<98xf32, #tpu.memory_space<smem>>
    %47 = vector.extract_strided_slice %35 {offsets = [2, 0], sizes = [16, 16], strides = [1, 1]} : vector<22x16xf32> to vector<16x16xf32>
    %48 = vector.broadcast %46 : f32 to vector<16x16xf32>
    %49 = arith.mulf %48, %47 : vector<16x16xf32>
    %50 = arith.addf %45, %49 : vector<16x16xf32>
    %c21 = arith.constant 21 : index
    %51 = memref.load %arg3[%c21] : memref<98xf32, #tpu.memory_space<smem>>
    %52 = vector.extract_strided_slice %35 {offsets = [3, 0], sizes = [16, 16], strides = [1, 1]} : vector<22x16xf32> to vector<16x16xf32>
    %53 = vector.broadcast %51 : f32 to vector<16x16xf32>
    %54 = arith.mulf %53, %52 : vector<16x16xf32>
    %55 = arith.addf %50, %54 : vector<16x16xf32>
    %c28 = arith.constant 28 : index
    %56 = memref.load %arg3[%c28] : memref<98xf32, #tpu.memory_space<smem>>
    %57 = vector.extract_strided_slice %35 {offsets = [4, 0], sizes = [16, 16], strides = [1, 1]} : vector<22x16xf32> to vector<16x16xf32>
    %58 = vector.broadcast %56 : f32 to vector<16x16xf32>
    %59 = arith.mulf %58, %57 : vector<16x16xf32>
    %60 = arith.addf %55, %59 : vector<16x16xf32>
    %c35 = arith.constant 35 : index
    %61 = memref.load %arg3[%c35] : memref<98xf32, #tpu.memory_space<smem>>
    %62 = vector.extract_strided_slice %35 {offsets = [5, 0], sizes = [16, 16], strides = [1, 1]} : vector<22x16xf32> to vector<16x16xf32>
    %63 = vector.broadcast %61 : f32 to vector<16x16xf32>
    %64 = arith.mulf %63, %62 : vector<16x16xf32>
    %65 = arith.addf %60, %64 : vector<16x16xf32>
    %c42 = arith.constant 42 : index
    %66 = memref.load %arg3[%c42] : memref<98xf32, #tpu.memory_space<smem>>
    %67 = vector.extract_strided_slice %35 {offsets = [6, 0], sizes = [16, 16], strides = [1, 1]} : vector<22x16xf32> to vector<16x16xf32>
    %68 = vector.broadcast %66 : f32 to vector<16x16xf32>
    %69 = arith.mulf %68, %67 : vector<16x16xf32>
    %70 = arith.addf %65, %69 : vector<16x16xf32>
    %71 = vector.extract_strided_slice %34 {offsets = [0, 1], sizes = [22, 16], strides = [1, 1]} : vector<22x128xf32> to vector<22x16xf32>
    %c1_26 = arith.constant 1 : index
    %72 = memref.load %arg3[%c1_26] : memref<98xf32, #tpu.memory_space<smem>>
    %73 = vector.extract_strided_slice %71 {offsets = [0, 0], sizes = [16, 16], strides = [1, 1]} : vector<22x16xf32> to vector<16x16xf32>
    %74 = vector.broadcast %72 : f32 to vector<16x16xf32>
    %75 = arith.mulf %74, %73 : vector<16x16xf32>
    %76 = arith.addf %70, %75 : vector<16x16xf32>
    %c8 = arith.constant 8 : index
    %77 = memref.load %arg3[%c8] : memref<98xf32, #tpu.memory_space<smem>>
    %78 = vector.extract_strided_slice %71 {offsets = [1, 0], sizes = [16, 16], strides = [1, 1]} : vector<22x16xf32> to vector<16x16xf32>
    %79 = vector.broadcast %77 : f32 to vector<16x16xf32>
    %80 = arith.mulf %79, %78 : vector<16x16xf32>
    %81 = arith.addf %76, %80 : vector<16x16xf32>
    %c15 = arith.constant 15 : index
    %82 = memref.load %arg3[%c15] : memref<98xf32, #tpu.memory_space<smem>>
    %83 = vector.extract_strided_slice %71 {offsets = [2, 0], sizes = [16, 16], strides = [1, 1]} : vector<22x16xf32> to vector<16x16xf32>
    %84 = vector.broadcast %82 : f32 to vector<16x16xf32>
    %85 = arith.mulf %84, %83 : vector<16x16xf32>
    %86 = arith.addf %81, %85 : vector<16x16xf32>
    %c22 = arith.constant 22 : index
    %87 = memref.load %arg3[%c22] : memref<98xf32, #tpu.memory_space<smem>>
    %88 = vector.extract_strided_slice %71 {offsets = [3, 0], sizes = [16, 16], strides = [1, 1]} : vector<22x16xf32> to vector<16x16xf32>
    %89 = vector.broadcast %87 : f32 to vector<16x16xf32>
    %90 = arith.mulf %89, %88 : vector<16x16xf32>
    %91 = arith.addf %86, %90 : vector<16x16xf32>
    %c29 = arith.constant 29 : index
    %92 = memref.load %arg3[%c29] : memref<98xf32, #tpu.memory_space<smem>>
    %93 = vector.extract_strided_slice %71 {offsets = [4, 0], sizes = [16, 16], strides = [1, 1]} : vector<22x16xf32> to vector<16x16xf32>
    %94 = vector.broadcast %92 : f32 to vector<16x16xf32>
    %95 = arith.mulf %94, %93 : vector<16x16xf32>
    %96 = arith.addf %91, %95 : vector<16x16xf32>
    %c36 = arith.constant 36 : index
    %97 = memref.load %arg3[%c36] : memref<98xf32, #tpu.memory_space<smem>>
    %98 = vector.extract_strided_slice %71 {offsets = [5, 0], sizes = [16, 16], strides = [1, 1]} : vector<22x16xf32> to vector<16x16xf32>
    %99 = vector.broadcast %97 : f32 to vector<16x16xf32>
    %100 = arith.mulf %99, %98 : vector<16x16xf32>
    %101 = arith.addf %96, %100 : vector<16x16xf32>
    %c43 = arith.constant 43 : index
    %102 = memref.load %arg3[%c43] : memref<98xf32, #tpu.memory_space<smem>>
    %103 = vector.extract_strided_slice %71 {offsets = [6, 0], sizes = [16, 16], strides = [1, 1]} : vector<22x16xf32> to vector<16x16xf32>
    %104 = vector.broadcast %102 : f32 to vector<16x16xf32>
    %105 = arith.mulf %104, %103 : vector<16x16xf32>
    %106 = arith.addf %101, %105 : vector<16x16xf32>
    %107 = vector.extract_strided_slice %34 {offsets = [0, 2], sizes = [22, 16], strides = [1, 1]} : vector<22x128xf32> to vector<22x16xf32>
    %c2 = arith.constant 2 : index
    %108 = memref.load %arg3[%c2] : memref<98xf32, #tpu.memory_space<smem>>
    %109 = vector.extract_strided_slice %107 {offsets = [0, 0], sizes = [16, 16], strides = [1, 1]} : vector<22x16xf32> to vector<16x16xf32>
    %110 = vector.broadcast %108 : f32 to vector<16x16xf32>
    %111 = arith.mulf %110, %109 : vector<16x16xf32>
    %112 = arith.addf %106, %111 : vector<16x16xf32>
    %c9 = arith.constant 9 : index
    %113 = memref.load %arg3[%c9] : memref<98xf32, #tpu.memory_space<smem>>
    %114 = vector.extract_strided_slice %107 {offsets = [1, 0], sizes = [16, 16], strides = [1, 1]} : vector<22x16xf32> to vector<16x16xf32>
    %115 = vector.broadcast %113 : f32 to vector<16x16xf32>
    %116 = arith.mulf %115, %114 : vector<16x16xf32>
    %117 = arith.addf %112, %116 : vector<16x16xf32>
    %c16 = arith.constant 16 : index
    %118 = memref.load %arg3[%c16] : memref<98xf32, #tpu.memory_space<smem>>
    %119 = vector.extract_strided_slice %107 {offsets = [2, 0], sizes = [16, 16], strides = [1, 1]} : vector<22x16xf32> to vector<16x16xf32>
    %120 = vector.broadcast %118 : f32 to vector<16x16xf32>
    %121 = arith.mulf %120, %119 : vector<16x16xf32>
    %122 = arith.addf %117, %121 : vector<16x16xf32>
    %c23 = arith.constant 23 : index
    %123 = memref.load %arg3[%c23] : memref<98xf32, #tpu.memory_space<smem>>
    %124 = vector.extract_strided_slice %107 {offsets = [3, 0], sizes = [16, 16], strides = [1, 1]} : vector<22x16xf32> to vector<16x16xf32>
    %125 = vector.broadcast %123 : f32 to vector<16x16xf32>
    %126 = arith.mulf %125, %124 : vector<16x16xf32>
    %127 = arith.addf %122, %126 : vector<16x16xf32>
    %c30 = arith.constant 30 : index
    %128 = memref.load %arg3[%c30] : memref<98xf32, #tpu.memory_space<smem>>
    %129 = vector.extract_strided_slice %107 {offsets = [4, 0], sizes = [16, 16], strides = [1, 1]} : vector<22x16xf32> to vector<16x16xf32>
    %130 = vector.broadcast %128 : f32 to vector<16x16xf32>
    %131 = arith.mulf %130, %129 : vector<16x16xf32>
    %132 = arith.addf %127, %131 : vector<16x16xf32>
    %c37 = arith.constant 37 : index
    %133 = memref.load %arg3[%c37] : memref<98xf32, #tpu.memory_space<smem>>
    %134 = vector.extract_strided_slice %107 {offsets = [5, 0], sizes = [16, 16], strides = [1, 1]} : vector<22x16xf32> to vector<16x16xf32>
    %135 = vector.broadcast %133 : f32 to vector<16x16xf32>
    %136 = arith.mulf %135, %134 : vector<16x16xf32>
    %137 = arith.addf %132, %136 : vector<16x16xf32>
    %c44 = arith.constant 44 : index
    %138 = memref.load %arg3[%c44] : memref<98xf32, #tpu.memory_space<smem>>
    %139 = vector.extract_strided_slice %107 {offsets = [6, 0], sizes = [16, 16], strides = [1, 1]} : vector<22x16xf32> to vector<16x16xf32>
    %140 = vector.broadcast %138 : f32 to vector<16x16xf32>
    %141 = arith.mulf %140, %139 : vector<16x16xf32>
    %142 = arith.addf %137, %141 : vector<16x16xf32>
    %143 = vector.extract_strided_slice %34 {offsets = [0, 3], sizes = [22, 16], strides = [1, 1]} : vector<22x128xf32> to vector<22x16xf32>
    %c3_27 = arith.constant 3 : index
    %144 = memref.load %arg3[%c3_27] : memref<98xf32, #tpu.memory_space<smem>>
    %145 = vector.extract_strided_slice %143 {offsets = [0, 0], sizes = [16, 16], strides = [1, 1]} : vector<22x16xf32> to vector<16x16xf32>
    %146 = vector.broadcast %144 : f32 to vector<16x16xf32>
    %147 = arith.mulf %146, %145 : vector<16x16xf32>
    %148 = arith.addf %142, %147 : vector<16x16xf32>
    %c10 = arith.constant 10 : index
    %149 = memref.load %arg3[%c10] : memref<98xf32, #tpu.memory_space<smem>>
    %150 = vector.extract_strided_slice %143 {offsets = [1, 0], sizes = [16, 16], strides = [1, 1]} : vector<22x16xf32> to vector<16x16xf32>
    %151 = vector.broadcast %149 : f32 to vector<16x16xf32>
    %152 = arith.mulf %151, %150 : vector<16x16xf32>
    %153 = arith.addf %148, %152 : vector<16x16xf32>
    %c17 = arith.constant 17 : index
    %154 = memref.load %arg3[%c17] : memref<98xf32, #tpu.memory_space<smem>>
    %155 = vector.extract_strided_slice %143 {offsets = [2, 0], sizes = [16, 16], strides = [1, 1]} : vector<22x16xf32> to vector<16x16xf32>
    %156 = vector.broadcast %154 : f32 to vector<16x16xf32>
    %157 = arith.mulf %156, %155 : vector<16x16xf32>
    %158 = arith.addf %153, %157 : vector<16x16xf32>
    %c24 = arith.constant 24 : index
    %159 = memref.load %arg3[%c24] : memref<98xf32, #tpu.memory_space<smem>>
    %160 = vector.extract_strided_slice %143 {offsets = [3, 0], sizes = [16, 16], strides = [1, 1]} : vector<22x16xf32> to vector<16x16xf32>
    %161 = vector.broadcast %159 : f32 to vector<16x16xf32>
    %162 = arith.mulf %161, %160 : vector<16x16xf32>
    %163 = arith.addf %158, %162 : vector<16x16xf32>
    %c31 = arith.constant 31 : index
    %164 = memref.load %arg3[%c31] : memref<98xf32, #tpu.memory_space<smem>>
    %165 = vector.extract_strided_slice %143 {offsets = [4, 0], sizes = [16, 16], strides = [1, 1]} : vector<22x16xf32> to vector<16x16xf32>
    %166 = vector.broadcast %164 : f32 to vector<16x16xf32>
    %167 = arith.mulf %166, %165 : vector<16x16xf32>
    %168 = arith.addf %163, %167 : vector<16x16xf32>
    %c38 = arith.constant 38 : index
    %169 = memref.load %arg3[%c38] : memref<98xf32, #tpu.memory_space<smem>>
    %170 = vector.extract_strided_slice %143 {offsets = [5, 0], sizes = [16, 16], strides = [1, 1]} : vector<22x16xf32> to vector<16x16xf32>
    %171 = vector.broadcast %169 : f32 to vector<16x16xf32>
    %172 = arith.mulf %171, %170 : vector<16x16xf32>
    %173 = arith.addf %168, %172 : vector<16x16xf32>
    %c45 = arith.constant 45 : index
    %174 = memref.load %arg3[%c45] : memref<98xf32, #tpu.memory_space<smem>>
    %175 = vector.extract_strided_slice %143 {offsets = [6, 0], sizes = [16, 16], strides = [1, 1]} : vector<22x16xf32> to vector<16x16xf32>
    %176 = vector.broadcast %174 : f32 to vector<16x16xf32>
    %177 = arith.mulf %176, %175 : vector<16x16xf32>
    %178 = arith.addf %173, %177 : vector<16x16xf32>
    %179 = vector.extract_strided_slice %34 {offsets = [0, 4], sizes = [22, 16], strides = [1, 1]} : vector<22x128xf32> to vector<22x16xf32>
    %c4 = arith.constant 4 : index
    %180 = memref.load %arg3[%c4] : memref<98xf32, #tpu.memory_space<smem>>
    %181 = vector.extract_strided_slice %179 {offsets = [0, 0], sizes = [16, 16], strides = [1, 1]} : vector<22x16xf32> to vector<16x16xf32>
    %182 = vector.broadcast %180 : f32 to vector<16x16xf32>
    %183 = arith.mulf %182, %181 : vector<16x16xf32>
    %184 = arith.addf %178, %183 : vector<16x16xf32>
    %c11 = arith.constant 11 : index
    %185 = memref.load %arg3[%c11] : memref<98xf32, #tpu.memory_space<smem>>
    %186 = vector.extract_strided_slice %179 {offsets = [1, 0], sizes = [16, 16], strides = [1, 1]} : vector<22x16xf32> to vector<16x16xf32>
    %187 = vector.broadcast %185 : f32 to vector<16x16xf32>
    %188 = arith.mulf %187, %186 : vector<16x16xf32>
    %189 = arith.addf %184, %188 : vector<16x16xf32>
    %c18 = arith.constant 18 : index
    %190 = memref.load %arg3[%c18] : memref<98xf32, #tpu.memory_space<smem>>
    %191 = vector.extract_strided_slice %179 {offsets = [2, 0], sizes = [16, 16], strides = [1, 1]} : vector<22x16xf32> to vector<16x16xf32>
    %192 = vector.broadcast %190 : f32 to vector<16x16xf32>
    %193 = arith.mulf %192, %191 : vector<16x16xf32>
    %194 = arith.addf %189, %193 : vector<16x16xf32>
    %c25 = arith.constant 25 : index
    %195 = memref.load %arg3[%c25] : memref<98xf32, #tpu.memory_space<smem>>
    %196 = vector.extract_strided_slice %179 {offsets = [3, 0], sizes = [16, 16], strides = [1, 1]} : vector<22x16xf32> to vector<16x16xf32>
    %197 = vector.broadcast %195 : f32 to vector<16x16xf32>
    %198 = arith.mulf %197, %196 : vector<16x16xf32>
    %199 = arith.addf %194, %198 : vector<16x16xf32>
    %c32 = arith.constant 32 : index
    %200 = memref.load %arg3[%c32] : memref<98xf32, #tpu.memory_space<smem>>
    %201 = vector.extract_strided_slice %179 {offsets = [4, 0], sizes = [16, 16], strides = [1, 1]} : vector<22x16xf32> to vector<16x16xf32>
    %202 = vector.broadcast %200 : f32 to vector<16x16xf32>
    %203 = arith.mulf %202, %201 : vector<16x16xf32>
    %204 = arith.addf %199, %203 : vector<16x16xf32>
    %c39 = arith.constant 39 : index
    %205 = memref.load %arg3[%c39] : memref<98xf32, #tpu.memory_space<smem>>
    %206 = vector.extract_strided_slice %179 {offsets = [5, 0], sizes = [16, 16], strides = [1, 1]} : vector<22x16xf32> to vector<16x16xf32>
    %207 = vector.broadcast %205 : f32 to vector<16x16xf32>
    %208 = arith.mulf %207, %206 : vector<16x16xf32>
    %209 = arith.addf %204, %208 : vector<16x16xf32>
    %c46 = arith.constant 46 : index
    %210 = memref.load %arg3[%c46] : memref<98xf32, #tpu.memory_space<smem>>
    %211 = vector.extract_strided_slice %179 {offsets = [6, 0], sizes = [16, 16], strides = [1, 1]} : vector<22x16xf32> to vector<16x16xf32>
    %212 = vector.broadcast %210 : f32 to vector<16x16xf32>
    %213 = arith.mulf %212, %211 : vector<16x16xf32>
    %214 = arith.addf %209, %213 : vector<16x16xf32>
    %215 = vector.extract_strided_slice %34 {offsets = [0, 5], sizes = [22, 16], strides = [1, 1]} : vector<22x128xf32> to vector<22x16xf32>
    %c5 = arith.constant 5 : index
    %216 = memref.load %arg3[%c5] : memref<98xf32, #tpu.memory_space<smem>>
    %217 = vector.extract_strided_slice %215 {offsets = [0, 0], sizes = [16, 16], strides = [1, 1]} : vector<22x16xf32> to vector<16x16xf32>
    %218 = vector.broadcast %216 : f32 to vector<16x16xf32>
    %219 = arith.mulf %218, %217 : vector<16x16xf32>
    %220 = arith.addf %214, %219 : vector<16x16xf32>
    %c12 = arith.constant 12 : index
    %221 = memref.load %arg3[%c12] : memref<98xf32, #tpu.memory_space<smem>>
    %222 = vector.extract_strided_slice %215 {offsets = [1, 0], sizes = [16, 16], strides = [1, 1]} : vector<22x16xf32> to vector<16x16xf32>
    %223 = vector.broadcast %221 : f32 to vector<16x16xf32>
    %224 = arith.mulf %223, %222 : vector<16x16xf32>
    %225 = arith.addf %220, %224 : vector<16x16xf32>
    %c19 = arith.constant 19 : index
    %226 = memref.load %arg3[%c19] : memref<98xf32, #tpu.memory_space<smem>>
    %227 = vector.extract_strided_slice %215 {offsets = [2, 0], sizes = [16, 16], strides = [1, 1]} : vector<22x16xf32> to vector<16x16xf32>
    %228 = vector.broadcast %226 : f32 to vector<16x16xf32>
    %229 = arith.mulf %228, %227 : vector<16x16xf32>
    %230 = arith.addf %225, %229 : vector<16x16xf32>
    %c26 = arith.constant 26 : index
    %231 = memref.load %arg3[%c26] : memref<98xf32, #tpu.memory_space<smem>>
    %232 = vector.extract_strided_slice %215 {offsets = [3, 0], sizes = [16, 16], strides = [1, 1]} : vector<22x16xf32> to vector<16x16xf32>
    %233 = vector.broadcast %231 : f32 to vector<16x16xf32>
    %234 = arith.mulf %233, %232 : vector<16x16xf32>
    %235 = arith.addf %230, %234 : vector<16x16xf32>
    %c33 = arith.constant 33 : index
    %236 = memref.load %arg3[%c33] : memref<98xf32, #tpu.memory_space<smem>>
    %237 = vector.extract_strided_slice %215 {offsets = [4, 0], sizes = [16, 16], strides = [1, 1]} : vector<22x16xf32> to vector<16x16xf32>
    %238 = vector.broadcast %236 : f32 to vector<16x16xf32>
    %239 = arith.mulf %238, %237 : vector<16x16xf32>
    %240 = arith.addf %235, %239 : vector<16x16xf32>
    %c40 = arith.constant 40 : index
    %241 = memref.load %arg3[%c40] : memref<98xf32, #tpu.memory_space<smem>>
    %242 = vector.extract_strided_slice %215 {offsets = [5, 0], sizes = [16, 16], strides = [1, 1]} : vector<22x16xf32> to vector<16x16xf32>
    %243 = vector.broadcast %241 : f32 to vector<16x16xf32>
    %244 = arith.mulf %243, %242 : vector<16x16xf32>
    %245 = arith.addf %240, %244 : vector<16x16xf32>
    %c47 = arith.constant 47 : index
    %246 = memref.load %arg3[%c47] : memref<98xf32, #tpu.memory_space<smem>>
    %247 = vector.extract_strided_slice %215 {offsets = [6, 0], sizes = [16, 16], strides = [1, 1]} : vector<22x16xf32> to vector<16x16xf32>
    %248 = vector.broadcast %246 : f32 to vector<16x16xf32>
    %249 = arith.mulf %248, %247 : vector<16x16xf32>
    %250 = arith.addf %245, %249 : vector<16x16xf32>
    %251 = vector.extract_strided_slice %34 {offsets = [0, 6], sizes = [22, 16], strides = [1, 1]} : vector<22x128xf32> to vector<22x16xf32>
    %c6 = arith.constant 6 : index
    %252 = memref.load %arg3[%c6] : memref<98xf32, #tpu.memory_space<smem>>
    %253 = vector.extract_strided_slice %251 {offsets = [0, 0], sizes = [16, 16], strides = [1, 1]} : vector<22x16xf32> to vector<16x16xf32>
    %254 = vector.broadcast %252 : f32 to vector<16x16xf32>
    %255 = arith.mulf %254, %253 : vector<16x16xf32>
    %256 = arith.addf %250, %255 : vector<16x16xf32>
    %c13 = arith.constant 13 : index
    %257 = memref.load %arg3[%c13] : memref<98xf32, #tpu.memory_space<smem>>
    %258 = vector.extract_strided_slice %251 {offsets = [1, 0], sizes = [16, 16], strides = [1, 1]} : vector<22x16xf32> to vector<16x16xf32>
    %259 = vector.broadcast %257 : f32 to vector<16x16xf32>
    %260 = arith.mulf %259, %258 : vector<16x16xf32>
    %261 = arith.addf %256, %260 : vector<16x16xf32>
    %c20 = arith.constant 20 : index
    %262 = memref.load %arg3[%c20] : memref<98xf32, #tpu.memory_space<smem>>
    %263 = vector.extract_strided_slice %251 {offsets = [2, 0], sizes = [16, 16], strides = [1, 1]} : vector<22x16xf32> to vector<16x16xf32>
    %264 = vector.broadcast %262 : f32 to vector<16x16xf32>
    %265 = arith.mulf %264, %263 : vector<16x16xf32>
    %266 = arith.addf %261, %265 : vector<16x16xf32>
    %c27 = arith.constant 27 : index
    %267 = memref.load %arg3[%c27] : memref<98xf32, #tpu.memory_space<smem>>
    %268 = vector.extract_strided_slice %251 {offsets = [3, 0], sizes = [16, 16], strides = [1, 1]} : vector<22x16xf32> to vector<16x16xf32>
    %269 = vector.broadcast %267 : f32 to vector<16x16xf32>
    %270 = arith.mulf %269, %268 : vector<16x16xf32>
    %271 = arith.addf %266, %270 : vector<16x16xf32>
    %c34 = arith.constant 34 : index
    %272 = memref.load %arg3[%c34] : memref<98xf32, #tpu.memory_space<smem>>
    %273 = vector.extract_strided_slice %251 {offsets = [4, 0], sizes = [16, 16], strides = [1, 1]} : vector<22x16xf32> to vector<16x16xf32>
    %274 = vector.broadcast %272 : f32 to vector<16x16xf32>
    %275 = arith.mulf %274, %273 : vector<16x16xf32>
    %276 = arith.addf %271, %275 : vector<16x16xf32>
    %c41 = arith.constant 41 : index
    %277 = memref.load %arg3[%c41] : memref<98xf32, #tpu.memory_space<smem>>
    %278 = vector.extract_strided_slice %251 {offsets = [5, 0], sizes = [16, 16], strides = [1, 1]} : vector<22x16xf32> to vector<16x16xf32>
    %279 = vector.broadcast %277 : f32 to vector<16x16xf32>
    %280 = arith.mulf %279, %278 : vector<16x16xf32>
    %281 = arith.addf %276, %280 : vector<16x16xf32>
    %c48 = arith.constant 48 : index
    %282 = memref.load %arg3[%c48] : memref<98xf32, #tpu.memory_space<smem>>
    %283 = vector.extract_strided_slice %251 {offsets = [6, 0], sizes = [16, 16], strides = [1, 1]} : vector<22x16xf32> to vector<16x16xf32>
    %284 = vector.broadcast %282 : f32 to vector<16x16xf32>
    %285 = arith.mulf %284, %283 : vector<16x16xf32>
    %286 = arith.addf %281, %285 : vector<16x16xf32>
    %c1_28 = arith.constant 1 : index
    %c0_29 = arith.constant 0 : index
    %c0_30 = arith.constant 0 : index
    %287 = vector.load %arg5[%c1_28, %c0_29, %c0_30] : memref<2x22x128xf32, #tpu.memory_space<vmem>>, vector<1x22x128xf32>
    %288 = vector.shape_cast %287 : vector<1x22x128xf32> to vector<22x128xf32>
    %289 = vector.extract_strided_slice %288 {offsets = [0, 0], sizes = [22, 16], strides = [1, 1]} : vector<22x128xf32> to vector<22x16xf32>
    %c49 = arith.constant 49 : index
    %290 = memref.load %arg3[%c49] : memref<98xf32, #tpu.memory_space<smem>>
    %291 = vector.extract_strided_slice %289 {offsets = [0, 0], sizes = [16, 16], strides = [1, 1]} : vector<22x16xf32> to vector<16x16xf32>
    %292 = vector.broadcast %290 : f32 to vector<16x16xf32>
    %293 = arith.mulf %292, %291 : vector<16x16xf32>
    %294 = arith.addf %286, %293 : vector<16x16xf32>
    %c56 = arith.constant 56 : index
    %295 = memref.load %arg3[%c56] : memref<98xf32, #tpu.memory_space<smem>>
    %296 = vector.extract_strided_slice %289 {offsets = [1, 0], sizes = [16, 16], strides = [1, 1]} : vector<22x16xf32> to vector<16x16xf32>
    %297 = vector.broadcast %295 : f32 to vector<16x16xf32>
    %298 = arith.mulf %297, %296 : vector<16x16xf32>
    %299 = arith.addf %294, %298 : vector<16x16xf32>
    %c63 = arith.constant 63 : index
    %300 = memref.load %arg3[%c63] : memref<98xf32, #tpu.memory_space<smem>>
    %301 = vector.extract_strided_slice %289 {offsets = [2, 0], sizes = [16, 16], strides = [1, 1]} : vector<22x16xf32> to vector<16x16xf32>
    %302 = vector.broadcast %300 : f32 to vector<16x16xf32>
    %303 = arith.mulf %302, %301 : vector<16x16xf32>
    %304 = arith.addf %299, %303 : vector<16x16xf32>
    %c70 = arith.constant 70 : index
    %305 = memref.load %arg3[%c70] : memref<98xf32, #tpu.memory_space<smem>>
    %306 = vector.extract_strided_slice %289 {offsets = [3, 0], sizes = [16, 16], strides = [1, 1]} : vector<22x16xf32> to vector<16x16xf32>
    %307 = vector.broadcast %305 : f32 to vector<16x16xf32>
    %308 = arith.mulf %307, %306 : vector<16x16xf32>
    %309 = arith.addf %304, %308 : vector<16x16xf32>
    %c77 = arith.constant 77 : index
    %310 = memref.load %arg3[%c77] : memref<98xf32, #tpu.memory_space<smem>>
    %311 = vector.extract_strided_slice %289 {offsets = [4, 0], sizes = [16, 16], strides = [1, 1]} : vector<22x16xf32> to vector<16x16xf32>
    %312 = vector.broadcast %310 : f32 to vector<16x16xf32>
    %313 = arith.mulf %312, %311 : vector<16x16xf32>
    %314 = arith.addf %309, %313 : vector<16x16xf32>
    %c84 = arith.constant 84 : index
    %315 = memref.load %arg3[%c84] : memref<98xf32, #tpu.memory_space<smem>>
    %316 = vector.extract_strided_slice %289 {offsets = [5, 0], sizes = [16, 16], strides = [1, 1]} : vector<22x16xf32> to vector<16x16xf32>
    %317 = vector.broadcast %315 : f32 to vector<16x16xf32>
    %318 = arith.mulf %317, %316 : vector<16x16xf32>
    %319 = arith.addf %314, %318 : vector<16x16xf32>
    %c91 = arith.constant 91 : index
    %320 = memref.load %arg3[%c91] : memref<98xf32, #tpu.memory_space<smem>>
    %321 = vector.extract_strided_slice %289 {offsets = [6, 0], sizes = [16, 16], strides = [1, 1]} : vector<22x16xf32> to vector<16x16xf32>
    %322 = vector.broadcast %320 : f32 to vector<16x16xf32>
    %323 = arith.mulf %322, %321 : vector<16x16xf32>
    %324 = arith.addf %319, %323 : vector<16x16xf32>
    %325 = vector.extract_strided_slice %288 {offsets = [0, 1], sizes = [22, 16], strides = [1, 1]} : vector<22x128xf32> to vector<22x16xf32>
    %c50 = arith.constant 50 : index
    %326 = memref.load %arg3[%c50] : memref<98xf32, #tpu.memory_space<smem>>
    %327 = vector.extract_strided_slice %325 {offsets = [0, 0], sizes = [16, 16], strides = [1, 1]} : vector<22x16xf32> to vector<16x16xf32>
    %328 = vector.broadcast %326 : f32 to vector<16x16xf32>
    %329 = arith.mulf %328, %327 : vector<16x16xf32>
    %330 = arith.addf %324, %329 : vector<16x16xf32>
    %c57 = arith.constant 57 : index
    %331 = memref.load %arg3[%c57] : memref<98xf32, #tpu.memory_space<smem>>
    %332 = vector.extract_strided_slice %325 {offsets = [1, 0], sizes = [16, 16], strides = [1, 1]} : vector<22x16xf32> to vector<16x16xf32>
    %333 = vector.broadcast %331 : f32 to vector<16x16xf32>
    %334 = arith.mulf %333, %332 : vector<16x16xf32>
    %335 = arith.addf %330, %334 : vector<16x16xf32>
    %c64 = arith.constant 64 : index
    %336 = memref.load %arg3[%c64] : memref<98xf32, #tpu.memory_space<smem>>
    %337 = vector.extract_strided_slice %325 {offsets = [2, 0], sizes = [16, 16], strides = [1, 1]} : vector<22x16xf32> to vector<16x16xf32>
    %338 = vector.broadcast %336 : f32 to vector<16x16xf32>
    %339 = arith.mulf %338, %337 : vector<16x16xf32>
    %340 = arith.addf %335, %339 : vector<16x16xf32>
    %c71 = arith.constant 71 : index
    %341 = memref.load %arg3[%c71] : memref<98xf32, #tpu.memory_space<smem>>
    %342 = vector.extract_strided_slice %325 {offsets = [3, 0], sizes = [16, 16], strides = [1, 1]} : vector<22x16xf32> to vector<16x16xf32>
    %343 = vector.broadcast %341 : f32 to vector<16x16xf32>
    %344 = arith.mulf %343, %342 : vector<16x16xf32>
    %345 = arith.addf %340, %344 : vector<16x16xf32>
    %c78 = arith.constant 78 : index
    %346 = memref.load %arg3[%c78] : memref<98xf32, #tpu.memory_space<smem>>
    %347 = vector.extract_strided_slice %325 {offsets = [4, 0], sizes = [16, 16], strides = [1, 1]} : vector<22x16xf32> to vector<16x16xf32>
    %348 = vector.broadcast %346 : f32 to vector<16x16xf32>
    %349 = arith.mulf %348, %347 : vector<16x16xf32>
    %350 = arith.addf %345, %349 : vector<16x16xf32>
    %c85 = arith.constant 85 : index
    %351 = memref.load %arg3[%c85] : memref<98xf32, #tpu.memory_space<smem>>
    %352 = vector.extract_strided_slice %325 {offsets = [5, 0], sizes = [16, 16], strides = [1, 1]} : vector<22x16xf32> to vector<16x16xf32>
    %353 = vector.broadcast %351 : f32 to vector<16x16xf32>
    %354 = arith.mulf %353, %352 : vector<16x16xf32>
    %355 = arith.addf %350, %354 : vector<16x16xf32>
    %c92 = arith.constant 92 : index
    %356 = memref.load %arg3[%c92] : memref<98xf32, #tpu.memory_space<smem>>
    %357 = vector.extract_strided_slice %325 {offsets = [6, 0], sizes = [16, 16], strides = [1, 1]} : vector<22x16xf32> to vector<16x16xf32>
    %358 = vector.broadcast %356 : f32 to vector<16x16xf32>
    %359 = arith.mulf %358, %357 : vector<16x16xf32>
    %360 = arith.addf %355, %359 : vector<16x16xf32>
    %361 = vector.extract_strided_slice %288 {offsets = [0, 2], sizes = [22, 16], strides = [1, 1]} : vector<22x128xf32> to vector<22x16xf32>
    %c51 = arith.constant 51 : index
    %362 = memref.load %arg3[%c51] : memref<98xf32, #tpu.memory_space<smem>>
    %363 = vector.extract_strided_slice %361 {offsets = [0, 0], sizes = [16, 16], strides = [1, 1]} : vector<22x16xf32> to vector<16x16xf32>
    %364 = vector.broadcast %362 : f32 to vector<16x16xf32>
    %365 = arith.mulf %364, %363 : vector<16x16xf32>
    %366 = arith.addf %360, %365 : vector<16x16xf32>
    %c58 = arith.constant 58 : index
    %367 = memref.load %arg3[%c58] : memref<98xf32, #tpu.memory_space<smem>>
    %368 = vector.extract_strided_slice %361 {offsets = [1, 0], sizes = [16, 16], strides = [1, 1]} : vector<22x16xf32> to vector<16x16xf32>
    %369 = vector.broadcast %367 : f32 to vector<16x16xf32>
    %370 = arith.mulf %369, %368 : vector<16x16xf32>
    %371 = arith.addf %366, %370 : vector<16x16xf32>
    %c65 = arith.constant 65 : index
    %372 = memref.load %arg3[%c65] : memref<98xf32, #tpu.memory_space<smem>>
    %373 = vector.extract_strided_slice %361 {offsets = [2, 0], sizes = [16, 16], strides = [1, 1]} : vector<22x16xf32> to vector<16x16xf32>
    %374 = vector.broadcast %372 : f32 to vector<16x16xf32>
    %375 = arith.mulf %374, %373 : vector<16x16xf32>
    %376 = arith.addf %371, %375 : vector<16x16xf32>
    %c72 = arith.constant 72 : index
    %377 = memref.load %arg3[%c72] : memref<98xf32, #tpu.memory_space<smem>>
    %378 = vector.extract_strided_slice %361 {offsets = [3, 0], sizes = [16, 16], strides = [1, 1]} : vector<22x16xf32> to vector<16x16xf32>
    %379 = vector.broadcast %377 : f32 to vector<16x16xf32>
    %380 = arith.mulf %379, %378 : vector<16x16xf32>
    %381 = arith.addf %376, %380 : vector<16x16xf32>
    %c79 = arith.constant 79 : index
    %382 = memref.load %arg3[%c79] : memref<98xf32, #tpu.memory_space<smem>>
    %383 = vector.extract_strided_slice %361 {offsets = [4, 0], sizes = [16, 16], strides = [1, 1]} : vector<22x16xf32> to vector<16x16xf32>
    %384 = vector.broadcast %382 : f32 to vector<16x16xf32>
    %385 = arith.mulf %384, %383 : vector<16x16xf32>
    %386 = arith.addf %381, %385 : vector<16x16xf32>
    %c86 = arith.constant 86 : index
    %387 = memref.load %arg3[%c86] : memref<98xf32, #tpu.memory_space<smem>>
    %388 = vector.extract_strided_slice %361 {offsets = [5, 0], sizes = [16, 16], strides = [1, 1]} : vector<22x16xf32> to vector<16x16xf32>
    %389 = vector.broadcast %387 : f32 to vector<16x16xf32>
    %390 = arith.mulf %389, %388 : vector<16x16xf32>
    %391 = arith.addf %386, %390 : vector<16x16xf32>
    %c93 = arith.constant 93 : index
    %392 = memref.load %arg3[%c93] : memref<98xf32, #tpu.memory_space<smem>>
    %393 = vector.extract_strided_slice %361 {offsets = [6, 0], sizes = [16, 16], strides = [1, 1]} : vector<22x16xf32> to vector<16x16xf32>
    %394 = vector.broadcast %392 : f32 to vector<16x16xf32>
    %395 = arith.mulf %394, %393 : vector<16x16xf32>
    %396 = arith.addf %391, %395 : vector<16x16xf32>
    %397 = vector.extract_strided_slice %288 {offsets = [0, 3], sizes = [22, 16], strides = [1, 1]} : vector<22x128xf32> to vector<22x16xf32>
    %c52 = arith.constant 52 : index
    %398 = memref.load %arg3[%c52] : memref<98xf32, #tpu.memory_space<smem>>
    %399 = vector.extract_strided_slice %397 {offsets = [0, 0], sizes = [16, 16], strides = [1, 1]} : vector<22x16xf32> to vector<16x16xf32>
    %400 = vector.broadcast %398 : f32 to vector<16x16xf32>
    %401 = arith.mulf %400, %399 : vector<16x16xf32>
    %402 = arith.addf %396, %401 : vector<16x16xf32>
    %c59 = arith.constant 59 : index
    %403 = memref.load %arg3[%c59] : memref<98xf32, #tpu.memory_space<smem>>
    %404 = vector.extract_strided_slice %397 {offsets = [1, 0], sizes = [16, 16], strides = [1, 1]} : vector<22x16xf32> to vector<16x16xf32>
    %405 = vector.broadcast %403 : f32 to vector<16x16xf32>
    %406 = arith.mulf %405, %404 : vector<16x16xf32>
    %407 = arith.addf %402, %406 : vector<16x16xf32>
    %c66 = arith.constant 66 : index
    %408 = memref.load %arg3[%c66] : memref<98xf32, #tpu.memory_space<smem>>
    %409 = vector.extract_strided_slice %397 {offsets = [2, 0], sizes = [16, 16], strides = [1, 1]} : vector<22x16xf32> to vector<16x16xf32>
    %410 = vector.broadcast %408 : f32 to vector<16x16xf32>
    %411 = arith.mulf %410, %409 : vector<16x16xf32>
    %412 = arith.addf %407, %411 : vector<16x16xf32>
    %c73 = arith.constant 73 : index
    %413 = memref.load %arg3[%c73] : memref<98xf32, #tpu.memory_space<smem>>
    %414 = vector.extract_strided_slice %397 {offsets = [3, 0], sizes = [16, 16], strides = [1, 1]} : vector<22x16xf32> to vector<16x16xf32>
    %415 = vector.broadcast %413 : f32 to vector<16x16xf32>
    %416 = arith.mulf %415, %414 : vector<16x16xf32>
    %417 = arith.addf %412, %416 : vector<16x16xf32>
    %c80 = arith.constant 80 : index
    %418 = memref.load %arg3[%c80] : memref<98xf32, #tpu.memory_space<smem>>
    %419 = vector.extract_strided_slice %397 {offsets = [4, 0], sizes = [16, 16], strides = [1, 1]} : vector<22x16xf32> to vector<16x16xf32>
    %420 = vector.broadcast %418 : f32 to vector<16x16xf32>
    %421 = arith.mulf %420, %419 : vector<16x16xf32>
    %422 = arith.addf %417, %421 : vector<16x16xf32>
    %c87 = arith.constant 87 : index
    %423 = memref.load %arg3[%c87] : memref<98xf32, #tpu.memory_space<smem>>
    %424 = vector.extract_strided_slice %397 {offsets = [5, 0], sizes = [16, 16], strides = [1, 1]} : vector<22x16xf32> to vector<16x16xf32>
    %425 = vector.broadcast %423 : f32 to vector<16x16xf32>
    %426 = arith.mulf %425, %424 : vector<16x16xf32>
    %427 = arith.addf %422, %426 : vector<16x16xf32>
    %c94 = arith.constant 94 : index
    %428 = memref.load %arg3[%c94] : memref<98xf32, #tpu.memory_space<smem>>
    %429 = vector.extract_strided_slice %397 {offsets = [6, 0], sizes = [16, 16], strides = [1, 1]} : vector<22x16xf32> to vector<16x16xf32>
    %430 = vector.broadcast %428 : f32 to vector<16x16xf32>
    %431 = arith.mulf %430, %429 : vector<16x16xf32>
    %432 = arith.addf %427, %431 : vector<16x16xf32>
    %433 = vector.extract_strided_slice %288 {offsets = [0, 4], sizes = [22, 16], strides = [1, 1]} : vector<22x128xf32> to vector<22x16xf32>
    %c53 = arith.constant 53 : index
    %434 = memref.load %arg3[%c53] : memref<98xf32, #tpu.memory_space<smem>>
    %435 = vector.extract_strided_slice %433 {offsets = [0, 0], sizes = [16, 16], strides = [1, 1]} : vector<22x16xf32> to vector<16x16xf32>
    %436 = vector.broadcast %434 : f32 to vector<16x16xf32>
    %437 = arith.mulf %436, %435 : vector<16x16xf32>
    %438 = arith.addf %432, %437 : vector<16x16xf32>
    %c60 = arith.constant 60 : index
    %439 = memref.load %arg3[%c60] : memref<98xf32, #tpu.memory_space<smem>>
    %440 = vector.extract_strided_slice %433 {offsets = [1, 0], sizes = [16, 16], strides = [1, 1]} : vector<22x16xf32> to vector<16x16xf32>
    %441 = vector.broadcast %439 : f32 to vector<16x16xf32>
    %442 = arith.mulf %441, %440 : vector<16x16xf32>
    %443 = arith.addf %438, %442 : vector<16x16xf32>
    %c67 = arith.constant 67 : index
    %444 = memref.load %arg3[%c67] : memref<98xf32, #tpu.memory_space<smem>>
    %445 = vector.extract_strided_slice %433 {offsets = [2, 0], sizes = [16, 16], strides = [1, 1]} : vector<22x16xf32> to vector<16x16xf32>
    %446 = vector.broadcast %444 : f32 to vector<16x16xf32>
    %447 = arith.mulf %446, %445 : vector<16x16xf32>
    %448 = arith.addf %443, %447 : vector<16x16xf32>
    %c74 = arith.constant 74 : index
    %449 = memref.load %arg3[%c74] : memref<98xf32, #tpu.memory_space<smem>>
    %450 = vector.extract_strided_slice %433 {offsets = [3, 0], sizes = [16, 16], strides = [1, 1]} : vector<22x16xf32> to vector<16x16xf32>
    %451 = vector.broadcast %449 : f32 to vector<16x16xf32>
    %452 = arith.mulf %451, %450 : vector<16x16xf32>
    %453 = arith.addf %448, %452 : vector<16x16xf32>
    %c81 = arith.constant 81 : index
    %454 = memref.load %arg3[%c81] : memref<98xf32, #tpu.memory_space<smem>>
    %455 = vector.extract_strided_slice %433 {offsets = [4, 0], sizes = [16, 16], strides = [1, 1]} : vector<22x16xf32> to vector<16x16xf32>
    %456 = vector.broadcast %454 : f32 to vector<16x16xf32>
    %457 = arith.mulf %456, %455 : vector<16x16xf32>
    %458 = arith.addf %453, %457 : vector<16x16xf32>
    %c88 = arith.constant 88 : index
    %459 = memref.load %arg3[%c88] : memref<98xf32, #tpu.memory_space<smem>>
    %460 = vector.extract_strided_slice %433 {offsets = [5, 0], sizes = [16, 16], strides = [1, 1]} : vector<22x16xf32> to vector<16x16xf32>
    %461 = vector.broadcast %459 : f32 to vector<16x16xf32>
    %462 = arith.mulf %461, %460 : vector<16x16xf32>
    %463 = arith.addf %458, %462 : vector<16x16xf32>
    %c95 = arith.constant 95 : index
    %464 = memref.load %arg3[%c95] : memref<98xf32, #tpu.memory_space<smem>>
    %465 = vector.extract_strided_slice %433 {offsets = [6, 0], sizes = [16, 16], strides = [1, 1]} : vector<22x16xf32> to vector<16x16xf32>
    %466 = vector.broadcast %464 : f32 to vector<16x16xf32>
    %467 = arith.mulf %466, %465 : vector<16x16xf32>
    %468 = arith.addf %463, %467 : vector<16x16xf32>
    %469 = vector.extract_strided_slice %288 {offsets = [0, 5], sizes = [22, 16], strides = [1, 1]} : vector<22x128xf32> to vector<22x16xf32>
    %c54 = arith.constant 54 : index
    %470 = memref.load %arg3[%c54] : memref<98xf32, #tpu.memory_space<smem>>
    %471 = vector.extract_strided_slice %469 {offsets = [0, 0], sizes = [16, 16], strides = [1, 1]} : vector<22x16xf32> to vector<16x16xf32>
    %472 = vector.broadcast %470 : f32 to vector<16x16xf32>
    %473 = arith.mulf %472, %471 : vector<16x16xf32>
    %474 = arith.addf %468, %473 : vector<16x16xf32>
    %c61 = arith.constant 61 : index
    %475 = memref.load %arg3[%c61] : memref<98xf32, #tpu.memory_space<smem>>
    %476 = vector.extract_strided_slice %469 {offsets = [1, 0], sizes = [16, 16], strides = [1, 1]} : vector<22x16xf32> to vector<16x16xf32>
    %477 = vector.broadcast %475 : f32 to vector<16x16xf32>
    %478 = arith.mulf %477, %476 : vector<16x16xf32>
    %479 = arith.addf %474, %478 : vector<16x16xf32>
    %c68 = arith.constant 68 : index
    %480 = memref.load %arg3[%c68] : memref<98xf32, #tpu.memory_space<smem>>
    %481 = vector.extract_strided_slice %469 {offsets = [2, 0], sizes = [16, 16], strides = [1, 1]} : vector<22x16xf32> to vector<16x16xf32>
    %482 = vector.broadcast %480 : f32 to vector<16x16xf32>
    %483 = arith.mulf %482, %481 : vector<16x16xf32>
    %484 = arith.addf %479, %483 : vector<16x16xf32>
    %c75 = arith.constant 75 : index
    %485 = memref.load %arg3[%c75] : memref<98xf32, #tpu.memory_space<smem>>
    %486 = vector.extract_strided_slice %469 {offsets = [3, 0], sizes = [16, 16], strides = [1, 1]} : vector<22x16xf32> to vector<16x16xf32>
    %487 = vector.broadcast %485 : f32 to vector<16x16xf32>
    %488 = arith.mulf %487, %486 : vector<16x16xf32>
    %489 = arith.addf %484, %488 : vector<16x16xf32>
    %c82 = arith.constant 82 : index
    %490 = memref.load %arg3[%c82] : memref<98xf32, #tpu.memory_space<smem>>
    %491 = vector.extract_strided_slice %469 {offsets = [4, 0], sizes = [16, 16], strides = [1, 1]} : vector<22x16xf32> to vector<16x16xf32>
    %492 = vector.broadcast %490 : f32 to vector<16x16xf32>
    %493 = arith.mulf %492, %491 : vector<16x16xf32>
    %494 = arith.addf %489, %493 : vector<16x16xf32>
    %c89 = arith.constant 89 : index
    %495 = memref.load %arg3[%c89] : memref<98xf32, #tpu.memory_space<smem>>
    %496 = vector.extract_strided_slice %469 {offsets = [5, 0], sizes = [16, 16], strides = [1, 1]} : vector<22x16xf32> to vector<16x16xf32>
    %497 = vector.broadcast %495 : f32 to vector<16x16xf32>
    %498 = arith.mulf %497, %496 : vector<16x16xf32>
    %499 = arith.addf %494, %498 : vector<16x16xf32>
    %c96 = arith.constant 96 : index
    %500 = memref.load %arg3[%c96] : memref<98xf32, #tpu.memory_space<smem>>
    %501 = vector.extract_strided_slice %469 {offsets = [6, 0], sizes = [16, 16], strides = [1, 1]} : vector<22x16xf32> to vector<16x16xf32>
    %502 = vector.broadcast %500 : f32 to vector<16x16xf32>
    %503 = arith.mulf %502, %501 : vector<16x16xf32>
    %504 = arith.addf %499, %503 : vector<16x16xf32>
    %505 = vector.extract_strided_slice %288 {offsets = [0, 6], sizes = [22, 16], strides = [1, 1]} : vector<22x128xf32> to vector<22x16xf32>
    %c55 = arith.constant 55 : index
    %506 = memref.load %arg3[%c55] : memref<98xf32, #tpu.memory_space<smem>>
    %507 = vector.extract_strided_slice %505 {offsets = [0, 0], sizes = [16, 16], strides = [1, 1]} : vector<22x16xf32> to vector<16x16xf32>
    %508 = vector.broadcast %506 : f32 to vector<16x16xf32>
    %509 = arith.mulf %508, %507 : vector<16x16xf32>
    %510 = arith.addf %504, %509 : vector<16x16xf32>
    %c62 = arith.constant 62 : index
    %511 = memref.load %arg3[%c62] : memref<98xf32, #tpu.memory_space<smem>>
    %512 = vector.extract_strided_slice %505 {offsets = [1, 0], sizes = [16, 16], strides = [1, 1]} : vector<22x16xf32> to vector<16x16xf32>
    %513 = vector.broadcast %511 : f32 to vector<16x16xf32>
    %514 = arith.mulf %513, %512 : vector<16x16xf32>
    %515 = arith.addf %510, %514 : vector<16x16xf32>
    %c69 = arith.constant 69 : index
    %516 = memref.load %arg3[%c69] : memref<98xf32, #tpu.memory_space<smem>>
    %517 = vector.extract_strided_slice %505 {offsets = [2, 0], sizes = [16, 16], strides = [1, 1]} : vector<22x16xf32> to vector<16x16xf32>
    %518 = vector.broadcast %516 : f32 to vector<16x16xf32>
    %519 = arith.mulf %518, %517 : vector<16x16xf32>
    %520 = arith.addf %515, %519 : vector<16x16xf32>
    %c76 = arith.constant 76 : index
    %521 = memref.load %arg3[%c76] : memref<98xf32, #tpu.memory_space<smem>>
    %522 = vector.extract_strided_slice %505 {offsets = [3, 0], sizes = [16, 16], strides = [1, 1]} : vector<22x16xf32> to vector<16x16xf32>
    %523 = vector.broadcast %521 : f32 to vector<16x16xf32>
    %524 = arith.mulf %523, %522 : vector<16x16xf32>
    %525 = arith.addf %520, %524 : vector<16x16xf32>
    %c83 = arith.constant 83 : index
    %526 = memref.load %arg3[%c83] : memref<98xf32, #tpu.memory_space<smem>>
    %527 = vector.extract_strided_slice %505 {offsets = [4, 0], sizes = [16, 16], strides = [1, 1]} : vector<22x16xf32> to vector<16x16xf32>
    %528 = vector.broadcast %526 : f32 to vector<16x16xf32>
    %529 = arith.mulf %528, %527 : vector<16x16xf32>
    %530 = arith.addf %525, %529 : vector<16x16xf32>
    %c90 = arith.constant 90 : index
    %531 = memref.load %arg3[%c90] : memref<98xf32, #tpu.memory_space<smem>>
    %532 = vector.extract_strided_slice %505 {offsets = [5, 0], sizes = [16, 16], strides = [1, 1]} : vector<22x16xf32> to vector<16x16xf32>
    %533 = vector.broadcast %531 : f32 to vector<16x16xf32>
    %534 = arith.mulf %533, %532 : vector<16x16xf32>
    %535 = arith.addf %530, %534 : vector<16x16xf32>
    %c97 = arith.constant 97 : index
    %536 = memref.load %arg3[%c97] : memref<98xf32, #tpu.memory_space<smem>>
    %537 = vector.extract_strided_slice %505 {offsets = [6, 0], sizes = [16, 16], strides = [1, 1]} : vector<22x16xf32> to vector<16x16xf32>
    %538 = vector.broadcast %536 : f32 to vector<16x16xf32>
    %539 = arith.mulf %538, %537 : vector<16x16xf32>
    %540 = arith.addf %535, %539 : vector<16x16xf32>
    %541 = arith.negf %540 : vector<16x16xf32>
    %542 = math.exp %541 : vector<16x16xf32>
    %cst_31 = arith.constant 1.000000e+00 : f32
    %543 = vector.broadcast %cst_31 : f32 to vector<16x16xf32>
    %544 = arith.addf %543, %542 : vector<16x16xf32>
    %545 = arith.divf %543, %544 : vector<16x16xf32>
    %546 = vector.shape_cast %545 : vector<16x16xf32> to vector<1x16x16xf32>
    %c0_32 = arith.constant 0 : index
    %c0_33 = arith.constant 0 : index
    %c0_34 = arith.constant 0 : index
    %c0_35 = arith.constant 0 : index
    %547 = vector.load %arg4[%c0_32, %c0_33, %c0_34, %c0_35] : memref<1x1x16x16xf32, #tpu.memory_space<vmem>>, vector<1x1x16x16xf32>
    %548 = vector.shape_cast %547 : vector<1x1x16x16xf32> to vector<1x16x16xf32>
    %549 = vector.shape_cast %546 : vector<1x16x16xf32> to vector<1x1x16x16xf32>
    tpu.vector_store %arg4[%c0_32, %c0_33, %c0_34, %c0_35], %549 {strides = array<i32>} : memref<1x1x16x16xf32, #tpu.memory_space<vmem>>, vector<1x1x16x16xf32>,
    return
  }
  func.func @transform_0(%arg0: i32, %arg1: i32) -> (i32, i32, i32, i32) {
    %c0_i32 = arith.constant 0 : i32
    %c0_i32_0 = arith.constant 0 : i32
    %c0_i32_1 = arith.constant 0 : i32
    return %arg0, %arg1, %c0_i32, %c0_i32_0 : i32, i32, i32, i32
  }
  func.func @transform_1(%arg0: i32, %arg1: i32) -> i32 {
    %c0_i32 = arith.constant 0 : i32
    %c0_i32_0 = arith.constant 0 : i32
    return %c0_i32 : i32
  }
  func.func @transform_2(%arg0: i32, %arg1: i32) -> (i32, i32, i32, i32) {
    %c0_i32 = arith.constant 0 : i32
    %c0_i32_0 = arith.constant 0 : i32
    %c0_i32_1 = arith.constant 0 : i32
    %c0_i32_2 = arith.constant 0 : i32
    return %arg0, %c0_i32, %c0_i32_0, %c0_i32_1 : i32, i32, i32, i32
  }
}

</mosaic_0001>

<bundles_post_ra>
// kernel: tpu_custom_call.1
= control target key start
LH: loop header
LB: loop body
LE: loop exit
PB: predicated region body
PF: predicated region fallthrough
CT: control target
= control target key end

     0   :  { %7 = vsyncpa [#allocation4], 0  ;;  %s4067_s0 = inlined_call_operand.hbm [shape: f32[2,4,16,16], index: 0, kind: input, shape index: {}]   ;;  %s4068_s1 = inlined_call_operand.vmem [shape: f32[98], index: 1, kind: input, shape index: {}]   ;;  %s4069_s2 = inlined_call_operand.hbm [shape: f32[2,1,16,16], index: 2, kind: output, shape index: {}]  }
   0x1   :  { %9 = vsyncpa [#allocation4 + $0x1], 0 }
   0x2   :  { %10 = vsyncpa [#allocation6], 0 }
   0x3   :  { %11 = vsyncpa [#allocation5], 0 }
   0x4   :  { %13 = vsyncpa [#allocation5 + $0x1], 0  ;;  %s2665_s9 = smov 0   ;;  %s2667_s10 = smov 0  }
   0x5   :  { %s2669_s11 = smov 0   ;;  %s2671_s12 = smov 0  }
   0x6   :  { %s2673_s13 = smov 0   ;;  %s2675_s14 = smov 0  }
   0x7 LB: > { %s2279_s15 = sadd.s32 4294967295, %s2633_s14   ;;  %s2280_s16 = sadd.s32 4294967294, %s2633_s14   ;;  %s2633_s14 = sphi %s2675_s14, %s19_s14   ;;  %s2629_s13 = sphi %s2673_s13, %s4098_s13   ;;  %s2625_s12 = sphi %s2671_s12, %s4097_s12   ;;  %s2621_s11 = sphi %s2669_s11, %s4096_s11   ;;  %s2617_s10 = sphi %s2667_s10, %s4095_s10   ;;  %s2613_s9 = sphi %s2665_s9, %s4094_s9  }
   0x8   : > { %s40_s17 = sadd.s32 1, %s2621_s11  ;;  %p47_p0 = scmp.ne.s32.totalorder %s2621_s11, %s2617_s10 }
   0x9   : > { %p48_p1 = scmp.eq.s32.totalorder %s2633_s14, 0  ;;  %p53_p2 = scmp.ne.s32.totalorder %s2617_s10, %s2613_s9 }
   0xa   : > { %p2703_p3 = scmp.eq.s32.totalorder %s2279_s15, 0  ;;  %p98_p4 = scmp.eq.s32.totalorder %s2279_s15, 1 }
   0xb   : > { %p2707_p5 = por %p48_p1, %p47_p0  ;;  %p104_p6 = scmp.eq.s32.totalorder %s2280_s16, 1 }
   0xc   : > { %s4078_s18 = scalar_select %p2703_p3, 1, 0 }
   0xd   : > { %p2713_p7 = por %p2703_p3, %p53_p2  ;;  %p2717_p8 = por %p98_p4, %p47_p0 }
   0xe   : > { %p2721_p9 = por %p104_p6, %p53_p2  ;;  %p2281_p10 = scmp.ge.s32.totalorder %s2633_s14, 1 }
   0xf   : > { %s4080_s20 = scalar_select %p2713_p7, 1, 0 }
  0x10   : > { %s4081_s21 = scalar_select %p2717_p8, 1, 0 }
  0x11   : > { %s4082_s22 = scalar_select %p2721_p9, 1, 0 }
  0x12   : > { %p111_p11 = scmp.lt.s32.totalorder %s2633_s14, 3  ;;  %s124_s25 = sshll.u32 %s4068_s1, 4  ;;  %s125_s25 = int_to_ptr.vmem [resolvable:$true] %s124_s25 }
  0x13   : > { %p2424_p0 = scmp.lt.s32.totalorder %s2633_s14, 2  ;;  %s31_s29 = sadd.s32 1, %s2629_s13 }
  0x14   : > { %p2730_p12 = pnand %p2281_p10, %p111_p11  ;;  %p2751_p6 = scmp.ge.s32.totalorder %s31_s29, 2 }
  0x15   : > { %p2740_p2 = pnand %p2424_p0, %p2707_p5  ;;  %s135_s3 = sand.u32 1, %s2621_s11  }
  0x16   : > { %p2411_p1 = pneg %p2730_p12  ;;  %s2502_s4 = scalar_lea.vmem %s125_s25, 16 }
  0x17   : > { %p2503_p10 = scmp.ne.s32.totalorder %s125_s25, %s2502_s4  ;;  %p2510_p13 = scmp.lt.s32.totalorder %s125_s25, %s125_s25 }
  0x18   : > { %p2746_p4 = pnand %p2411_p1, %p2703_p3  ;;  %p2511_p9 = scmp.lt.s32.totalorder %s2502_s4, %s2502_s4 }
  0x1a   : > { %p2504_p11 = pneg %p2746_p4  ;;  %p2512_p8 = por %p2511_p9, %p2510_p13 }
  0x1c   : > { %p2505_p5 = pnand %p2504_p11, %p2503_p10 }
  0x1e   : > { %p2506_p0 = pneg %p2505_p5 }
  0x20   : > { %p2513_p1 = pnand %p2512_p8, %p2506_p0 }
  0x22   : > { %2516 = shalt.err (!%p2513_p1)
}
  0x23   : > { %s2635_s5 = smov [#allocation7]   ;;  %s4100_s29 = smov (%p2751_p6, %s31_s29), 0 }
  0x24   : > { %2414 = dma.vmem_to_smem (!%p2746_p4), %s125_s25, 16, %s2635_s5, [#allocation6]  }
  0x25   : > { %s2284_s6 = sshll.u32 %s135_s3, 6  ;;  %s35_s7 = ssub.s32 %s2629_s13, %s4100_s29 }
  0x26   : > { %p38_p9 = scmp.eq.s32.totalorder %s35_s7, 0  ;;  %s2401_s8 = sshll.u32 %s2629_s13, 10 }
  0x27   : > { %s2770_s19 = scalar_lea.hbm %s4067_s0, %s2401_s8  ;;  %s139_s23 = scalar_lea.vmem [#allocation3], %s2284_s6 }
  0x28   : > { %s149_s24 = sshll.u32 %s139_s23, 4  ;;  %s2779_s28 = scalar_lea.sflag [#allocation4], %s135_s3  ;;  %s2777_s24 = int_to_ptr.vmem [resolvable:$true] %s149_s24 }
  0x29   : > { %s2775_s25 = scalar_select %p38_p9, %s2621_s11, %s40_s17  }
  0x2a   : > { %s2517_s30 = scalar_lea.hbm %s2770_s19, 1024  ;;  %p2519_p13 = pneg %p2740_p2 }
  0x2b   : > { %p2518_p8 = scmp.ne.s32.totalorder %s2770_s19, %s2517_s30  ;;  %s2522_s6 = scalar_lea.hbm %s4067_s0, 2048 }
  0x2c   : > { %p2523_p10 = scmp.lt.u32.totalorder %s2770_s19, %s4067_s0  ;;  %p2524_p11 = scmp.lt.u32.totalorder %s2522_s6, %s2517_s30 }
  0x2d   : > { %p2520_p4 = pnand %p2519_p13, %p2518_p8  ;;  %p2526_p0 = scmp.lt.u32.totalorder %s2517_s30, %s2770_s19 }
  0x2e   : > { %p2525_p5 = por %p2524_p11, %p2523_p10 }
  0x2f   : > { %p2521_p6 = pneg %p2520_p4 }
  0x30   : > { %p2527_p1 = por %p2526_p0, %p2525_p5 }
  0x32   : > { %p2528_p9 = pnand %p2527_p1, %p2521_p6 }
  0x34   : > { %2531 = shalt.err (!%p2528_p9)
}
  0x35   : > { %s2532_s17 = scalar_lea.vmem %s2777_s24, 1024  ;;  %s2636_s3 = smov [#allocation3]  }
  0x36   : > { %p2533_p8 = scmp.ne.s32.totalorder %s2777_s24, %s2532_s17  ;;  %s2537_s15 = sshll.u32 %s2636_s3, 4  ;;  %s2538_s15 = int_to_ptr.vmem [resolvable:$false] %s2537_s15 }
  0x37   : > { %s2539_s16 = scalar_lea.vmem %s2538_s15, 2048  ;;  %p2540_p7 = scmp.lt.s32.totalorder %s2777_s24, %s2538_s15 }
  0x38   : > { %p2535_p4 = pnand %p2533_p8, %p2519_p13  ;;  %p2541_p10 = scmp.lt.s32.totalorder %s2539_s16, %s2532_s17 }
  0x3a   : > { %p2536_p3 = pneg %p2535_p4  ;;  %p2542_p11 = por %p2541_p10, %p2540_p7 }
  0x3c   : > { %p2543_p5 = pnand %p2542_p11, %p2536_p3 }
  0x3e   : > { %2546 = shalt.err (!%p2543_p5)
}
  0x3f   : > { %s2637_s23 = smov 128   ;;  %s2638_s30 = smov 8  }
  0x40   : > { %2418 = dma.hbm_to_vmem [thread:$0]  (!%p2740_p2), %s2770_s19, 1024, %s2777_s24, %s2779_s28, %s2637_s23, %s2637_s23, %s2638_s30  }
  0x41   : > { %161 = sbr.rel (%p2730_p12) target bundleno = 706 (0x2c2), region = 28  ;;  %s2810_s4 = sand.u32 (!%p2730_p12), 1, %s2617_s10  }
  0x42   : > { %s2288_s5 = sshll.u32 (!%p2730_p12), %s2810_s4, 6  ;;  %s164_s6 = scalar_lea.sflag (!%p2730_p12), [#allocation4], %s2810_s4 }
  0x43   : > { %s167_s7 = scalar_lea.vmem (!%p2730_p12), [#allocation3], %s2288_s5  ;;  %p4087_p3 = scmp.ne.s32.totalorder (!%p2730_p12), %s4080_s20, 0 }
  0x48   : > { %2600 = dma.done.wait (%p4087_p3), %s164_s6, 1024  }
  0x49   : > { %2602 = vsyncadd (%p4087_p3), %s164_s6, 4294966272  ;;  %p4088_p7 = scmp.ne.s32.totalorder %s4078_s18, 0 }
  0x4b   : > { %2604 = dma.done.wait (%p4088_p7), [#allocation6], 16  }
  0x4c   : > { %2606 = vsyncadd (%p4088_p7), [#allocation6], 4294967280 }
  0x4d   : > { %176 = sfence }
  0x4e   : > { %v194_v0 = vld [vmem:[%s167_s7] sm:$0xff]  ;;  %v2291_v1 = vld [vmem:[%s167_s7 + $0x10] sm:$0xff]  ;;  %v195_v4 = vld [vmem:[%s167_s7 + $0x8] sm:$0xff]  ;;  %v2639_v6 = vmov 0.0   ;;  %s2640_s18 = smov 3   ;;  %vm235_vm0 = vcmask 154648  }
  0x4f   : > { %v2293_v2 = vld [vmem:[%s167_s7 + $0x20] sm:$0xff]  ;;  %v201_v3 = vadd.f32 %v2291_v1, %v194_v0  ;;  %v2292_v5 = vld [vmem:[%s167_s7 + $0x18] sm:$0xff]  ;;  %221 = vst [vmem:[#allocation2] sm:$0xff] %v2639_v6  ;;  %222 = vst [vmem:[#allocation2 + $0x8] sm:$0xff] %v2639_v6  ;;  %v203_v7 = vmax.f32 %v194_v0, %v2291_v1  ;;  %s2303_s20 = sld [smem:[#allocation7 + $0x1]]  ;;  %s2310_s26 = sld [smem:[#allocation7 + $0x2]] }
  0x50   : > { %223 = vst [vmem:[#allocation2 + $0x10] sm:$0x3f] %v2639_v6  ;;  %224 = vst [vmem:[#allocation2 + $0x18] sm:$0xff] %v2639_v6  ;;  %v2295_v8 = vld [vmem:[%s167_s7 + $0x30] sm:$0xff]  ;;  %v202_v9 = vadd.f32 %v2292_v5, %v195_v4  ;;  %v2294_v10 = vld [vmem:[%s167_s7 + $0x28] sm:$0xff]  ;;  %v204_v11 = vmax.f32 %v195_v4, %v2292_v5  ;;  %s2317_s27 = sld [smem:[#allocation7 + $0x3]] }
  0x51   : > { %225 = vst [vmem:[#allocation2 + $0x20] sm:$0xff] %v2639_v6  ;;  %226 = vst [vmem:[#allocation2 + $0x28] sm:$0x3f] %v2639_v6  ;;  %v208_v12 = vadd.f32 %v2293_v2, %v201_v3  ;;  %v2296_v13 = vld [vmem:[%s167_s7 + $0x38] sm:$0xff]  ;;  %v210_v14 = vmax.f32 %v203_v7, %v2293_v2  ;;  %s2825_s19 = sld [smem:[#allocation7 + $0x4]]  ;;  %s2641_s24 = smov 127  }
  0x52   : > { %v209_v15 = vadd.f32 %v2294_v10, %v202_v9  ;;  %v211_v16 = vmax.f32 %v204_v11, %v2294_v10  ;;  %s2304_s28 = sld [smem:[#allocation7 + $0x8]]  ;;  %s2832_s8 = sld [smem:[#allocation7 + $0x5]]  ;;  %vm266_vm1 = vcmask 1046528   ;;  %vm284_vm2 = vcmask 1045504  }
  0x53   : > { %v215_v17 = vadd.f32 %v2295_v8, %v208_v12  ;;  %v217_v18 = vmax.f32 %v210_v14, %v2295_v8  ;;  %s2642_s17 = smov 126   ;;  %s2305_s3 = sld [smem:[#allocation7 + $0xf]]  ;;  %vm302_vm3 = vcmask 1044480   ;;  %vm320_vm4 = vcmask 1043456  }
  0x54   : > { %v216_v19 = vadd.f32 %v2296_v13, %v209_v15  ;;  %v218_v21 = vmax.f32 %v211_v16, %v2296_v13  ;;  %s4076_s15 = smov 125   ;;  %s2306_s16 = sld [smem:[#allocation7 + $0x16]]  ;;  %vm338_vm5 = vcmask 1042432   ;;  %vm356_vm6 = vcmask 1041408  }
  0x55   : > { %v219_v20 = vmul.f32 0.25, %v215_v17  ;;  %240 = vrot.lane.b32.xlu1 %v217_v18, %s2640_s18  ;;  %v367_v27 = vstv %s2303_s20  ;;  %v507_v30 = vstv %s2310_s26  ;;  %s4074_s23 = smov 124   ;;  %s2307_s30 = sld [smem:[#allocation7 + $0x1d]]  ;;  %vm2169_vm7 = vcmask 130048  }
  0x56   : > { %v220_v22 = vmul.f32 0.25, %v216_v19  ;;  %v647_v34 = vstv %s2317_s27  ;;  %s2645_s5 = smov 123   ;;  %s2308_s6 = sld [smem:[#allocation7 + $0x24]] }
  0x57   : > { %229 = vrot.lane.b32.xlu0 %v219_v20, %s2640_s18  ;;  %v787_v37 = vstv %s2825_s19  ;;  %s2309_s7 = sld [smem:[#allocation7 + $0x2b]]  ;;  %s2312_s20 = sld [smem:[#allocation7 + $0x10]] }
  0x58   : > { %v381_v40 = vstv %s2304_s28  ;;  %v927_v41 = vstv %s2832_s8  ;;  %s2313_s26 = sld [smem:[#allocation7 + $0x17]]  ;;  %s2314_s27 = sld [smem:[#allocation7 + $0x1e]] }
  0x59   : > { %242 = vrot.lane.b32.xlu1 %v218_v21, %s2640_s18  ;;  %v402_v47 = vstv %s2305_s3  ;;  %s2315_s19 = sld [smem:[#allocation7 + $0x25]]  ;;  %s2316_s28 = sld [smem:[#allocation7 + $0x2c]] }
  0x5a   : > { %v423_v53 = vstv %s2306_s16  ;;  %s2318_s8 = sld [smem:[#allocation7 + $0xa]]  ;;  %s2319_s3 = sld [smem:[#allocation7 + $0x11]] }
  0x5b   : > { %231 = vrot.lane.b32.xlu0 %v220_v22, %s2640_s18  ;;  %v444_v62 = vstv %s2307_s30  ;;  %s2311_s18 = sld [smem:[#allocation7 + $0x9]]  ;;  %s2320_s16 = sld [smem:[#allocation7 + $0x18]] }
  0x5c   : > { %v465_v7 = vstv %s2308_s6  ;;  %s2321_s30 = sld [smem:[#allocation7 + $0x1f]]  ;;  %s2322_s6 = sld [smem:[#allocation7 + $0x26]] }
  0x5d   : > { %v486_v18 = vstv %s2309_s7  ;;  %s2323_s7 = sld [smem:[#allocation7 + $0x2d]]  ;;  %p4091_p2 = scmp.ne.s32.totalorder %s4081_s21, 0 }
  0xc7   : > { %v241_v23 = vpop.permute.xlu1 %240 }
  0xc8   : > { %247 = vst.msk [vmem:[#allocation2 + $0x1b] sm:$0xff] %vm235_vm0, %v241_v23 }
  0xc9   : > { %v230_v24 = vpop.permute.xlu0 %229 }
  0xca   : > { %236 = vst.msk [vmem:[#allocation2 + $0x3] sm:$0xff] %vm235_vm0, %v230_v24 }
  0xcb   : > { %v243_v25 = vpop.permute.xlu1 %242 }
  0xcc   : > { %248 = vst.msk [vmem:[#allocation2 + $0x23] sm:$0xff] %vm235_vm0, %v243_v25  ;;  %v521_v25 = vstv %s2311_s18  ;;  %s2325_s18 = sld [smem:[#allocation7 + $0xb]] }
  0xcd   : > { %v232_v26 = vpop.permute.xlu0 %231 }
  0xce   : > { %237 = vst.msk [vmem:[#allocation2 + $0xb] sm:$0xff] %vm235_vm0, %v232_v26 }
  0xd1   : > { %v2822_v28 = vld [vmem:[#allocation2] sm:$0xff] }
  0xd2   : > { %v368_v29 = vmul.f32 %v367_v27, %v2822_v28  ;;  %v508_v32 = vmul.f32 %v507_v30, %v2822_v28  ;;  %v648_v35 = vmul.f32 %v647_v34, %v2822_v28  ;;  %v788_v38 = vmul.f32 %v787_v37, %v2822_v28 }
  0xd3   : > { %v382_v44 = vmul.f32 %v381_v40, %v2822_v28  ;;  %v928_v45 = vmul.f32 %v927_v41, %v2822_v28  ;;  %v403_v52 = vmul.f32 %v402_v47, %v2822_v28  ;;  %v424_v61 = vmul.f32 %v423_v53, %v2822_v28 }
  0xd4   : > { %372 = vrot.lane.b32.xlu0 %v368_v29, %s2641_s24  ;;  %v445_v5 = vmul.f32 %v444_v62, %v2822_v28  ;;  %v466_v15 = vmul.f32 %v465_v7, %v2822_v28  ;;  %v487_v24 = vmul.f32 %v486_v18, %v2822_v28 }
  0xd5   : > { %v2828_v31 = vld [vmem:[#allocation2 + $0x8] sm:$0xff]  ;;  %v2845_v43 = vld [vmem:[#allocation2 + $0x10] sm:$0x3f]  ;;  %v388_v51 = vrot.slane %v382_v44, 1  ;;  %v409_v60 = vrot.slane %v403_v52, 2  ;;  %v430_v6 = vrot.slane %v424_v61, 3 }
  0xd6   : > { %v369_v33 = vmul.f32 %v367_v27, %v2828_v31  ;;  %v509_v36 = vmul.f32 %v507_v30, %v2828_v31  ;;  %v649_v39 = vmul.f32 %v647_v34, %v2828_v31  ;;  %v383_v42 = vmul.f32 %v381_v40, %v2828_v31 }
  0xd7   : > { %v789_v46 = vmul.f32 %v787_v37, %v2828_v31  ;;  %v404_v49 = vmul.f32 %v402_v47, %v2828_v31  ;;  %v384_v50 = vmul.f32 %v381_v40, %v2845_v43  ;;  %v929_v54 = vmul.f32 %v927_v41, %v2828_v31 }
  0xd8   : > { %512 = vrot.lane.b32.xlu0 %v508_v32, %s2642_s17  ;;  %374 = vrot.lane.b32.xlu1 %v369_v33, %s2641_s24  ;;  %v389_v48 = vrot.slane %v383_v42, 1  ;;  %v425_v55 = vmul.f32 %v423_v53, %v2828_v31  ;;  %v405_v59 = vmul.f32 %v402_v47, %v2845_v43  ;;  %v446_v63 = vmul.f32 %v444_v62, %v2828_v31 }
  0xd9   : > { %v410_v57 = vrot.slane %v404_v49, 2  ;;  %v391_v58 = vrot.slane %v384_v50, 1  ;;  %v426_v0 = vmul.f32 %v423_v53, %v2845_v43  ;;  %v467_v9 = vmul.f32 %v465_v7, %v2828_v31 }
  0xda   : > { %v390_v56 = vsel %vm266_vm1, %v388_v51, %v389_v48  ;;  %v431_v3 = vrot.slane %v425_v55, 3  ;;  %v412_v4 = vrot.slane %v405_v59, 2  ;;  %v452_v8 = vrot.slane %v446_v63, 4 }
  0xdb   : > { %v411_v1 = vsel %vm284_vm2, %v409_v60, %v410_v57  ;;  %v392_v2 = vsel %vm266_vm1, %v389_v48, %v391_v58  ;;  %v433_v12 = vrot.slane %v426_v0, 3  ;;  %v447_v13 = vmul.f32 %v444_v62, %v2845_v43 }
  0xdc   : > { %652 = vrot.lane.b32.xlu0 %v648_v35, %s4076_s15  ;;  %514 = vrot.lane.b32.xlu1 %v509_v36, %s2642_s17  ;;  %v432_v10 = vsel %vm302_vm3, %v430_v6, %v431_v3  ;;  %v413_v11 = vsel %vm284_vm2, %v410_v57, %v412_v4  ;;  %v451_v14 = vrot.slane %v445_v5, 4  ;;  %v473_v17 = vrot.slane %v467_v9, 5 }
  0xdd   : > { %v434_v19 = vsel %vm302_vm3, %v431_v3, %v433_v12  ;;  %v454_v20 = vrot.slane %v447_v13, 4  ;;  %v488_v21 = vmul.f32 %v486_v18, %v2828_v31  ;;  %v468_v22 = vmul.f32 %v465_v7, %v2845_v43 }
  0xde   : > { %v453_v16 = vsel %vm320_vm4, %v451_v14, %v452_v8  ;;  %v472_v23 = vrot.slane %v466_v15, 5  ;;  %v523_v27 = vmul.f32 %v521_v25, %v2828_v31  ;;  %v489_v33 = vmul.f32 %v486_v18, %v2845_v43 }
  0xdf   : > { %v455_v29 = vsel %vm320_vm4, %v452_v8, %v454_v20  ;;  %v494_v30 = vrot.slane %v488_v21, 6  ;;  %v475_v32 = vrot.slane %v468_v22, 5  ;;  %v522_v34 = vmul.f32 %v521_v25, %v2822_v28 }
  0xe0   : > { %792 = vrot.lane.b32.xlu0 %v788_v38, %s4074_s23  ;;  %654 = vrot.lane.b32.xlu1 %v649_v39, %s4076_s15  ;;  %v474_v26 = vsel %vm338_vm5, %v472_v23, %v473_v17  ;;  %v493_v35 = vrot.slane %v487_v24, 6  ;;  %v542_v36 = vstv %s2312_s20  ;;  %v529_v37 = vrot.slane %v523_v27, 1  ;;  %s2326_s20 = sld [smem:[#allocation7 + $0x12]] }
  0xe1   : > { %v544_v38 = vmul.f32 %v542_v36, %v2828_v31  ;;  %v476_v40 = vsel %vm338_vm5, %v473_v17, %v475_v32  ;;  %v496_v41 = vrot.slane %v489_v33, 6  ;;  %v524_v42 = vmul.f32 %v521_v25, %v2845_v43 }
  0xe2   : > { %v495_v39 = vsel %vm356_vm6, %v493_v35, %v494_v30  ;;  %v528_v44 = vrot.slane %v522_v34, 1  ;;  %v563_v48 = vstv %s2313_s26  ;;  %v545_v52 = vmul.f32 %v542_v36, %v2845_v43  ;;  %s2327_s26 = sld [smem:[#allocation7 + $0x19]] }
  0xe3   : > { %v550_v47 = vrot.slane %v544_v38, 2  ;;  %v497_v49 = vsel %vm356_vm6, %v494_v30, %v496_v41  ;;  %v531_v50 = vrot.slane %v524_v42, 1  ;;  %v565_v51 = vmul.f32 %v563_v48, %v2828_v31 }
  0xe4   : > { %932 = vrot.lane.b32.xlu0 %v928_v45, %s2645_s5  ;;  %794 = vrot.lane.b32.xlu1 %v789_v46, %s4074_s23  ;;  %v543_v45 = vmul.f32 %v542_v36, %v2822_v28  ;;  %v530_v46 = vsel %vm266_vm1, %v528_v44, %v529_v37  ;;  %v584_v55 = vstv %s2314_s27  ;;  %v552_v60 = vrot.slane %v545_v52, 2  ;;  %s2328_s27 = sld [smem:[#allocation7 + $0x20]] }
  0xe5   : > { %v586_v57 = vmul.f32 %v584_v55, %v2828_v31  ;;  %v532_v58 = vsel %vm266_vm1, %v529_v37, %v531_v50  ;;  %v571_v59 = vrot.slane %v565_v51, 3  ;;  %v566_v61 = vmul.f32 %v563_v48, %v2845_v43 }
  0xe6   : > { %v549_v53 = vrot.slane %v543_v45, 2  ;;  %v585_v62 = vmul.f32 %v584_v55, %v2822_v28  ;;  %v605_v0 = vstv %s2315_s19  ;;  %v553_v4 = vsel %vm284_vm2, %v550_v47, %v552_v60  ;;  %s2329_s19 = sld [smem:[#allocation7 + $0x27]] }
  0xe7   : > { %v573_v5 = vrot.slane %v566_v61, 3  ;;  %v587_v6 = vmul.f32 %v584_v55, %v2845_v43  ;;  %v606_v8 = vmul.f32 %v605_v0, %v2822_v28  ;;  %v608_v15 = vmul.f32 %v605_v0, %v2845_v43 }
  0xe8   : > { %393 = vrot.lane.b32.xlu0 %v390_v56, %s2641_s24  ;;  %934 = vrot.lane.b32.xlu1 %v929_v54, %s2645_s5  ;;  %v564_v54 = vmul.f32 %v563_v48, %v2822_v28  ;;  %v551_v56 = vsel %vm284_vm2, %v549_v53, %v550_v47  ;;  %v591_v7 = vrot.slane %v585_v62, 4  ;;  %v661_v18 = vstv %s2318_s8  ;;  %s2332_s8 = sld [smem:[#allocation7 + $0xc]] }
  0xe9   : > { %v574_v12 = vsel %vm302_vm3, %v571_v59, %v573_v5  ;;  %v594_v13 = vrot.slane %v587_v6, 4  ;;  %v663_v20 = vmul.f32 %v661_v18, %v2828_v31  ;;  %v615_v23 = vrot.slane %v608_v15, 5 }
  0xea   : > { %v570_v63 = vrot.slane %v564_v54, 3  ;;  %v662_v25 = vmul.f32 %v661_v18, %v2822_v28  ;;  %v682_v27 = vstv %s2319_s3  ;;  %v664_v35 = vmul.f32 %v661_v18, %v2845_v43  ;;  %s2333_s3 = sld [smem:[#allocation7 + $0x13]] }
  0xeb   : > { %v684_v30 = vmul.f32 %v682_v27, %v2828_v31  ;;  %v683_v37 = vmul.f32 %v682_v27, %v2822_v28  ;;  %v685_v45 = vmul.f32 %v682_v27, %v2845_v43  ;;  %v724_v48 = vstv %s2321_s30  ;;  %s2335_s30 = sld [smem:[#allocation7 + $0x21]] }
  0xec   : > { %414 = vrot.lane.b32.xlu0 %v411_v1, %s2641_s24  ;;  %395 = vrot.lane.b32.xlu1 %v392_v2, %s2641_s24  ;;  %v592_v1 = vrot.slane %v586_v57, 4  ;;  %v607_v2 = vmul.f32 %v605_v0, %v2828_v31  ;;  %v572_v3 = vsel %vm302_vm3, %v570_v63, %v571_v59  ;;  %v668_v36 = vrot.slane %v662_v25, 1 }
  0xed   : > { %v671_v42 = vrot.slane %v664_v35, 1  ;;  %v726_v50 = vmul.f32 %v724_v48, %v2828_v31  ;;  %v692_v53 = vrot.slane %v685_v45, 2  ;;  %v725_v55 = vmul.f32 %v724_v48, %v2822_v28 }
  0xee   : > { %v593_v9 = vsel %vm320_vm4, %v591_v7, %v592_v1  ;;  %v595_v21 = vsel %vm320_vm4, %v592_v1, %v594_v13  ;;  %v745_v57 = vstv %s2322_s6  ;;  %v727_v63 = vmul.f32 %v724_v48, %v2845_v43  ;;  %s2336_s6 = sld [smem:[#allocation7 + $0x28]] }
  0xef   : > { %v747_v59 = vmul.f32 %v745_v57, %v2828_v31  ;;  %v731_v0 = vrot.slane %v725_v55, 4  ;;  %v746_v1 = vmul.f32 %v745_v57, %v2822_v28 }
  0xf0   : > { %435 = vrot.lane.b32.xlu0 %v432_v10, %s2641_s24  ;;  %416 = vrot.lane.b32.xlu1 %v413_v11, %s2641_s24  ;;  %v613_v10 = vrot.slane %v607_v2, 5  ;;  %v626_v11 = vstv %s2316_s28  ;;  %v734_v6 = vrot.slane %v727_v63, 4  ;;  %s2330_s28 = sld [smem:[#allocation7 + $0x2e]] }
  0xf1   : > { %v628_v14 = vmul.f32 %v626_v11, %v2828_v31  ;;  %v627_v17 = vmul.f32 %v626_v11, %v2822_v28  ;;  %v629_v24 = vmul.f32 %v626_v11, %v2845_v43  ;;  %v801_v11 = vstv %s2325_s18  ;;  %s3055_s18 = sld [smem:[#allocation7]] }
  0xf2   : > { %v616_v33 = vsel %vm338_vm5, %v613_v10, %v615_v23  ;;  %v803_v13 = vmul.f32 %v801_v11, %v2828_v31  ;;  %v802_v18 = vmul.f32 %v801_v11, %v2822_v28 }
  0xf3   : > { %v634_v22 = vrot.slane %v628_v14, 6  ;;  %v636_v34 = vrot.slane %v629_v24, 6 }
  0xf4   : > { %456 = vrot.lane.b32.xlu0 %v453_v16, %s2641_s24  ;;  %437 = vrot.lane.b32.xlu1 %v434_v19, %s2641_s24  ;;  %v612_v16 = vrot.slane %v606_v8, 5  ;;  %v748_v8 = vmul.f32 %v745_v57, %v2845_v43  ;;  %v808_v27 = vrot.slane %v802_v18, 1 }
  0xf5   : > { %v637_v41 = vsel %vm356_vm6, %v634_v22, %v636_v34 }
  0xf6   : > { %v614_v19 = vsel %vm338_vm5, %v612_v16, %v613_v10  ;;  %v755_v16 = vrot.slane %v748_v8, 5 }
  0xf8   : > { %477 = vrot.lane.b32.xlu0 %v474_v26, %s2641_s24  ;;  %458 = vrot.lane.b32.xlu1 %v455_v29, %s2641_s24  ;;  %v633_v26 = vrot.slane %v627_v17, 6  ;;  %v669_v29 = vrot.slane %v663_v20, 1  ;;  %v822_v20 = vstv %s2326_s20  ;;  %s3060_s20 = sld [smem:[#allocation7 + $0x7]] }
  0xfa   : > { %v635_v32 = vsel %vm356_vm6, %v633_v26, %v634_v22  ;;  %v670_v38 = vsel %vm266_vm1, %v668_v36, %v669_v29  ;;  %v672_v51 = vsel %vm266_vm1, %v669_v29, %v671_v42  ;;  %v824_v22 = vmul.f32 %v822_v20, %v2828_v31 }
  0xfb   : > { %v804_v26 = vmul.f32 %v801_v11, %v2845_v43  ;;  %v823_v29 = vmul.f32 %v822_v20, %v2822_v28 }
  0xfc   : > { %498 = vrot.lane.b32.xlu0 %v495_v39, %s2641_s24  ;;  %479 = vrot.lane.b32.xlu1 %v476_v40, %s2641_s24  ;;  %v690_v39 = vrot.slane %v684_v30, 2  ;;  %v703_v40 = vstv %s2320_s16  ;;  %s2334_s16 = sld [smem:[#allocation7 + $0x1a]] }
  0xfd   : > { %v705_v44 = vmul.f32 %v703_v40, %v2828_v31  ;;  %v704_v47 = vmul.f32 %v703_v40, %v2822_v28  ;;  %v706_v54 = vmul.f32 %v703_v40, %v2845_v43  ;;  %v811_v35 = vrot.slane %v804_v26, 1 }
  0xfe   : > { %v693_v61 = vsel %vm284_vm2, %v690_v39, %v692_v53  ;;  %v864_v40 = vstv %s2328_s27  ;;  %s3064_s27 = sld [smem:[#allocation7 + $0xe]] }
  0xff   : > { %v711_v52 = vrot.slane %v705_v44, 3  ;;  %v713_v62 = vrot.slane %v706_v54, 3  ;;  %v866_v42 = vmul.f32 %v864_v40, %v2828_v31  ;;  %v865_v48 = vmul.f32 %v864_v40, %v2822_v28 }
 0x100   : > { %533 = vrot.lane.b32.xlu0 %v530_v46, %s2642_s17  ;;  %500 = vrot.lane.b32.xlu1 %v497_v49, %s2641_s24  ;;  %v689_v46 = vrot.slane %v683_v37, 2  ;;  %v825_v37 = vmul.f32 %v822_v20, %v2845_v43 }
 0x101   : > { %v714_v5 = vsel %vm302_vm3, %v711_v52, %v713_v62  ;;  %v871_v57 = vrot.slane %v865_v48, 4 }
 0x102   : > { %v691_v49 = vsel %vm284_vm2, %v689_v46, %v690_v39  ;;  %v832_v46 = vrot.slane %v825_v37, 2 }
 0x104   : > { %554 = vrot.lane.b32.xlu0 %v551_v56, %s2642_s17  ;;  %535 = vrot.lane.b32.xlu1 %v532_v58, %s2642_s17  ;;  %v710_v56 = vrot.slane %v704_v47, 3  ;;  %v732_v58 = vrot.slane %v726_v50, 4  ;;  %v885_v50 = vstv %s2329_s19  ;;  %s3066_s19 = sld [smem:[#allocation7 + $0x15]] }
 0x106   : > { %v712_v60 = vsel %vm302_vm3, %v710_v56, %v711_v52  ;;  %v733_v2 = vsel %vm320_vm4, %v731_v0, %v732_v58  ;;  %v735_v14 = vsel %vm320_vm4, %v732_v58, %v734_v6  ;;  %v887_v52 = vmul.f32 %v885_v50, %v2828_v31 }
 0x107   : > { %v867_v56 = vmul.f32 %v864_v40, %v2845_v43  ;;  %v886_v58 = vmul.f32 %v885_v50, %v2822_v28 }
 0x108   : > { %575 = vrot.lane.b32.xlu0 %v572_v3, %s2642_s17  ;;  %556 = vrot.lane.b32.xlu1 %v553_v4, %s2642_s17  ;;  %v753_v3 = vrot.slane %v747_v59, 5  ;;  %v766_v4 = vstv %s2323_s7  ;;  %s3040_s7 = sld [smem:[#allocation7 + $0x2f]] }
 0x109   : > { %v768_v7 = vmul.f32 %v766_v4, %v2828_v31  ;;  %v767_v10 = vmul.f32 %v766_v4, %v2822_v28  ;;  %v769_v17 = vmul.f32 %v766_v4, %v2845_v43  ;;  %v874_v63 = vrot.slane %v867_v56, 4 }
 0x10a   : > { %v756_v24 = vsel %vm338_vm5, %v753_v3, %v755_v16  ;;  %v941_v4 = vstv %s2332_s8  ;;  %s3079_s8 = sld [smem:[#allocation7 + $0x6]] }
 0x10b   : > { %v774_v15 = vrot.slane %v768_v7, 6  ;;  %v776_v25 = vrot.slane %v769_v17, 6  ;;  %v943_v6 = vmul.f32 %v941_v4, %v2828_v31  ;;  %v942_v11 = vmul.f32 %v941_v4, %v2822_v28 }
 0x10c   : > { %596 = vrot.lane.b32.xlu0 %v593_v9, %s2642_s17  ;;  %577 = vrot.lane.b32.xlu1 %v574_v12, %s2642_s17  ;;  %v752_v9 = vrot.slane %v746_v1, 5  ;;  %v888_v1 = vmul.f32 %v885_v50, %v2845_v43 }
 0x10d   : > { %v777_v34 = vsel %vm356_vm6, %v774_v15, %v776_v25  ;;  %v948_v20 = vrot.slane %v942_v11, 1  ;;  %v983_v25 = vstv %s2334_s16  ;;  %s3083_s16 = sld [smem:[#allocation7 + $0x2a]] }
 0x10e   : > { %v754_v12 = vsel %vm338_vm5, %v752_v9, %v753_v3  ;;  %v895_v9 = vrot.slane %v888_v1, 5 }
 0x110   : > { %617 = vrot.lane.b32.xlu0 %v614_v19, %s2642_s17  ;;  %598 = vrot.lane.b32.xlu1 %v595_v21, %s2642_s17  ;;  %v773_v19 = vrot.slane %v767_v10, 6  ;;  %v809_v21 = vrot.slane %v803_v13, 1  ;;  %v962_v13 = vstv %s2333_s3  ;;  %s3081_s3 = sld [smem:[#allocation7 + $0x23]] }
 0x112   : > { %v775_v23 = vsel %vm356_vm6, %v773_v19, %v774_v15  ;;  %v810_v30 = vsel %vm266_vm1, %v808_v27, %v809_v21  ;;  %v812_v44 = vsel %vm266_vm1, %v809_v21, %v811_v35  ;;  %v964_v15 = vmul.f32 %v962_v13, %v2828_v31 }
 0x113   : > { %v944_v19 = vmul.f32 %v941_v4, %v2845_v43  ;;  %v963_v21 = vmul.f32 %v962_v13, %v2822_v28 }
 0x114   : > { %638 = vrot.lane.b32.xlu0 %v635_v32, %s2642_s17  ;;  %619 = vrot.lane.b32.xlu1 %v616_v33, %s2642_s17  ;;  %v830_v32 = vrot.slane %v824_v22, 2  ;;  %v843_v33 = vstv %s2327_s26  ;;  %s3062_s26 = sld [smem:[#allocation7 + $0xd]] }
 0x115   : > { %v845_v36 = vmul.f32 %v843_v33, %v2828_v31  ;;  %v844_v39 = vmul.f32 %v843_v33, %v2822_v28  ;;  %v846_v47 = vmul.f32 %v843_v33, %v2845_v43  ;;  %v951_v27 = vrot.slane %v944_v19, 1 }
 0x116   : > { %v833_v54 = vsel %vm284_vm2, %v830_v32, %v832_v46  ;;  %v984_v33 = vmul.f32 %v983_v25, %v2822_v28  ;;  %v1025_v46 = vstv %s2336_s6  ;;  %s3090_s6 = sld [smem:[#allocation7 + $0x1b]] }
 0x117   : > { %v851_v45 = vrot.slane %v845_v36, 3  ;;  %v853_v55 = vrot.slane %v846_v47, 3  ;;  %v1027_v50 = vmul.f32 %v1025_v46, %v2828_v31  ;;  %v1026_v56 = vmul.f32 %v1025_v46, %v2822_v28 }
 0x118   : > { %673 = vrot.lane.b32.xlu0 %v670_v38, %s4076_s15  ;;  %640 = vrot.lane.b32.xlu1 %v637_v41, %s2642_s17  ;;  %v829_v38 = vrot.slane %v823_v29, 2  ;;  %v985_v29 = vmul.f32 %v983_v25, %v2828_v31  ;;  %v1028_v1 = vmul.f32 %v1025_v46, %v2845_v43 }
 0x119   : > { %v854_v62 = vsel %vm302_vm3, %v851_v45, %v853_v55 }
 0x11a   : > { %v831_v41 = vsel %vm284_vm2, %v829_v38, %v830_v32  ;;  %v969_v32 = vrot.slane %v963_v21, 2  ;;  %v991_v40 = vrot.slane %v985_v29, 3  ;;  %v1067_v21 = vstv %s3079_s8  ;;  %s3402_s8 = sld [smem:[#allocation7 + $0x3a]] }
 0x11b   : > { %v3136_v29 = vstv %s3083_s16  ;;  %s2361_s16 = sld [smem:[#allocation7 + $0x41]] }
 0x11c   : > { %694 = vrot.lane.b32.xlu0 %v691_v49, %s4076_s15  ;;  %675 = vrot.lane.b32.xlu1 %v672_v51, %s4076_s15  ;;  %v850_v49 = vrot.slane %v844_v39, 3  ;;  %v872_v51 = vrot.slane %v866_v42, 4  ;;  %v986_v42 = vmul.f32 %v983_v25, %v2845_v43 }
 0x11e   : > { %v852_v53 = vsel %vm302_vm3, %v850_v49, %v851_v45  ;;  %v873_v59 = vsel %vm320_vm4, %v871_v57, %v872_v51  ;;  %v875_v7 = vsel %vm320_vm4, %v872_v51, %v874_v63  ;;  %v990_v45 = vrot.slane %v984_v33, 3 }
 0x120   : > { %715 = vrot.lane.b32.xlu0 %v712_v60, %s4076_s15  ;;  %696 = vrot.lane.b32.xlu1 %v693_v61, %s4076_s15  ;;  %v893_v60 = vrot.slane %v887_v52, 5  ;;  %v906_v61 = vstv %s2330_s28  ;;  %v992_v51 = vsel %vm302_vm3, %v990_v45, %v991_v40  ;;  %s3074_s28 = sld [smem:[#allocation7 + $0x1c]] }
 0x121   : > { %v908_v0 = vmul.f32 %v906_v61, %v2828_v31  ;;  %v907_v3 = vmul.f32 %v906_v61, %v2822_v28  ;;  %v909_v10 = vmul.f32 %v906_v61, %v2845_v43  ;;  %v1046_v61 = vstv %s3040_s7  ;;  %s3097_s7 = sld [smem:[#allocation7 + $0x22]] }
 0x122   : > { %v896_v17 = vsel %vm338_vm5, %v893_v60, %v895_v9  ;;  %v1035_v9 = vrot.slane %v1028_v1, 5 }
 0x123   : > { %v914_v8 = vrot.slane %v908_v0, 6  ;;  %v916_v18 = vrot.slane %v909_v10, 6  ;;  %v1048_v0 = vmul.f32 %v1046_v61, %v2828_v31  ;;  %v1049_v10 = vmul.f32 %v1046_v61, %v2845_v43 }
 0x124   : > { %736 = vrot.lane.b32.xlu0 %v733_v2, %s4076_s15  ;;  %717 = vrot.lane.b32.xlu1 %v714_v5, %s4076_s15  ;;  %v892_v2 = vrot.slane %v886_v58, 5 }
 0x125   : > { %v917_v26 = vsel %vm356_vm6, %v914_v8, %v916_v18 }
 0x126   : > { %v894_v5 = vsel %vm338_vm5, %v892_v2, %v893_v60  ;;  %v1033_v60 = vrot.slane %v1027_v50, 5  ;;  %v1032_v2 = vrot.slane %v1026_v56, 5  ;;  %v3127_v25 = vstv %s3074_s28  ;;  %s3366_s28 = sld [smem:[#allocation7 + $0x5c]] }
 0x128   : > { %757 = vrot.lane.b32.xlu0 %v754_v12, %s4076_s15  ;;  %738 = vrot.lane.b32.xlu1 %v735_v14, %s4076_s15  ;;  %v913_v12 = vrot.slane %v907_v3, 6  ;;  %v949_v14 = vrot.slane %v943_v6, 1  ;;  %v1047_v3 = vmul.f32 %v1046_v61, %v2822_v28  ;;  %v1034_v6 = vsel %vm338_vm5, %v1032_v2, %v1033_v60 }
 0x12a   : > { %v915_v16 = vsel %vm356_vm6, %v913_v12, %v914_v8  ;;  %v952_v39 = vsel %vm266_vm1, %v949_v14, %v951_v27  ;;  %v1054_v8 = vrot.slane %v1048_v0, 6  ;;  %v1053_v11 = vrot.slane %v1047_v3, 6 }
 0x12b   : > { %v1081_v12 = vstv %s3062_s26  ;;  %v3133_v27 = vstv %s3081_s3  ;;  %s3305_s26 = sld [smem:[#allocation7 + $0x47]]  ;;  %s3408_s3 = sld [smem:[#allocation7 + $0x33]] }
 0x12c   : > { %778 = vrot.lane.b32.xlu0 %v775_v23, %s4076_s15  ;;  %759 = vrot.lane.b32.xlu1 %v756_v24, %s4076_s15  ;;  %v950_v23 = vsel %vm266_vm1, %v948_v20, %v949_v14  ;;  %v970_v24 = vrot.slane %v964_v15, 2  ;;  %v259_v14 = vstv %s3060_s20  ;;  %v3111_v15 = vstv %s3064_s27  ;;  %s2646_s20 = smov 122   ;;  %s3326_s27 = sld [smem:[#allocation7 + $0x4e]] }
 0x12d   : > { %v3118_v18 = vmul.f32 %v1081_v12, %v2828_v31  ;;  %v1055_v19 = vsel %vm356_vm6, %v1053_v11, %v1054_v8  ;;  %v1036_v20 = vsel %vm338_vm5, %v1033_v60, %v1035_v9  ;;  %v3141_v33 = vmul.f32 %v259_v14, %v2828_v31 }
 0x12e   : > { %v971_v37 = vsel %vm284_vm2, %v969_v32, %v970_v24  ;;  %v1123_v32 = vstv %s3090_s6  ;;  %v260_v46 = vmul.f32 %v259_v14, %v2822_v28  ;;  %v3165_v50 = vmul.f32 %v3111_v15, %v2828_v31  ;;  %s3447_s6 = sld [smem:[#allocation7 + $0x4f]] }
 0x12f   : > { %v268_v56 = vrot.slane %v3141_v33, 1  ;;  %v1125_v2 = vmul.f32 %v1123_v32, %v2828_v31  ;;  %v3201_v11 = vmul.f32 %v3127_v25, %v2822_v28 }
 0x130   : > { %813 = vrot.lane.b32.xlu0 %v810_v30, %s4074_s23  ;;  %780 = vrot.lane.b32.xlu1 %v777_v34, %s4076_s15  ;;  %v965_v30 = vmul.f32 %v962_v13, %v2845_v43  ;;  %v1004_v34 = vstv %s2335_s30  ;;  %s3088_s30 = sld [smem:[#allocation7 + $0x14]]  ;;  %s3106_s15 = sld [smem:[#allocation7 + $0x30]]  ;;  %v253_v13 = vstv %s3055_s18 }
 0x131   : > { %v1006_v38 = vmul.f32 %v1004_v34, %v2828_v31  ;;  %s3275_s18 = sld [smem:[#allocation7 + $0x40]] }
 0x133   : > { %v1012_v49 = vrot.slane %v1006_v38, 4  ;;  %v1068_v38 = vmul.f32 %v1067_v21, %v2822_v28 }
 0x134   : > { %834 = vrot.lane.b32.xlu0 %v831_v41, %s4074_s23  ;;  %815 = vrot.lane.b32.xlu1 %v812_v44, %s4074_s23  ;;  %v972_v41 = vrot.slane %v965_v30, 2  ;;  %v1005_v44 = vmul.f32 %v1004_v34, %v2822_v28 }
 0x136   : > { %v973_v52 = vsel %vm284_vm2, %v970_v24, %v972_v41  ;;  %v1011_v55 = vrot.slane %v1005_v44, 4  ;;  %v3124_v24 = vstv %s3066_s19  ;;  %v1102_v30 = vstv %s3088_s30  ;;  %s3349_s19 = sld [smem:[#allocation7 + $0x55]]  ;;  %s2362_s30 = sld [smem:[#allocation7 + $0x48]] }
 0x137   : > { %v1084_v44 = vmul.f32 %v1081_v12, %v2845_v43  ;;  %v1105_v3 = vmul.f32 %v1102_v30, %v2845_v43  ;;  %v3194_v9 = vmul.f32 %v3124_v24, %v2828_v31 }
 0x138   : > { %855 = vrot.lane.b32.xlu0 %v852_v53, %s4074_s23  ;;  %836 = vrot.lane.b32.xlu1 %v833_v54, %s4074_s23  ;;  %v993_v53 = vrot.slane %v986_v42, 3  ;;  %v1007_v54 = vmul.f32 %v1004_v34, %v2845_v43  ;;  %v3154_v42 = vmul.f32 %v1102_v30, %v2828_v31 }
 0x139   : > { %v1091_v1 = vrot.slane %v1084_v44, 1  ;;  %v3219_v44 = vmul.f32 %v3127_v25, %v2828_v31 }
 0x13a   : > { %v1014_v63 = vrot.slane %v1007_v54, 4  ;;  %v1103_v54 = vmul.f32 %v1102_v30, %v2822_v28  ;;  %v1110_v0 = vrot.slane %v3154_v42, 2  ;;  %v304_v42 = vrot.slane %v3194_v9, 3 }
 0x13c   : > { %876 = vrot.lane.b32.xlu0 %v873_v59, %s4074_s23  ;;  %857 = vrot.lane.b32.xlu1 %v854_v62, %s4074_s23  ;;  %v1013_v59 = vsel %vm320_vm4, %v1011_v55, %v1012_v49  ;;  %v994_v62 = vsel %vm302_vm3, %v991_v40, %v993_v53  ;;  %v3150_v40 = vstv %s3097_s7  ;;  %v3174_v53 = vmul.f32 %v3124_v24, %v2822_v28  ;;  %s3451_s7 = sld [smem:[#allocation7 + $0x56]] }
 0x13d   : > { %v3178_v55 = vstv %s3106_s15  ;;  %s3256_s15 = sld [smem:[#allocation7 + $0x39]] }
 0x140   : > { %897 = vrot.lane.b32.xlu0 %v894_v5, %s4074_s23  ;;  %878 = vrot.lane.b32.xlu1 %v875_v7, %s4074_s23  ;;  %v1015_v7 = vsel %vm320_vm4, %v1012_v49, %v1014_v63  ;;  %v278_v49 = vmul.f32 %v3111_v15, %v2822_v28  ;;  %v1069_v63 = vmul.f32 %v1067_v21, %v2828_v31 }
 0x144   : > { %918 = vrot.lane.b32.xlu0 %v915_v16, %s4074_s23  ;;  %899 = vrot.lane.b32.xlu1 %v896_v17, %s4074_s23 }
 0x146   : > { %v3025_v22 = vpop.permute.xlu0 %372 }
 0x148   : > { %953 = vrot.lane.b32.xlu0 %v950_v23, %s2645_s5  ;;  %920 = vrot.lane.b32.xlu1 %v917_v26, %s4074_s23  ;;  %s3101_s23 = sld [smem:[#allocation7 + $0x29]]  ;;  %v1056_v23 = vrot.slane %v1049_v10, 6  ;;  %v1082_v26 = vmul.f32 %v1081_v12, %v2822_v28  ;;  %v303_v10 = vrot.slane %v3174_v53, 3  ;;  %v1109_v12 = vrot.slane %v1103_v54, 2 }
 0x14a   : > { %v3034_v35 = vpop.permute.xlu1 %374  ;;  %v3036_v36 = vpop.permute.xlu0 %512  ;;  %v1057_v41 = vsel %vm356_vm6, %v1054_v8, %v1056_v23  ;;  %v286_v8 = vrot.slane %v3165_v50, 2  ;;  %v3211_v23 = vmul.f32 %v3150_v40, %v2828_v31  ;;  %v1111_v30 = vsel %vm284_vm2, %v1109_v12, %v1110_v0  ;;  %v2498_v50 = vld [vmem:[#allocation2 + $0x10] sm:$0x3f] }
 0x14b   : > { %v3260_v12 = vmul.f32 %v3133_v27, %v2828_v31 }
 0x14c   : > { %974 = vrot.lane.b32.xlu0 %v971_v37, %s2645_s5  ;;  %955 = vrot.lane.b32.xlu1 %v952_v39, %s2645_s5  ;;  %v1089_v39 = vrot.slane %v3118_v18, 1 }
 0x14e   : > { %v3047_v47 = vpop.permute.xlu1 %514  ;;  %v3049_v48 = vpop.permute.xlu0 %652  ;;  %v3158_v45 = vstv %s3101_s23  ;;  %v1092_v33 = vsel %vm266_vm1, %v1089_v39, %v1091_v1  ;;  %s3273_s23 = sld [smem:[#allocation7 + $0x32]] }
 0x150   : > { %995 = vrot.lane.b32.xlu0 %v992_v51, %s2645_s5  ;;  %976 = vrot.lane.b32.xlu1 %v973_v52, %s2645_s5  ;;  %v1088_v51 = vrot.slane %v1082_v26, 1  ;;  %v254_v52 = vmul.f32 %v253_v13, %v2822_v28  ;;  %v1126_v26 = vmul.f32 %v1123_v32, %v2845_v43 }
 0x152   : > { %v3068_v57 = vpop.permute.xlu1 %654  ;;  %v3070_v58 = vpop.permute.xlu0 %792 }
 0x154   : > { %1016 = vrot.lane.b32.xlu0 %v1013_v59, %s2645_s5  ;;  %997 = vrot.lane.b32.xlu1 %v994_v62, %s2645_s5  ;;  %v262_v59 = vmul.f32 %v259_v14, %v2845_v43  ;;  %v1090_v62 = vsel %vm266_vm1, %v1088_v51, %v1089_v39  ;;  %v1124_v14 = vmul.f32 %v1123_v32, %v2822_v28 }
 0x155   : > { %v1145_v32 = vmul.f32 %v3150_v40, %v2822_v28  ;;  %v3232_v51 = vmul.f32 %v3133_v27, %v2822_v28  ;;  %v3247_v28 = vmul.f32 %v3158_v45, %v2828_v31 }
 0x156   : > { %v3092_v4 = vpop.permute.xlu1 %794  ;;  %v3094_v5 = vpop.permute.xlu0 %932  ;;  %v1130_v53 = vrot.slane %v1124_v14, 3 }
 0x158   : > { %1037 = vrot.lane.b32.xlu0 %v1034_v6, %s2645_s5  ;;  %1018 = vrot.lane.b32.xlu1 %v1015_v7, %s2645_s5  ;;  %v267_v6 = vrot.slane %v260_v46, 1  ;;  %v285_v7 = vrot.slane %v278_v49, 2  ;;  %v280_v46 = vmul.f32 %v3111_v15, %v2845_v43  ;;  %v255_v15 = vmul.f32 %v253_v13, %v2828_v31 }
 0x159   : > { %v1147_v13 = vmul.f32 %v3150_v40, %v2845_v43  ;;  %v2496_v40 = vld [vmem:[#allocation2] sm:$0xff]  ;;  %v1173_v31 = vrot.slane %v3247_v28, 5 }
 0x15a   : > { %v3113_v16 = vpop.permute.xlu1 %934  ;;  %v3115_v17 = vpop.permute.xlu0 %393  ;;  %v269_v18 = vsel %vm266_vm1, %v267_v6, %v268_v56  ;;  %v287_v39 = vsel %vm284_vm2, %v285_v7, %v286_v8  ;;  %v298_v6 = vmul.f32 %v3124_v24, %v2845_v43  ;;  %v1151_v7 = vrot.slane %v1145_v32, 4 }
 0x15b   : > { %v274_v49 = vadd.f32 %v269_v18, %v254_v52  ;;  %v1152_v52 = vrot.slane %v3211_v23, 4  ;;  %v305_v24 = vsel %vm302_vm3, %v303_v10, %v304_v42  ;;  %v322_v18 = vrot.slane %v3219_v44, 4 }
 0x15c   : > { %1058 = vrot.lane.b32.xlu0 %v1055_v19, %s2645_s5  ;;  %1039 = vrot.lane.b32.xlu1 %v1036_v20, %s2645_s5  ;;  %v270_v19 = vrot.slane %v262_v59, 1  ;;  %v1168_v44 = vmul.f32 %v3158_v45, %v2845_v43  ;;  %v306_v32 = vrot.slane %v298_v6, 3 }
 0x15e   : > { %v3143_v34 = vpop.permute.xlu1 %395  ;;  %v3145_v37 = vpop.permute.xlu0 %414  ;;  %v271_v54 = vsel %vm266_vm1, %v268_v56, %v270_v19  ;;  %v321_v56 = vrot.slane %v3201_v11, 4  ;;  %v1166_v11 = vmul.f32 %v2496_v40, %v3158_v45 }
 0x15f   : > { %v275_v14 = vadd.f32 %v271_v54, %v255_v15  ;;  %v1187_v54 = vmul.f32 %v2496_v40, %v3178_v55 }
 0x160   : > { %1072 = vrot.lane.b32.xlu0 %v1068_v38, %s2646_s20  ;;  %1060 = vrot.lane.b32.xlu1 %v1057_v41, %s2645_s5  ;;  %v1131_v38 = vrot.slane %v1125_v2, 3  ;;  %v1112_v41 = vrot.slane %v1105_v3, 2  ;;  %v288_v3 = vrot.slane %v280_v46, 2  ;;  %v339_v46 = vrot.slane %v3232_v51, 5 }
 0x161   : > { %v1172_v15 = vrot.slane %v1166_v11, 5  ;;  %v323_v45 = vsel %vm320_vm4, %v321_v56, %v322_v18  ;;  %v340_v51 = vrot.slane %v3260_v12, 5  ;;  %v3307_v56 = vld [vmem:[#allocation2 + $0x18] sm:$0xff]  ;;  %v350_v12 = vmul.f32 %v2496_v40, %v3136_v29 }
 0x162   : > { %v3182_v60 = vpop.permute.xlu1 %416  ;;  %v3184_v61 = vpop.permute.xlu0 %435  ;;  %v1132_v1 = vsel %vm302_vm3, %v1130_v53, %v1131_v38  ;;  %v1113_v2 = vsel %vm284_vm2, %v1110_v0, %v1112_v41  ;;  %v292_v0 = vadd.f32 %v287_v39, %v274_v49  ;;  %v2497_v41 = vld [vmem:[#allocation2 + $0x8] sm:$0xff]  ;;  %v289_v49 = vsel %vm284_vm2, %v286_v8, %v288_v3  ;;  %v3309_v3 = vld [vmem:[#allocation2 + $0x20] sm:$0xff] }
 0x163   : > { %v3279_v10 = vmul.f32 %v2497_v41, %v3178_v55  ;;  %v293_v53 = vadd.f32 %v289_v49, %v275_v14  ;;  %v1189_v8 = vmul.f32 %v2498_v50, %v3178_v55  ;;  %v307_v55 = vsel %vm302_vm3, %v304_v42, %v306_v32 }
 0x164   : > { %1093 = vrot.lane.b32.xlu0 %v1090_v62, %s2646_s20  ;;  %1074 = vrot.lane.b32.xlu1 %v1069_v63, %s2646_s20  ;;  %v1133_v63 = vrot.slane %v1126_v26, 3  ;;  %v1153_v26 = vsel %vm320_vm4, %v1151_v7, %v1152_v52  ;;  %v310_v39 = vadd.f32 %v305_v24, %v292_v0  ;;  %v334_v7 = vmul.f32 %v2498_v50, %v3133_v27 }
 0x165   : > { %v1194_v28 = vrot.slane %v3279_v10, 6  ;;  %v311_v14 = vadd.f32 %v307_v55, %v293_v53  ;;  %v1193_v11 = vrot.slane %v1187_v54, 6  ;;  %v341_v24 = vsel %vm338_vm5, %v339_v46, %v340_v51 }
 0x166   : > { %v3205_v20 = vpop.permute.xlu1 %437  ;;  %v3207_v21 = vpop.permute.xlu0 %456  ;;  %v328_v0 = vadd.f32 %v323_v45, %v310_v39  ;;  %v1318_v27 = vstv %s3273_s23  ;;  %v1196_v9 = vrot.slane %v1189_v8, 6  ;;  %v342_v32 = vrot.slane %v334_v7, 5  ;;  %s3517_s23 = sld [smem:[#allocation7 + $0x34]] }
 0x167   : > { %v1195_v42 = vsel %vm356_vm6, %v1193_v11, %v1194_v28 }
 0x168   : > { %1114 = vrot.lane.b32.xlu0 %v1111_v30, %s2646_s20  ;;  %1095 = vrot.lane.b32.xlu1 %v1092_v33, %s2646_s20  ;;  %v1134_v30 = vsel %vm302_vm3, %v1131_v38, %v1133_v63  ;;  %v1154_v33 = vrot.slane %v1147_v13, 4  ;;  %v316_v38 = vmul.f32 %v3127_v25, %v2845_v43  ;;  %v3295_v63 = vmul.f32 %v2497_v41, %v3136_v29 }
 0x169   : > { %v1175_v13 = vrot.slane %v1168_v44, 5  ;;  %v3332_v44 = vld [vmem:[#allocation2 + $0x28] sm:$0x3f]  ;;  %v346_v39 = vadd.f32 %v341_v24, %v328_v0  ;;  %v343_v7 = vsel %vm338_vm5, %v340_v51, %v342_v32 }
 0x16a   : > { %v3238_v59 = vpop.permute.xlu1 %458  ;;  %v3240_v62 = vpop.permute.xlu0 %477  ;;  %v324_v6 = vrot.slane %v316_v38, 4  ;;  %v358_v46 = vrot.slane %v3295_v63, 6  ;;  %v352_v38 = vmul.f32 %v2498_v50, %v3136_v29  ;;  %v1319_v63 = vmul.f32 %v1318_v27, %v3307_v56 }
 0x16b   : > { %v1176_v41 = vsel %vm338_vm5, %v1173_v31, %v1175_v13  ;;  %v1197_v29 = vsel %vm356_vm6, %v1194_v28, %v1196_v9 }
 0x16c   : > { %1135 = vrot.lane.b32.xlu0 %v1132_v1, %s2646_s20  ;;  %1116 = vrot.lane.b32.xlu1 %v1113_v2, %s2646_s20  ;;  %v1174_v1 = vsel %vm338_vm5, %v1172_v15, %v1173_v31  ;;  %v1155_v2 = vsel %vm320_vm4, %v1152_v52, %v1154_v33  ;;  %v1332_v52 = vstv %s3256_s15  ;;  %v1353_v33 = vstv %s3275_s18  ;;  %s3510_s15 = sld [smem:[#allocation7 + $0x3b]]  ;;  %s3524_s18 = sld [smem:[#allocation7 + $0x42]] }
 0x16d   : > { %v1333_v10 = vmul.f32 %v1332_v52, %v3307_v56  ;;  %v1334_v40 = vmul.f32 %v1332_v52, %v3309_v3  ;;  %v325_v49 = vsel %vm320_vm4, %v322_v18, %v324_v6  ;;  %v1354_v53 = vmul.f32 %v1353_v33, %v3307_v56 }
 0x16e   : > { %v3267_v19 = vpop.permute.xlu1 %479  ;;  %v3269_v23 = vpop.permute.xlu0 %498  ;;  %v329_v31 = vadd.f32 %v325_v49, %v311_v14  ;;  %v357_v15 = vrot.slane %v350_v12, 6  ;;  %v1355_v50 = vmul.f32 %v1353_v33, %v3309_v3  ;;  %v360_v6 = vrot.slane %v352_v38, 6 }
 0x16f   : > { %v1339_v18 = vrot.slane %v1333_v10, 1  ;;  %v1340_v8 = vrot.slane %v1334_v40, 1  ;;  %v1356_v28 = vmul.f32 %v1353_v33, %v3332_v44  ;;  %v1320_v12 = vmul.f32 %v1318_v27, %v3309_v3 }
 0x170   : > { %1156 = vrot.lane.b32.xlu0 %v1153_v26, %s2646_s20  ;;  %1137 = vrot.lane.b32.xlu1 %v1134_v30, %s2646_s20  ;;  %v359_v13 = vsel %vm356_vm6, %v357_v15, %v358_v46  ;;  %v347_v0 = vadd.f32 %v343_v7, %v329_v31  ;;  %v1361_v24 = vrot.slane %v1355_v50, 2  ;;  %v361_v27 = vsel %vm356_vm6, %v358_v46, %v360_v6 }
 0x171   : > { %v364_v55 = vadd.f32 %v359_v13, %v346_v39  ;;  %v1341_v10 = vsel %vm266_vm1, %v1339_v18, %v1340_v8  ;;  %v1363_v40 = vrot.slane %v1356_v28, 2  ;;  %v1416_v18 = vstv %s3349_s19  ;;  %s3575_s19 = sld [smem:[#allocation7 + $0x57]] }
 0x172   : > { %v3297_v43 = vpop.permute.xlu1 %500  ;;  %v3299_v25 = vpop.permute.xlu0 %533  ;;  %v365_v32 = vadd.f32 %v361_v27, %v347_v0  ;;  %v1418_v0 = vmul.f32 %v1416_v18, %v3309_v3 }
 0x174   : > { %1177 = vrot.lane.b32.xlu0 %v1174_v1, %s2646_s20  ;;  %1158 = vrot.lane.b32.xlu1 %v1155_v2, %s2646_s20  ;;  %v1335_v1 = vmul.f32 %v1332_v52, %v3332_v44  ;;  %v1374_v2 = vstv %s3305_s26  ;;  %v1360_v52 = vrot.slane %v1354_v53, 2  ;;  %s3544_s26 = sld [smem:[#allocation7 + $0x49]] }
 0x175   : > { %v1375_v9 = vmul.f32 %v1374_v2, %v3307_v56  ;;  %v1376_v51 = vmul.f32 %v1374_v2, %v3309_v3 }
 0x176   : > { %v3320_v26 = vpop.permute.xlu1 %535  ;;  %v3322_v30 = vpop.permute.xlu0 %554  ;;  %v1342_v33 = vrot.slane %v1335_v1, 1  ;;  %v1362_v53 = vsel %vm284_vm2, %v1360_v52, %v1361_v24  ;;  %v1364_v1 = vsel %vm284_vm2, %v1361_v24, %v1363_v40  ;;  %v1424_v40 = vrot.slane %v1418_v0, 5 }
 0x177   : > { %v1381_v46 = vrot.slane %v1375_v9, 3  ;;  %v1382_v15 = vrot.slane %v1376_v51, 3 }
 0x178   : > { %1198 = vrot.lane.b32.xlu0 %v1195_v42, %s2646_s20  ;;  %1179 = vrot.lane.b32.xlu1 %v1176_v41, %s2646_s20  ;;  %v1395_v42 = vstv %s3326_s27  ;;  %v378_v41 = vadd.f32 %v3025_v22, %v364_v55  ;;  %v1417_v55 = vmul.f32 %v1416_v18, %v3307_v56  ;;  %s3560_s27 = sld [smem:[#allocation7 + $0x50]] }
 0x179   : > { %v1396_v49 = vmul.f32 %v1395_v42, %v3307_v56  ;;  %v1397_v22 = vmul.f32 %v1395_v42, %v3309_v3 }
 0x17a   : > { %v3340_v54 = vpop.permute.xlu1 %556  ;;  %v3342_v45 = vpop.permute.xlu0 %575  ;;  %v399_v38 = vadd.f32 %v3115_v17, %v378_v41  ;;  %v1343_v17 = vsel %vm266_vm1, %v1340_v8, %v1342_v33  ;;  %v1419_v41 = vmul.f32 %v1416_v18, %v3332_v44 }
 0x17b   : > { %v1402_v7 = vrot.slane %v1396_v49, 4 }
 0x17c   : > { %1323 = vrot.lane.b32.xlu0 %v1319_v63, %s2641_s24  ;;  %1200 = vrot.lane.b32.xlu1 %v1197_v29, %s2646_s20  ;;  %v1377_v63 = vmul.f32 %v1374_v2, %v3332_v44  ;;  %v379_v29 = vadd.f32 %v3034_v35, %v365_v32  ;;  %v420_v50 = vadd.f32 %v3145_v37, %v399_v38  ;;  %v1403_v2 = vrot.slane %v1397_v22, 4 }
 0x17d   : > { %v1383_v37 = vsel %vm302_vm3, %v1381_v46, %v1382_v15 }
 0x17e   : > { %v3357_v14 = vpop.permute.xlu1 %577  ;;  %v3359_v11 = vpop.permute.xlu0 %596  ;;  %v400_v13 = vadd.f32 %v3143_v34, %v379_v29  ;;  %v441_v6 = vadd.f32 %v3184_v61, %v420_v50  ;;  %v1384_v8 = vrot.slane %v1377_v63, 3  ;;  %v1398_v34 = vmul.f32 %v1395_v42, %v3332_v44 }
 0x17f   : > { %v1437_v61 = vstv %s3366_s28  ;;  %v1404_v51 = vsel %vm320_vm4, %v1402_v7, %v1403_v2  ;;  %s4089_s28 = smov 125  }
 0x180   : > { %1344 = vrot.lane.b32.xlu0 %v1341_v10, %s2641_s24  ;;  %1325 = vrot.lane.b32.xlu1 %v1320_v12, %s2641_s24  ;;  %v421_v12 = vadd.f32 %v3182_v60, %v400_v13  ;;  %v462_v52 = vadd.f32 %v3207_v21, %v441_v6  ;;  %v1385_v42 = vsel %vm302_vm3, %v1382_v15, %v1384_v8  ;;  %v1423_v10 = vrot.slane %v1417_v55, 5 }
 0x181   : > { %v1438_v33 = vmul.f32 %v1437_v61, %v3307_v56  ;;  %v1439_v27 = vmul.f32 %v1437_v61, %v3309_v3  ;;  %v1405_v32 = vrot.slane %v1398_v34, 4 }
 0x182   : > { %v3374_v39 = vpop.permute.xlu1 %598  ;;  %v3376_v31 = vpop.permute.xlu0 %617  ;;  %v442_v24 = vadd.f32 %v3205_v20, %v421_v12  ;;  %v483_v9 = vadd.f32 %v3240_v62, %v462_v52  ;;  %v1425_v29 = vsel %vm338_vm5, %v1423_v10, %v1424_v40  ;;  %v1514_v12 = vstv %s2362_s30  ;;  %s3628_s30 = sld [smem:[#allocation7 + $0x4a]] }
 0x183   : > { %v1445_v46 = vrot.slane %v1439_v27, 6  ;;  %v1406_v50 = vsel %vm320_vm4, %v1403_v2, %v1405_v32  ;;  %v1516_v32 = vmul.f32 %v1514_v12, %v3309_v3 }
 0x184   : > { %1365 = vrot.lane.b32.xlu0 %v1362_v53, %s2641_s24  ;;  %1346 = vrot.lane.b32.xlu1 %v1343_v17, %s2641_s24  ;;  %v463_v20 = vadd.f32 %v3238_v59, %v442_v24  ;;  %v504_v62 = vadd.f32 %v3269_v23, %v483_v9  ;;  %v1444_v53 = vrot.slane %v1438_v33, 6  ;;  %v1426_v59 = vrot.slane %v1419_v41, 5 }
 0x185   : > { %v1440_v23 = vmul.f32 %v1437_v61, %v3332_v44  ;;  %v1458_v17 = vstv %s3408_s3  ;;  %s3616_s3 = sld [smem:[#allocation7 + $0x3c]] }
 0x186   : > { %v3389_v28 = vpop.permute.xlu1 %619  ;;  %v3391_v35 = vpop.permute.xlu0 %638  ;;  %v484_v38 = vadd.f32 %v3267_v19, %v463_v20  ;;  %v518_v15 = vadd.f32 %v3036_v36, %v504_v62  ;;  %v1472_v19 = vstv %s3402_s8  ;;  %v1446_v13 = vsel %vm356_vm6, %v1444_v53, %v1445_v46  ;;  %s3583_s8 = sld [smem:[#allocation7 + $0x5e]] }
 0x187   : > { %v1427_v36 = vsel %vm338_vm5, %v1424_v40, %v1426_v59  ;;  %v1447_v6 = vrot.slane %v1440_v23, 6  ;;  %v1474_v8 = vmul.f32 %v1472_v19, %v3309_v3  ;;  %v1459_v0 = vmul.f32 %v1458_v17, %v3307_v56 }
 0x188   : > { %1386 = vrot.lane.b32.xlu0 %v1383_v37, %s2641_s24  ;;  %1367 = vrot.lane.b32.xlu1 %v1364_v1, %s2641_s24  ;;  %v505_v63 = vadd.f32 %v3297_v43, %v484_v38  ;;  %v1493_v43 = vstv %s2361_s16  ;;  %v539_v2 = vadd.f32 %v3299_v25, %v518_v15  ;;  %v1473_v37 = vmul.f32 %v1472_v19, %v3307_v56  ;;  %s3622_s16 = sld [smem:[#allocation7 + $0x43]] }
 0x189   : > { %v1448_v52 = vsel %vm356_vm6, %v1445_v46, %v1447_v6  ;;  %v1475_v34 = vmul.f32 %v1472_v19, %v3332_v44  ;;  %v1494_v61 = vmul.f32 %v1493_v43, %v3307_v56  ;;  %v1495_v24 = vmul.f32 %v1493_v43, %v3309_v3 }
 0x18a   : > { %v3410_v60 = vpop.permute.xlu1 %640  ;;  %v3412_v21 = vpop.permute.xlu0 %673  ;;  %v519_v7 = vadd.f32 %v3047_v47, %v505_v63  ;;  %v560_v55 = vadd.f32 %v3322_v30, %v539_v2  ;;  %v1480_v41 = vrot.slane %v1474_v8, 1  ;;  %v1460_v33 = vmul.f32 %v1458_v17, %v3309_v3 }
 0x18b   : > { %v1496_v27 = vmul.f32 %v1493_v43, %v3332_v44  ;;  %v1500_v62 = vrot.slane %v1494_v61, 2  ;;  %v1515_v40 = vmul.f32 %v1514_v12, %v3307_v56  ;;  %v1501_v53 = vrot.slane %v1495_v24, 2 }
 0x18c   : > { %1407 = vrot.lane.b32.xlu0 %v1404_v51, %s2641_s24  ;;  %1388 = vrot.lane.b32.xlu1 %v1385_v42, %s2641_s24  ;;  %v540_v9 = vadd.f32 %v3320_v26, %v519_v7  ;;  %v581_v30 = vadd.f32 %v3342_v45, %v560_v55  ;;  %v1479_v51 = vrot.slane %v1473_v37, 1  ;;  %v1482_v45 = vrot.slane %v1475_v34, 1 }
 0x18d   : > { %v1535_v46 = vstv %s3447_s6  ;;  %v1503_v15 = vrot.slane %v1496_v27, 2  ;;  %v1556_v63 = vstv %s3451_s7  ;;  %v1522_v19 = vrot.slane %v1516_v32, 3  ;;  %s3634_s6 = sld [smem:[#allocation7 + $0x51]]  ;;  %s3640_s7 = sld [smem:[#allocation7 + $0x58]] }
 0x18e   : > { %v3422_v49 = vpop.permute.xlu1 %675  ;;  %v3424_v22 = vpop.permute.xlu0 %694  ;;  %v561_v42 = vadd.f32 %v3340_v54, %v540_v9  ;;  %v602_v10 = vadd.f32 %v3359_v11, %v581_v30  ;;  %v1481_v38 = vsel %vm266_vm1, %v1479_v51, %v1480_v41  ;;  %v1517_v17 = vmul.f32 %v1514_v12, %v3332_v44 }
 0x18f   : > { %v1504_v7 = vsel %vm284_vm2, %v1501_v53, %v1503_v15  ;;  %v1538_v8 = vmul.f32 %v1535_v46, %v3332_v44  ;;  %v1557_v55 = vmul.f32 %v1556_v63, %v3307_v56  ;;  %v1559_v24 = vmul.f32 %v1556_v63, %v3332_v44 }
 0x190   : > { %1428 = vrot.lane.b32.xlu0 %v1425_v29, %s2641_s24  ;;  %1409 = vrot.lane.b32.xlu1 %v1406_v50, %s2641_s24  ;;  %v582_v54 = vadd.f32 %v3357_v14, %v561_v42  ;;  %v623_v11 = vadd.f32 %v3376_v31, %v602_v10  ;;  %v1483_v31 = vsel %vm266_vm1, %v1480_v41, %v1482_v45  ;;  %v1521_v50 = vrot.slane %v1515_v40, 3 }
 0x191   : > { %v1524_v12 = vrot.slane %v1517_v17, 3  ;;  %v1545_v51 = vrot.slane %v1538_v8, 4  ;;  %v1563_v41 = vrot.slane %v1557_v55, 5  ;;  %v1566_v40 = vrot.slane %v1559_v24, 5 }
 0x192   : > { %v3435_v18 = vpop.permute.xlu1 %696  ;;  %v3437_v1 = vpop.permute.xlu0 %715  ;;  %v603_v59 = vadd.f32 %v3374_v39, %v582_v54  ;;  %v644_v23 = vadd.f32 %v3391_v35, %v623_v11  ;;  %v1536_v39 = vmul.f32 %v1535_v46, %v3307_v56  ;;  %v1537_v35 = vmul.f32 %v1535_v46, %v3309_v3 }
 0x193   : > { %v1523_v37 = vsel %vm302_vm3, %v1521_v50, %v1522_v19  ;;  %v1633_v17 = vstv %s3524_s18  ;;  %s3679_s18 = sld [smem:[#allocation7 + $0x3f]] }
 0x194   : > { %1449 = vrot.lane.b32.xlu0 %v1446_v13, %s2641_s24  ;;  %1430 = vrot.lane.b32.xlu1 %v1427_v36, %s2641_s24  ;;  %v624_v13 = vadd.f32 %v3389_v28, %v603_v59  ;;  %v1502_v36 = vsel %vm284_vm2, %v1500_v62, %v1501_v53  ;;  %v658_v6 = vadd.f32 %v3049_v48, %v644_v23  ;;  %v1543_v34 = vrot.slane %v1537_v35, 4 }
 0x195   : > { %v1635_v8 = vmul.f32 %v1633_v17, %v3309_v3 }
 0x196   : > { %v3453_v47 = vpop.permute.xlu1 %717  ;;  %v3455_v25 = vpop.permute.xlu0 %736  ;;  %v645_v43 = vadd.f32 %v3410_v60, %v624_v13  ;;  %v679_v61 = vadd.f32 %v3412_v21, %v658_v6 }
 0x198   : > { %1451 = vrot.lane.b32.xlu1 %v1448_v52, %s2641_s24  ;;  %1463 = vrot.lane.b32.xlu0 %v1459_v0, %s2642_s17  ;;  %s3478_s24 = sld [smem:[#allocation7 + $0x5d]]  ;;  %v1558_v0 = vmul.f32 %v1556_v63, %v3309_v3  ;;  %v1542_v52 = vrot.slane %v1536_v39, 4  ;;  %v659_v60 = vadd.f32 %v3068_v57, %v645_v43  ;;  %v1525_v57 = vsel %vm302_vm3, %v1522_v19, %v1524_v12 }
 0x199   : > { %v1598_v19 = vstv %s3517_s23  ;;  %s4090_s23 = smov 124  }
 0x19a   : > { %v3469_v20 = vpop.permute.xlu1 %738  ;;  %v3471_v26 = vpop.permute.xlu0 %757  ;;  %v1564_v42 = vrot.slane %v1558_v0, 5  ;;  %v1544_v21 = vsel %vm320_vm4, %v1542_v52, %v1543_v34  ;;  %v680_v45 = vadd.f32 %v3422_v49, %v659_v60  ;;  %v1599_v35 = vmul.f32 %v1598_v19, %v3307_v56 }
 0x19b   : > { %v1636_v52 = vmul.f32 %v1633_v17, %v3332_v44 }
 0x19c   : > { %1465 = vrot.lane.b32.xlu1 %v1460_v33, %s2642_s17  ;;  %1484 = vrot.lane.b32.xlu0 %v1481_v38, %s2642_s17  ;;  %v700_v33 = vadd.f32 %v3424_v22, %v679_v61  ;;  %v1546_v22 = vsel %vm320_vm4, %v1543_v34, %v1545_v51  ;;  %v1565_v11 = vsel %vm338_vm5, %v1563_v41, %v1564_v42 }
 0x19d   : > { %v701_v46 = vadd.f32 %v3435_v18, %v680_v45  ;;  %v1567_v63 = vsel %vm338_vm5, %v1564_v42, %v1566_v40  ;;  %v1600_v34 = vmul.f32 %v1598_v19, %v3309_v3 }
 0x19e   : > { %v3486_v29 = vpop.permute.xlu1 %759  ;;  %v3488_v14 = vpop.permute.xlu0 %778  ;;  %v1577_v48 = vstv %s3478_s24  ;;  %v721_v62 = vadd.f32 %v3437_v1, %v700_v33  ;;  %v1612_v1 = vstv %s3510_s15  ;;  %v1675_v33 = vstv %s3560_s27  ;;  %s3666_s24 = sld [smem:[#allocation7 + $0x5f]]  ;;  %s3670_s15 = sld [smem:[#allocation7 + $0x38]] }
 0x19f   : > { %v1578_v10 = vmul.f32 %v1577_v48, %v3307_v56  ;;  %v1579_v27 = vmul.f32 %v1577_v48, %v3309_v3  ;;  %v1580_v53 = vmul.f32 %v1577_v48, %v3332_v44  ;;  %v722_v23 = vadd.f32 %v3453_v47, %v701_v46  ;;  %s3686_s27 = sld [smem:[#allocation7 + $0x4d]] }
 0x1a0   : > { %1486 = vrot.lane.b32.xlu1 %v1483_v31, %s2642_s17  ;;  %1505 = vrot.lane.b32.xlu0 %v1502_v36, %s2642_s17  ;;  %v742_v49 = vadd.f32 %v3455_v25, %v721_v62  ;;  %v1613_v25 = vmul.f32 %v1612_v1, %v3307_v56  ;;  %v1614_v47 = vmul.f32 %v1612_v1, %v3309_v3  ;;  %v1696_v46 = vstv %s3575_s19  ;;  %s3691_s19 = sld [smem:[#allocation7 + $0x31]] }
 0x1a1   : > { %v1584_v38 = vrot.slane %v1578_v10, 6  ;;  %v1585_v59 = vrot.slane %v1579_v27, 6  ;;  %v1587_v18 = vrot.slane %v1580_v53, 6  ;;  %v743_v13 = vadd.f32 %v3469_v20, %v722_v23 }
 0x1a2   : > { %v3501_v2 = vpop.permute.xlu1 %780  ;;  %v3503_v28 = vpop.permute.xlu0 %813  ;;  %v763_v15 = vadd.f32 %v3471_v26, %v742_v49  ;;  %v1615_v6 = vmul.f32 %v1612_v1, %v3332_v44  ;;  %v1620_v12 = vrot.slane %v1614_v47, 1  ;;  %v1697_v19 = vmul.f32 %v1696_v46, %v3307_v56 }
 0x1a3   : > { %v1586_v39 = vsel %vm356_vm6, %v1584_v38, %v1585_v59  ;;  %v764_v26 = vadd.f32 %v3486_v29, %v743_v13  ;;  %v1588_v43 = vsel %vm356_vm6, %v1585_v59, %v1587_v18  ;;  %v1654_v29 = vstv %s3544_s26  ;;  %s3684_s26 = sld [smem:[#allocation7 + $0x46]] }
 0x1a4   : > { %1507 = vrot.lane.b32.xlu1 %v1504_v7, %s2642_s17  ;;  %1526 = vrot.lane.b32.xlu0 %v1523_v37, %s2642_s17  ;;  %v784_v36 = vadd.f32 %v3488_v14, %v763_v15  ;;  %v1619_v7 = vrot.slane %v1613_v25, 1  ;;  %v1634_v37 = vmul.f32 %v1633_v17, %v3307_v56  ;;  %v1622_v48 = vrot.slane %v1615_v6, 1 }
 0x1a5   : > { %v785_v0 = vadd.f32 %v3501_v2, %v764_v26  ;;  %v1655_v2 = vmul.f32 %v1654_v29, %v3307_v56  ;;  %v1656_v51 = vmul.f32 %v1654_v29, %v3309_v3  ;;  %v1657_v45 = vmul.f32 %v1654_v29, %v3332_v44 }
 0x1a6   : > { %v3519_v9 = vpop.permute.xlu1 %815  ;;  %v3521_v30 = vpop.permute.xlu0 %834  ;;  %v798_v55 = vadd.f32 %v3070_v58, %v784_v36  ;;  %v1640_v24 = vrot.slane %v1634_v37, 2  ;;  %v1641_v58 = vrot.slane %v1635_v8, 2  ;;  %v1621_v10 = vsel %vm266_vm1, %v1619_v7, %v1620_v12 }
 0x1a7   : > { %v799_v41 = vadd.f32 %v3092_v4, %v785_v0  ;;  %v1623_v27 = vsel %vm266_vm1, %v1620_v12, %v1622_v48  ;;  %v1664_v23 = vrot.slane %v1657_v45, 3  ;;  %v1678_v15 = vmul.f32 %v1675_v33, %v3332_v44 }
 0x1a8   : > { %1528 = vrot.lane.b32.xlu1 %v1525_v57, %s2642_s17  ;;  %1547 = vrot.lane.b32.xlu0 %v1544_v21, %s2642_s17  ;;  %v819_v42 = vadd.f32 %v3503_v28, %v798_v55  ;;  %v1643_v57 = vrot.slane %v1636_v52, 2  ;;  %v1642_v4 = vsel %vm284_vm2, %v1640_v24, %v1641_v58  ;;  %v1661_v28 = vrot.slane %v1655_v2, 3 }
 0x1a9   : > { %v820_v38 = vadd.f32 %v3519_v9, %v799_v41  ;;  %v1717_v25 = vstv %s3583_s8  ;;  %v1699_v47 = vmul.f32 %v1696_v46, %v3332_v44  ;;  %v1685_v6 = vrot.slane %v1678_v15, 4  ;;  %s3698_s8 = sld [smem:[#allocation7 + $0x5b]] }
 0x1aa   : > { %v3534_v32 = vpop.permute.xlu1 %836  ;;  %v3536_v54 = vpop.permute.xlu0 %855  ;;  %v840_v21 = vadd.f32 %v3521_v30, %v819_v42  ;;  %v1677_v30 = vmul.f32 %v1675_v33, %v3309_v3  ;;  %v1644_v49 = vsel %vm284_vm2, %v1641_v58, %v1643_v57  ;;  %v1720_v55 = vmul.f32 %v1717_v25, %v3332_v44 }
 0x1ab   : > { %v841_v59 = vadd.f32 %v3534_v32, %v820_v38  ;;  %v1706_v29 = vrot.slane %v1699_v47, 5  ;;  %v1752_v2 = vstv %s3616_s3  ;;  %s3753_s3 = sld [smem:[#allocation7 + $0x36]] }
 0x1ac   : > { %1549 = vrot.lane.b32.xlu1 %v1546_v22, %s2642_s17  ;;  %1568 = vrot.lane.b32.xlu0 %v1565_v11, %s2642_s17  ;;  %v1662_v22 = vrot.slane %v1656_v51, 3  ;;  %v1676_v11 = vmul.f32 %v1675_v33, %v3307_v56  ;;  %v861_v53 = vadd.f32 %v3536_v54, %v840_v21  ;;  %v1683_v36 = vrot.slane %v1677_v30, 4 }
 0x1ad   : > { %v1754_v45 = vmul.f32 %v1752_v2, %v3309_v3 }
 0x1ae   : > { %v3551_v31 = vpop.permute.xlu1 %857  ;;  %v877_v50 = vpop.permute.xlu0 %876  ;;  %v1663_v54 = vsel %vm302_vm3, %v1661_v28, %v1662_v22  ;;  %v1682_v18 = vrot.slane %v1676_v11, 4  ;;  %v1686_v48 = vsel %vm320_vm4, %v1683_v36, %v1685_v6 }
 0x1af   : > { %v882_v1 = vadd.f32 %v877_v50, %v861_v53  ;;  %v862_v17 = vadd.f32 %v3551_v31, %v841_v59  ;;  %v1760_v15 = vrot.slane %v1754_v45, 1 }
 0x1b0   : > { %1570 = vrot.lane.b32.xlu1 %v1567_v63, %s2642_s17  ;;  %1589 = vrot.lane.b32.xlu0 %v1586_v39, %s2642_s17  ;;  %v1698_v39 = vmul.f32 %v1696_v46, %v3309_v3  ;;  %v1684_v37 = vsel %vm320_vm4, %v1682_v18, %v1683_v36 }
 0x1b2   : > { %v3567_v20 = vpop.permute.xlu1 %878  ;;  %v898_v14 = vpop.permute.xlu0 %897  ;;  %v1704_v8 = vrot.slane %v1698_v39, 5 }
 0x1b3   : > { %v903_v13 = vadd.f32 %v898_v14, %v882_v1  ;;  %v883_v32 = vadd.f32 %v3567_v20, %v862_v17  ;;  %v1703_v14 = vrot.slane %v1697_v19, 5  ;;  %v1719_v20 = vmul.f32 %v1717_v25, %v3309_v3 }
 0x1b4   : > { %1591 = vrot.lane.b32.xlu1 %v1588_v43, %s2642_s17  ;;  %1603 = vrot.lane.b32.xlu0 %v1599_v35, %s4089_s28  ;;  %s3614_s17 = sld [smem:[#allocation7 + $0x35]]  ;;  %v1665_v35 = vsel %vm302_vm3, %v1662_v22, %v1664_v23  ;;  %v1718_v43 = vmul.f32 %v1717_v25, %v3307_v56  ;;  %v1707_v42 = vsel %vm338_vm5, %v1704_v8, %v1706_v29  ;;  %v1836_v17 = vstv %s3640_s7  ;;  %s3842_s7 = sld [smem:[#allocation7 + $0x59]] }
 0x1b5   : > { %v1725_v24 = vrot.slane %v1719_v20, 6 }
 0x1b6   : > { %v900_v60 = vpop.permute.xlu1 %899  ;;  %v919_v61 = vpop.permute.xlu0 %918 }
 0x1b7   : > { %v924_v50 = vadd.f32 %v919_v61, %v903_v13  ;;  %v904_v7 = vadd.f32 %v900_v60, %v883_v32  ;;  %v1724_v60 = vrot.slane %v1718_v43, 6  ;;  %v1705_v61 = vsel %vm338_vm5, %v1703_v14, %v1704_v8 }
 0x1b8   : > { %1605 = vrot.lane.b32.xlu1 %v1600_v34, %s4089_s28  ;;  %1624 = vrot.lane.b32.xlu0 %v1621_v10, %s4089_s28  ;;  %v1773_v10 = vstv %s3622_s16  ;;  %v1837_v43 = vmul.f32 %v1836_v17, %v3307_v56  ;;  %s3761_s16 = sld [smem:[#allocation7 + $0x44]] }
 0x1b9   : > { %v938_v0 = vadd.f32 %v3094_v5, %v924_v50  ;;  %v1727_v5 = vrot.slane %v1720_v55, 6  ;;  %v1726_v28 = vsel %vm356_vm6, %v1724_v60, %v1725_v24  ;;  %v1774_v11 = vmul.f32 %v1773_v10, %v3307_v56 }
 0x1ba   : > { %v921_v62 = vpop.permute.xlu1 %920  ;;  %v3594_v40 = vpop.permute.xlu0 %953  ;;  %v1738_v58 = vstv %s3614_s17  ;;  %v3660_v38 = vmul.f32 %v1773_v10, %v3309_v3  ;;  %v1776_v46 = vmul.f32 %v1773_v10, %v3332_v44  ;;  %s3730_s17 = sld [smem:[#allocation7 + $0x3d]] }
 0x1bb   : > { %v925_v12 = vadd.f32 %v921_v62, %v904_v7  ;;  %v959_v41 = vadd.f32 %v3594_v40, %v938_v0  ;;  %v1739_v21 = vmul.f32 %v1738_v58, %v3307_v56  ;;  %v1755_v62 = vmul.f32 %v1752_v2, %v3332_v44 }
 0x1bc   : > { %1626 = vrot.lane.b32.xlu1 %v1623_v27, %s4089_s28  ;;  %1645 = vrot.lane.b32.xlu0 %v1642_v4, %s4089_s28  ;;  %v1753_v27 = vmul.f32 %v1752_v2, %v3307_v56  ;;  %v1794_v40 = vstv %s3628_s30  ;;  %v1728_v22 = vsel %vm356_vm6, %v1725_v24, %v1727_v5  ;;  %v1781_v47 = vrot.slane %v3660_v38, 2  ;;  %s3802_s30 = sld [smem:[#allocation7 + $0x4b]] }
 0x1bd   : > { %v939_v51 = vadd.f32 %v3113_v16, %v925_v12  ;;  %v1740_v16 = vmul.f32 %v1738_v58, %v3309_v3  ;;  %v1796_v25 = vmul.f32 %v1794_v40, %v3309_v3  ;;  %v1797_v13 = vmul.f32 %v1794_v40, %v3332_v44 }
 0x1be   : > { %v3607_v63 = vpop.permute.xlu1 %955  ;;  %v975_v9 = vpop.permute.xlu0 %974  ;;  %v1759_v23 = vrot.slane %v1753_v27, 1  ;;  %v1783_v14 = vrot.slane %v1776_v46, 2  ;;  %v1838_v7 = vmul.f32 %v1836_v17, %v3309_v3  ;;  %v1843_v5 = vrot.slane %v1837_v43, 5 }
 0x1bf   : > { %v980_v4 = vadd.f32 %v975_v9, %v959_v41  ;;  %v960_v53 = vadd.f32 %v3607_v63, %v939_v51  ;;  %v1762_v9 = vrot.slane %v1755_v62, 1  ;;  %v1780_v63 = vrot.slane %v1774_v11, 2 }
 0x1c0   : > { %1647 = vrot.lane.b32.xlu1 %v1644_v49, %s4089_s28  ;;  %1666 = vrot.lane.b32.xlu0 %v1663_v54, %s4089_s28  ;;  %v1815_v49 = vstv %s3634_s6  ;;  %v1795_v54 = vmul.f32 %v1794_v40, %v3307_v56  ;;  %v1761_v6 = vsel %vm266_vm1, %v1759_v23, %v1760_v15  ;;  %v1802_v55 = vrot.slane %v1796_v25, 3  ;;  %s3818_s6 = sld [smem:[#allocation7 + $0x52]] }
 0x1c1   : > { %v1816_v36 = vmul.f32 %v1815_v49, %v3307_v56  ;;  %v1817_v39 = vmul.f32 %v1815_v49, %v3309_v3  ;;  %v1804_v0 = vrot.slane %v1797_v13, 3  ;;  %v1763_v60 = vsel %vm266_vm1, %v1760_v15, %v1762_v9 }
 0x1c2   : > { %v977_v31 = vpop.permute.xlu1 %976  ;;  %v996_v26 = vpop.permute.xlu0 %995  ;;  %v1801_v20 = vrot.slane %v1795_v54, 3  ;;  %v1782_v2 = vsel %vm284_vm2, %v1780_v63, %v1781_v47  ;;  %v1844_v51 = vrot.slane %v1838_v7, 5  ;;  %v1857_v41 = vstv %s3666_s24  ;;  %s3883_s24 = sld [smem:[#allocation7 + $0x60]] }
 0x1c3   : > { %v1001_v30 = vadd.f32 %v996_v26, %v980_v4  ;;  %v981_v18 = vadd.f32 %v977_v31, %v960_v53  ;;  %v1818_v31 = vmul.f32 %v1815_v49, %v3332_v44  ;;  %v1822_v12 = vrot.slane %v1816_v36, 4 }
 0x1c4   : > { %1668 = vrot.lane.b32.xlu1 %v1665_v35, %s4089_s28  ;;  %1687 = vrot.lane.b32.xlu0 %v1684_v37, %s4089_s28  ;;  %v1823_v29 = vrot.slane %v1817_v39, 4  ;;  %v1805_v27 = vsel %vm302_vm3, %v1802_v55, %v1804_v0  ;;  %v3712_v40 = vstv %s3679_s18  ;;  %v1845_v38 = vsel %vm338_vm5, %v1843_v5, %v1844_v51  ;;  %s3931_s18 = sld [smem:[#allocation7 + $0x45]] }
 0x1c5   : > { %v3716_v53 = vmul.f32 %v1857_v41, %v3309_v3  ;;  %v3721_v46 = vstv %s3684_s26  ;;  %v3728_v23 = vstv %s3686_s27  ;;  %v1210_v9 = vstv %s3691_s19  ;;  %s3942_s26 = sld [smem:[#allocation7 + $0x4c]]  ;;  %s3953_s27 = sld [smem:[#allocation7 + $0x53]] }
 0x1c6   : > { %v998_v52 = vpop.permute.xlu1 %997  ;;  %v1017_v34 = vpop.permute.xlu0 %1016  ;;  %v1824_v45 = vsel %vm320_vm4, %v1822_v12, %v1823_v29  ;;  %v1234_v54 = vmul.f32 %v3712_v40, %v3307_v56  ;;  %v1251_v25 = vmul.f32 %v3721_v46, %v3307_v56  ;;  %v1860_v0 = vmul.f32 %v1857_v41, %v3332_v44  ;;  %s3965_s19 = sld [smem:[#allocation7 + $0x5a]] }
 0x1c7   : > { %v1022_v19 = vadd.f32 %v1017_v34, %v1001_v30  ;;  %v1002_v32 = vadd.f32 %v998_v52, %v981_v18  ;;  %v1839_v52 = vmul.f32 %v1836_v17, %v3332_v44  ;;  %v3742_v18 = vmul.f32 %v3712_v40, %v3309_v3 }
 0x1c8   : > { %1689 = vrot.lane.b32.xlu1 %v1686_v48, %s4089_s28  ;;  %1708 = vrot.lane.b32.xlu0 %v1705_v61, %s4089_s28  ;;  %v1825_v61 = vrot.slane %v1818_v31, 4  ;;  %v3748_v17 = vmul.f32 %v3721_v46, %v3309_v3  ;;  %v1865_v39 = vrot.slane %v3716_v53, 6 }
 0x1c9   : > { %v1846_v62 = vrot.slane %v1839_v52, 5  ;;  %v1241_v43 = vrot.slane %v3742_v18, 2 }
 0x1ca   : > { %v1019_v33 = vpop.permute.xlu1 %1018  ;;  %v1038_v57 = vpop.permute.xlu0 %1037 }
 0x1cb   : > { %v1043_v50 = vadd.f32 %v1038_v57, %v1022_v19  ;;  %v1023_v37 = vadd.f32 %v1019_v33, %v1002_v32  ;;  %v1784_v33 = vsel %vm284_vm2, %v1781_v47, %v1783_v14  ;;  %v3702_v57 = vstv %s3670_s15  ;;  %s3908_s15 = sld [smem:[#allocation7 + $0x3e]] }
 0x1cc   : > { %1710 = vrot.lane.b32.xlu1 %v1707_v42, %s4089_s28  ;;  %1729 = vrot.lane.b32.xlu0 %v1726_v28, %s4089_s28  ;;  %v1826_v28 = vsel %vm320_vm4, %v1823_v29, %v1825_v61  ;;  %v1217_v30 = vmul.f32 %v3702_v57, %v3307_v56  ;;  %v3735_v15 = vsel %vm338_vm5, %v1844_v51, %v1846_v62  ;;  %v3759_v47 = vstv %s3698_s8  ;;  %v3811_v62 = vld [vmem:[#allocation2 + $0x18] sm:$0xff] }
 0x1cd   : > { %v1240_v14 = vrot.slane %v1234_v54, 2  ;;  %v3838_v54 = vld [vmem:[#allocation2 + $0x28] sm:$0x3f] }
 0x1ce   : > { %v1040_v59 = vpop.permute.xlu1 %1039  ;;  %v1059_v1 = vpop.permute.xlu0 %1058  ;;  %v1223_v32 = vrot.slane %v1217_v30, 1 }
 0x1cf   : > { %v1064_v8 = vadd.f32 %v1059_v1, %v1043_v50  ;;  %v1044_v34 = vadd.f32 %v1040_v59, %v1023_v37  ;;  %v3725_v1 = vmul.f32 %v3702_v57, %v3309_v3  ;;  %v1268_v50 = vmul.f32 %v3728_v23, %v3307_v56 }
 0x1d0   : > { %1731 = vrot.lane.b32.xlu1 %v1728_v22, %s4089_s28  ;;  %1743 = vrot.lane.b32.xlu0 %v1739_v21, %s4090_s23  ;;  %s3694_s28 = sld [smem:[#allocation7 + $0x54]]  ;;  %v1803_v21 = vsel %vm302_vm3, %v1801_v20, %v1802_v55  ;;  %v1258_v20 = vrot.slane %v3748_v17, 3  ;;  %v1302_v55 = vmul.f32 %v3759_v47, %v3307_v56 }
 0x1d2   : > { %v1061_v26 = vpop.permute.xlu1 %1060  ;;  %v1073_v35 = vpop.permute.xlu0 %1072 }
 0x1d3   : > { %v1078_v48 = vadd.f32 %v1073_v35, %v1064_v8  ;;  %v1065_v42 = vadd.f32 %v1061_v26, %v1044_v34  ;;  %v1224_v35 = vrot.slane %v3725_v1, 1  ;;  %v1257_v8 = vrot.slane %v1251_v25, 3 }
 0x1d4   : > { %1745 = vrot.lane.b32.xlu1 %v1740_v16, %s4090_s23  ;;  %1764 = vrot.lane.b32.xlu0 %v1761_v6, %s4090_s23  ;;  %v1858_v16 = vmul.f32 %v1857_v41, %v3307_v56  ;;  %v3766_v6 = vmul.f32 %v3728_v23, %v3309_v3  ;;  %v1211_v34 = vmul.f32 %v1210_v9, %v3307_v56 }
 0x1d5   : > { %v1225_v5 = vsel %vm266_vm1, %v1223_v32, %v1224_v35  ;;  %v3807_v41 = vsel %vm302_vm3, %v1257_v8, %v1258_v20 }
 0x1d6   : > { %v1075_v24 = vpop.permute.xlu1 %1074  ;;  %v1094_v58 = vpop.permute.xlu0 %1093  ;;  %v1864_v19 = vrot.slane %v1858_v16, 6  ;;  %v3751_v63 = vstv %s3694_s28  ;;  %s2402_s28 = sshll.u32 %s2625_s12, 8  ;;  %s2647_s12 = smov [#allocation8]  }
 0x1d7   : > { %v1099_v10 = vadd.f32 %v1094_v58, %v1078_v48  ;;  %v1079_v4 = vadd.f32 %v1075_v24, %v1065_v42  ;;  %v1285_v7 = vmul.f32 %v3751_v63, %v3307_v56  ;;  %v3775_v37 = vmul.f32 %v3751_v63, %v3309_v3 }
 0x1d8   : > { %1766 = vrot.lane.b32.xlu1 %v1763_v60, %s4090_s23  ;;  %1785 = vrot.lane.b32.xlu0 %v1782_v2, %s4090_s23  ;;  %v1866_v52 = vsel %vm356_vm6, %v1864_v19, %v1865_v39  ;;  %v1274_v48 = vrot.slane %v1268_v50, 4  ;;  %v3787_v60 = vmul.f32 %v3759_v47, %v3309_v3  ;;  %v1275_v58 = vrot.slane %v3766_v6, 4 }
 0x1d9   : > { %v1892_v2 = vstv %s3730_s17  ;;  %v3799_v56 = vsel %vm284_vm2, %v1240_v14, %v1241_v43  ;;  %v1291_v3 = vrot.slane %v1285_v7, 5  ;;  %v1292_v51 = vrot.slane %v3775_v37, 5 }
 0x1da   : > { %v1096_v22 = vpop.permute.xlu1 %1095  ;;  %v1115_v11 = vpop.permute.xlu0 %1114  ;;  %v1308_v42 = vrot.slane %v1302_v55, 6  ;;  %v3823_v53 = vsel %vm320_vm4, %v1274_v48, %v1275_v58  ;;  %v1236_v19 = vmul.f32 %v3838_v54, %v3712_v40  ;;  %v1895_v25 = vmul.f32 %v3838_v54, %v1892_v2 }
 0x1db   : > { %v1100_v49 = vadd.f32 %v1096_v22, %v1079_v4  ;;  %v1120_v59 = vadd.f32 %v1115_v11, %v1099_v10  ;;  %v1867_v10 = vrot.slane %v1860_v0, 6  ;;  %v1893_v4 = vmul.f32 %v3811_v62, %v1892_v2 }
 0x1dc   : > { %1787 = vrot.lane.b32.xlu1 %v1784_v33, %s4090_s23  ;;  %1806 = vrot.lane.b32.xlu0 %v1803_v21, %s4090_s23  ;;  %v1878_v33 = vstv %s3753_s3  ;;  %v1913_v22 = vstv %s3761_s16  ;;  %v3860_v14 = vmul.f32 %v3838_v54, %v3728_v23  ;;  %v1243_v8 = vrot.slane %v1236_v19, 2 }
 0x1dd   : > { %v1899_v32 = vrot.slane %v1893_v4, 1  ;;  %v1287_v55 = vmul.f32 %v3838_v54, %v3751_v63  ;;  %v1934_v0 = vstv %s3802_s30  ;;  %v1976_v4 = vstv %s3842_s7  ;;  %s4016_s30 = scalar_lea.hbm %s4069_s2, %s2402_s28 }
 0x1de   : > { %v1117_v13 = vpop.permute.xlu1 %1116  ;;  %v1136_v36 = vpop.permute.xlu0 %1135  ;;  %v1935_v63 = vmul.f32 %v3811_v62, %v1934_v0 }
 0x1df   : > { %v1121_v31 = vadd.f32 %v1117_v13, %v1100_v49  ;;  %v1141_v26 = vadd.f32 %v1136_v36, %v1120_v59  ;;  %v3834_v49 = vsel %vm338_vm5, %v1291_v3, %v1292_v51  ;;  %v1219_v59 = vmul.f32 %v3702_v57, %v3332_v44 }
 0x1e0   : > { %1808 = vrot.lane.b32.xlu1 %v1805_v27, %s4090_s23  ;;  %1827 = vrot.lane.b32.xlu0 %v1824_v45, %s4090_s23  ;;  %v1309_v45 = vrot.slane %v3787_v60, 6  ;;  %v1914_v13 = vmul.f32 %v3811_v62, %v1913_v22  ;;  %v1955_v3 = vstv %s3818_s6  ;;  %s2173_s6 = scalar_lea.sflag [#allocation5], %s2810_s4 }
 0x1e1   : > { %v1226_v7 = vrot.slane %v1219_v59, 1  ;;  %v1956_v19 = vmul.f32 %v3811_v62, %v1955_v3  ;;  %v1958_v18 = vmul.f32 %v3838_v54, %v1955_v3 }
 0x1e2   : > { %v1138_v12 = vpop.permute.xlu1 %1137  ;;  %v1157_v29 = vpop.permute.xlu0 %1156  ;;  %v3851_v44 = vsel %vm356_vm6, %v1308_v42, %v1309_v45 }
 0x1e3   : > { %v1142_v61 = vadd.f32 %v1138_v12, %v1121_v31  ;;  %v1162_v24 = vadd.f32 %v1157_v29, %v1141_v26  ;;  %v1253_v26 = vmul.f32 %v3838_v54, %v3721_v46  ;;  %v1920_v46 = vrot.slane %v1914_v13, 2 }
 0x1e4   : > { %1829 = vrot.lane.b32.xlu1 %v1826_v28, %s4090_s23  ;;  %1848 = vrot.lane.b32.xlu0 %v1845_v38, %s4090_s23  ;;  %v3814_v28 = vld [vmem:[#allocation2 + $0x20] sm:$0xff]  ;;  %v1941_v13 = vrot.slane %v1935_v63, 3  ;;  %v1962_v17 = vrot.slane %v1956_v19, 4 }
 0x1e5   : > { %v1894_v16 = vmul.f32 %v3814_v28, %v1892_v2  ;;  %v1212_v30 = vmul.f32 %v3814_v28, %v1210_v9  ;;  %v1868_v9 = vsel %vm356_vm6, %v1865_v39, %v1867_v10  ;;  %v3854_v50 = vmul.f32 %v3814_v28, %v1913_v22 }
 0x1e6   : > { %v1159_v21 = vpop.permute.xlu1 %1158  ;;  %v1178_v27 = vpop.permute.xlu0 %1177  ;;  %v1880_v29 = vmul.f32 %v3814_v28, %v1878_v33  ;;  %v1916_v2 = vmul.f32 %v3838_v54, %v1913_v22 }
 0x1e7   : > { %v1163_v11 = vadd.f32 %v1159_v21, %v1142_v61  ;;  %v1183_v38 = vadd.f32 %v1178_v27, %v1162_v24  ;;  %v1900_v40 = vrot.slane %v1894_v16, 1  ;;  %v1921_v24 = vrot.slane %v3854_v50, 2 }
 0x1e8   : > { %1850 = vrot.lane.b32.xlu1 %v3735_v15, %s4090_s23  ;;  %1869 = vrot.lane.b32.xlu0 %v1866_v52, %s4090_s23  ;;  %v1879_v15 = vmul.f32 %v3811_v62, %v1878_v33  ;;  %v1902_v52 = vrot.slane %v1895_v25, 1  ;;  %v1227_v33 = vsel %vm266_vm1, %v1224_v35, %v1226_v7  ;;  %v1260_v21 = vrot.slane %v1253_v26, 3 }
 0x1e9   : > { %v1901_v61 = vsel %vm266_vm1, %v1899_v32, %v1900_v40  ;;  %v1277_v27 = vrot.slane %v3860_v14, 4  ;;  %v1923_v59 = vrot.slane %v1916_v2, 2  ;;  %v1304_v32 = vmul.f32 %v3838_v54, %v3759_v47 }
 0x1ea   : > { %v1180_v36 = vpop.permute.xlu1 %1179  ;;  %v1199_v57 = vpop.permute.xlu0 %1198  ;;  %v1903_v22 = vsel %vm266_vm1, %v1900_v40, %v1902_v52  ;;  %v1978_v26 = vmul.f32 %v3814_v28, %v1976_v4 }
 0x1eb   : > { %v1184_v39 = vadd.f32 %v1180_v36, %v1163_v11  ;;  %v1204_v31 = vadd.f32 %v1199_v57, %v1183_v38  ;;  %v1937_v11 = vmul.f32 %v3838_v54, %v1934_v0  ;;  %v1922_v38 = vsel %vm284_vm2, %v1920_v46, %v1921_v24 }
 0x1ec   : > { %1871 = vrot.lane.b32.xlu1 %v1868_v9, %s4090_s23  ;;  %1883 = vrot.lane.b32.xlu0 %v1879_v15, %s2645_s5  ;;  %v1957_v9 = vmul.f32 %v3814_v28, %v1955_v3  ;;  %v1261_v36 = vsel %vm302_vm3, %v1258_v20, %v1260_v21  ;;  %v1294_v57 = vrot.slane %v1287_v55, 5  ;;  %v1977_v20 = vmul.f32 %v3811_v62, %v1976_v4  ;;  %s3925_s23 = sld [smem:[#allocation7 + $0x37]] }
 0x1ed   : > { %v1213_v12 = vadd.f32 %v1211_v34, %v1204_v31  ;;  %v1936_v34 = vmul.f32 %v3814_v28, %v1934_v0  ;;  %v1944_v50 = vrot.slane %v1937_v11, 3  ;;  %v1311_v0 = vrot.slane %v1304_v32, 6 }
 0x1ee   : > { %v1201_v48 = vpop.permute.xlu1 %1200  ;;  %v3868_v23 = vpop.permute.xlu0 %1323  ;;  %v1963_v31 = vrot.slane %v1957_v9, 4  ;;  %v1295_v55 = vsel %vm338_vm5, %v1292_v51, %v1294_v57  ;;  %v1979_v46 = vmul.f32 %v3838_v54, %v1976_v4  ;;  %v1965_v51 = vrot.slane %v1958_v18, 4 }
 0x1ef   : > { %v1230_v42 = vadd.f32 %v1225_v5, %v1213_v12  ;;  %v1205_v10 = vadd.f32 %v1201_v48, %v1184_v39  ;;  %v1997_v12 = vstv %s3883_s24  ;;  %v1983_v48 = vrot.slane %v1977_v20, 5  ;;  %s2551_s24 = sshll.u32 %s2647_s12, 4  ;;  %s2552_s24 = int_to_ptr.vmem [resolvable:$false] %s2551_s24 }
 0x1f0   : > { %1885 = vrot.lane.b32.xlu1 %v1880_v29, %s2645_s5  ;;  %1904 = vrot.lane.b32.xlu0 %v1901_v61, %s2645_s5  ;;  %v1964_v37 = vsel %vm320_vm4, %v1962_v17, %v1963_v31  ;;  %v1984_v61 = vrot.slane %v1978_v26, 5  ;;  %v1999_v3 = vmul.f32 %v3814_v28, %v1997_v12  ;;  %v1966_v21 = vsel %vm320_vm4, %v1963_v31, %v1965_v51 }
 0x1f1   : > { %v1247_v5 = vadd.f32 %v3799_v56, %v1230_v42  ;;  %v1214_v16 = vadd.f32 %v1212_v30, %v1205_v10  ;;  %v1942_v56 = vrot.slane %v1936_v34, 3  ;;  %v1244_v30 = vsel %vm284_vm2, %v1241_v43, %v1243_v8 }
 0x1f2   : > { %v3888_v1 = vpop.permute.xlu1 %1325  ;;  %v1345_v35 = vpop.permute.xlu0 %1344  ;;  %v1278_v8 = vsel %vm320_vm4, %v1275_v58, %v1277_v27  ;;  %v1312_v42 = vsel %vm356_vm6, %v1309_v45, %v1311_v0  ;;  %v1986_v34 = vrot.slane %v1979_v46, 5  ;;  %v1985_v27 = vsel %vm338_vm5, %v1983_v48, %v1984_v61 }
 0x1f3   : > { %v1264_v15 = vadd.f32 %v3807_v41, %v1247_v5  ;;  %v1231_v25 = vadd.f32 %v1227_v33, %v1214_v16  ;;  %v1943_v7 = vsel %vm302_vm3, %v1941_v13, %v1942_v56  ;;  %v1945_v52 = vsel %vm302_vm3, %v1942_v56, %v1944_v50 }
 0x1f4   : > { %1906 = vrot.lane.b32.xlu1 %v1903_v22, %s2645_s5  ;;  %1925 = vrot.lane.b32.xlu0 %v1922_v38, %s2645_s5  ;;  %v2000_v4 = vmul.f32 %v3838_v54, %v1997_v12  ;;  %v2032_v5 = vstv %s3908_s15  ;;  %v2005_v22 = vrot.slane %v1999_v3, 6  ;;  %v2018_v38 = vstv %s3925_s23  ;;  %s2553_s15 = scalar_lea.vmem %s2552_s24, 512 }
 0x1f5   : > { %v1281_v41 = vadd.f32 %v3823_v53, %v1264_v15  ;;  %v1248_v40 = vadd.f32 %v1244_v30, %v1231_v25  ;;  %v1924_v53 = vsel %vm284_vm2, %v1921_v24, %v1923_v59  ;;  %v1987_v9 = vsel %vm338_vm5, %v1984_v61, %v1986_v34 }
 0x1f6   : > { %v1347_v39 = vpop.permute.xlu1 %1346  ;;  %v1366_v43 = vpop.permute.xlu0 %1365  ;;  %v2007_v15 = vrot.slane %v2000_v4, 6  ;;  %v2033_v25 = vmul.f32 %v3811_v62, %v2032_v5  ;;  %v2074_v31 = vstv %s3942_s26  ;;  %v2095_v51 = vstv %s3953_s27 }
 0x1f7   : > { %v1298_v47 = vadd.f32 %v3834_v49, %v1281_v41  ;;  %v1265_v14 = vadd.f32 %v1261_v36, %v1248_v40  ;;  %v2053_v36 = vstv %s3931_s18  ;;  %v2019_v41 = vmul.f32 %v3811_v62, %v2018_v38 }
 0x1f8   : > { %1927 = vrot.lane.b32.xlu1 %v1924_v53, %s2645_s5  ;;  %1946 = vrot.lane.b32.xlu0 %v1943_v7, %s2645_s5  ;;  %v2035_v40 = vmul.f32 %v3838_v54, %v2032_v5  ;;  %v2054_v17 = vmul.f32 %v3811_v62, %v2053_v36  ;;  %v2020_v7 = vmul.f32 %v3814_v28, %v2018_v38 }
 0x1f9   : > { %v1315_v49 = vadd.f32 %v3851_v44, %v1298_v47  ;;  %v1282_v29 = vadd.f32 %v1278_v8, %v1265_v14  ;;  %v1998_v44 = vmul.f32 %v3811_v62, %v1997_v12  ;;  %v2008_v47 = vsel %vm356_vm6, %v2005_v22, %v2007_v15 }
 0x1fa   : > { %v1368_v6 = vpop.permute.xlu1 %1367  ;;  %v1387_v58 = vpop.permute.xlu0 %1386  ;;  %v2055_v14 = vmul.f32 %v3814_v28, %v2053_v36  ;;  %v2042_v8 = vrot.slane %v2035_v40, 1  ;;  %v2076_v46 = vmul.f32 %v3814_v28, %v2074_v31  ;;  %v2077_v61 = vmul.f32 %v3838_v54, %v2074_v31 }
 0x1fb   : > { %v1299_v24 = vadd.f32 %v1295_v55, %v1282_v29  ;;  %v1329_v2 = vadd.f32 %v3868_v23, %v1315_v49  ;;  %v2004_v16 = vrot.slane %v1998_v44, 6  ;;  %v2056_v55 = vmul.f32 %v3838_v54, %v2053_v36 }
 0x1fc   : > { %1948 = vrot.lane.b32.xlu1 %v1945_v52, %s2645_s5  ;;  %1967 = vrot.lane.b32.xlu0 %v1964_v37, %s2645_s5  ;;  %v2060_v29 = vrot.slane %v2054_v17, 2  ;;  %v2075_v52 = vmul.f32 %v3811_v62, %v2074_v31  ;;  %v2061_v37 = vrot.slane %v2055_v14, 2  ;;  %v2082_v3 = vrot.slane %v2076_v46, 3 }
 0x1fd   : > { %v1316_v10 = vadd.f32 %v1312_v42, %v1299_v24  ;;  %v1350_v63 = vadd.f32 %v1345_v35, %v1329_v2  ;;  %v2006_v30 = vsel %vm356_vm6, %v2004_v16, %v2005_v22  ;;  %v2063_v48 = vrot.slane %v2056_v55, 2 }
 0x1fe   : > { %v1389_v33 = vpop.permute.xlu1 %1388  ;;  %v1408_v23 = vpop.permute.xlu0 %1407  ;;  %v2081_v44 = vrot.slane %v2075_v52, 3  ;;  %v2096_v42 = vmul.f32 %v3811_v62, %v2095_v51  ;;  %v2084_v4 = vrot.slane %v2077_v61, 3 }
 0x1ff   : > { %v1330_v60 = vadd.f32 %v3888_v1, %v1316_v10  ;;  %v1371_v45 = vadd.f32 %v1366_v43, %v1350_v63  ;;  %v2034_v1 = vmul.f32 %v3814_v28, %v2032_v5  ;;  %v2097_v10 = vmul.f32 %v3814_v28, %v2095_v51 }
 0x200   : > { %1969 = vrot.lane.b32.xlu1 %v1966_v21, %s2645_s5  ;;  %1988 = vrot.lane.b32.xlu0 %v1985_v27, %s2645_s5  ;;  %v2116_v21 = vstv %s3965_s19  ;;  %v2064_v27 = vsel %vm284_vm2, %v2061_v37, %v2063_v48  ;;  %v2098_v5 = vmul.f32 %v3838_v54, %v2095_v51  ;;  %v2083_v16 = vsel %vm302_vm3, %v2081_v44, %v2082_v3 }
 0x201   : > { %v1351_v11 = vadd.f32 %v1347_v39, %v1330_v60  ;;  %v1392_v35 = vadd.f32 %v1387_v58, %v1371_v45  ;;  %v2039_v39 = vrot.slane %v2033_v25, 1  ;;  %v2040_v43 = vrot.slane %v2034_v1, 1 }
 0x202   : > { %v1410_v59 = vpop.permute.xlu1 %1409  ;;  %v1429_v19 = vpop.permute.xlu0 %1428  ;;  %v2102_v22 = vrot.slane %v2096_v42, 4  ;;  %v2085_v15 = vsel %vm302_vm3, %v2082_v3, %v2084_v4 }
 0x203   : > { %v1372_v13 = vadd.f32 %v1368_v6, %v1351_v11  ;;  %v1413_v56 = vadd.f32 %v1408_v23, %v1392_v35  ;;  %v2041_v49 = vsel %vm266_vm1, %v2039_v39, %v2040_v43  ;;  %v2062_v23 = vsel %vm284_vm2, %v2060_v29, %v2061_v37 }
 0x204   : > { %1990 = vrot.lane.b32.xlu1 %v1987_v9, %s2645_s5  ;;  %2009 = vrot.lane.b32.xlu0 %v2006_v30, %s2645_s5  ;;  %v2103_v11 = vrot.slane %v2097_v10, 4  ;;  %v2118_v9 = vmul.f32 %v3814_v28, %v2116_v21  ;;  %v2119_v30 = vmul.f32 %v3838_v54, %v2116_v21 }
 0x205   : > { %v1393_v57 = vadd.f32 %v1389_v33, %v1372_v13  ;;  %v1434_v32 = vadd.f32 %v1429_v19, %v1413_v56  ;;  %v2043_v33 = vsel %vm266_vm1, %v2040_v43, %v2042_v8  ;;  %v2117_v19 = vmul.f32 %v3811_v62, %v2116_v21 }
 0x206   : > { %v1431_v50 = vpop.permute.xlu1 %1430  ;;  %v1450_v18 = vpop.permute.xlu0 %1449  ;;  %v2104_v13 = vsel %vm320_vm4, %v2102_v22, %v2103_v11  ;;  %v2105_v56 = vrot.slane %v2098_v5, 4  ;;  %v2126_v31 = vrot.slane %v2119_v30, 5 }
 0x207   : > { %v1414_v20 = vadd.f32 %v1410_v59, %v1393_v57  ;;  %v1455_v26 = vadd.f32 %v1450_v18, %v1434_v32  ;;  %v2123_v32 = vrot.slane %v2117_v19, 5 }
 0x208   : > { %2011 = vrot.lane.b32.xlu1 %v2008_v47, %s2645_s5  ;;  %2023 = vrot.lane.b32.xlu0 %v2019_v41, %s2646_s20  ;;  %s2393_s5 = sld [smem:[#allocation7 + $0x61]]  ;;  %v2124_v41 = vrot.slane %v2118_v9, 5  ;;  %v2106_v39 = vsel %vm320_vm4, %v2103_v11, %v2105_v56 }
 0x209   : > { %v1435_v53 = vadd.f32 %v1431_v50, %v1414_v20 }
 0x20a   : > { %v1452_v0 = vpop.permute.xlu1 %1451  ;;  %v1464_v12 = vpop.permute.xlu0 %1463  ;;  %v2125_v17 = vsel %vm338_vm5, %v2123_v32, %v2124_v41  ;;  %v2127_v47 = vsel %vm338_vm5, %v2124_v41, %v2126_v31 }
 0x20b   : > { %v1456_v6 = vadd.f32 %v1452_v0, %v1435_v53  ;;  %v1469_v58 = vadd.f32 %v1464_v12, %v1455_v26 }
 0x20c   : > { %2025 = vrot.lane.b32.xlu1 %v2020_v7, %s2646_s20  ;;  %2044 = vrot.lane.b32.xlu0 %v2041_v49, %s2646_s20 }
 0x20e   : > { %v1466_v24 = vpop.permute.xlu1 %1465  ;;  %v1485_v2 = vpop.permute.xlu0 %1484  ;;  %v2137_v35 = vstv %s2393_s5 }
 0x20f   : > { %v1470_v63 = vadd.f32 %v1466_v24, %v1456_v6  ;;  %v1490_v34 = vadd.f32 %v1485_v2, %v1469_v58  ;;  %v2138_v36 = vmul.f32 %v3811_v62, %v2137_v35  ;;  %v2139_v40 = vmul.f32 %v3814_v28, %v2137_v35 }
 0x210   : > { %2046 = vrot.lane.b32.xlu1 %v2043_v33, %s2646_s20  ;;  %2065 = vrot.lane.b32.xlu0 %v2062_v23, %s2646_s20  ;;  %v2140_v43 = vmul.f32 %v3838_v54, %v2137_v35 }
 0x211   : > { %v2144_v20 = vrot.slane %v2138_v36, 6  ;;  %v2145_v62 = vrot.slane %v2139_v40, 6 }
 0x212   : > { %v1487_v60 = vpop.permute.xlu1 %1486  ;;  %v1506_v45 = vpop.permute.xlu0 %1505  ;;  %v2147_v53 = vrot.slane %v2140_v43, 6 }
 0x213   : > { %v1491_v38 = vadd.f32 %v1487_v60, %v1470_v63  ;;  %v3986_v59 = vadd.f32 %v1506_v45, %v1490_v34  ;;  %v2146_v14 = vsel %vm356_vm6, %v2144_v20, %v2145_v62 }
 0x214   : > { %2067 = vrot.lane.b32.xlu1 %v2064_v27, %s2646_s20  ;;  %2086 = vrot.lane.b32.xlu0 %v2083_v16, %s2646_s20  ;;  %v2148_v8 = vsel %vm356_vm6, %v2145_v62, %v2147_v53 }
 0x216   : > { %v1508_v25 = vpop.permute.xlu1 %1507  ;;  %v1527_v1 = vpop.permute.xlu0 %1526 }
 0x217   : > { %v1512_v57 = vadd.f32 %v1508_v25, %v1491_v38  ;;  %v1532_v27 = vadd.f32 %v1527_v1, %v3986_v59 }
 0x218   : > { %2088 = vrot.lane.b32.xlu1 %v2085_v15, %s2646_s20  ;;  %2107 = vrot.lane.b32.xlu0 %v2104_v13, %s2646_s20 }
 0x21a   : > { %v1529_v50 = vpop.permute.xlu1 %1528  ;;  %v1548_v18 = vpop.permute.xlu0 %1547 }
 0x21b   : > { %v1553_v60 = vadd.f32 %v1548_v18, %v1532_v27  ;;  %v1533_v45 = vadd.f32 %v1529_v50, %v1512_v57 }
 0x21c   : > { %2109 = vrot.lane.b32.xlu1 %v2106_v39, %s2646_s20  ;;  %2128 = vrot.lane.b32.xlu0 %v2125_v17, %s2646_s20 }
 0x21e   : > { %v1550_v28 = vpop.permute.xlu1 %1549  ;;  %v1569_v26 = vpop.permute.xlu0 %1568 }
 0x21f   : > { %v1574_v16 = vadd.f32 %v1569_v26, %v1553_v60  ;;  %v1554_v35 = vadd.f32 %v1550_v28, %v1533_v45 }
 0x220   : > { %2130 = vrot.lane.b32.xlu1 %v2127_v47, %s2646_s20  ;;  %2149 = vrot.lane.b32.xlu0 %v2146_v14, %s2646_s20 }
 0x222   : > { %v1571_v54 = vpop.permute.xlu1 %1570  ;;  %v1590_v7 = vpop.permute.xlu0 %1589 }
 0x223   : > { %v1595_v38 = vadd.f32 %v1590_v7, %v1574_v16  ;;  %v1575_v19 = vadd.f32 %v1571_v54, %v1554_v35 }
 0x224   : > { %2151 = vrot.lane.b32.xlu1 %v2148_v8, %s2646_s20  ;;  %s2290_s20 = sshll.u32 %s2810_s4, 4 }
 0x225   : > { %s192_s8 = scalar_lea.vmem [#allocation8], %s2290_s20 }
 0x226   : > { %v1592_v55 = vpop.permute.xlu1 %1591  ;;  %v1604_v0 = vpop.permute.xlu0 %1603  ;;  %s2186_s17 = sshll.u32 %s192_s8, 4  ;;  %s4018_s17 = int_to_ptr.vmem [resolvable:$true] %s2186_s17 }
 0x227   : > { %v1609_v9 = vadd.f32 %v1604_v0, %v1595_v38  ;;  %v1596_v13 = vadd.f32 %v1592_v55, %v1575_v19  ;;  %s2547_s7 = scalar_lea.vmem %s4018_s17, 256  ;;  %p2554_p0 = scmp.lt.s32.totalorder %s4018_s17, %s2552_s24 }
 0x228   : > { %p2548_p12 = scmp.ne.s32.totalorder %s4018_s17, %s2547_s7  ;;  %p2555_p1 = scmp.lt.s32.totalorder %s2553_s15, %s2547_s7 }
 0x22a   : > { %v1606_v12 = vpop.permute.xlu1 %1605  ;;  %v1625_v49 = vpop.permute.xlu0 %1624  ;;  %p2549_p13 = pnand %p2548_p12, %p4091_p2  ;;  %p2556_p9 = por %p2555_p1, %p2554_p0 }
 0x22b   : > { %v1630_v56 = vadd.f32 %v1625_v49, %v1609_v9  ;;  %v1610_v30 = vadd.f32 %v1606_v12, %v1596_v13 }
 0x22c   : > { %p2550_p6 = pneg %p2549_p13 }
 0x22e   : > { %v1627_v29 = vpop.permute.xlu1 %1626  ;;  %v1646_v52 = vpop.permute.xlu0 %1645  ;;  %p2557_p8 = pnand %p2556_p9, %p2550_p6 }
 0x22f   : > { %v1651_v36 = vadd.f32 %v1646_v52, %v1630_v56  ;;  %v1631_v59 = vadd.f32 %v1627_v29, %v1610_v30 }
 0x232   : > { %v1648_v46 = vpop.permute.xlu1 %1647  ;;  %v1667_v6 = vpop.permute.xlu0 %1666 }
 0x233   : > { %v1672_v1 = vadd.f32 %v1667_v6, %v1651_v36  ;;  %v1652_v40 = vadd.f32 %v1648_v46, %v1631_v59 }
 0x236   : > { %v1669_v58 = vpop.permute.xlu1 %1668  ;;  %v1688_v37 = vpop.permute.xlu0 %1687 }
 0x237   : > { %v1693_v18 = vadd.f32 %v1688_v37, %v1672_v1  ;;  %v1673_v39 = vadd.f32 %v1669_v58, %v1652_v40 }
 0x23a   : > { %v1690_v51 = vpop.permute.xlu1 %1689  ;;  %v1709_v48 = vpop.permute.xlu0 %1708 }
 0x23b   : > { %v1714_v43 = vadd.f32 %v1709_v48, %v1693_v18  ;;  %v1694_v17 = vadd.f32 %v1690_v51, %v1673_v39 }
 0x23e   : > { %v1711_v61 = vpop.permute.xlu1 %1710  ;;  %v1730_v24 = vpop.permute.xlu0 %1729 }
 0x23f   : > { %v1735_v31 = vadd.f32 %v1730_v24, %v1714_v43  ;;  %v1715_v28 = vadd.f32 %v1711_v61, %v1694_v17 }
 0x242   : > { %v1732_v2 = vpop.permute.xlu1 %1731  ;;  %v1744_v44 = vpop.permute.xlu0 %1743 }
 0x243   : > { %v1749_v26 = vadd.f32 %v1744_v44, %v1735_v31  ;;  %v1736_v47 = vadd.f32 %v1732_v2, %v1715_v28 }
 0x246   : > { %v1746_v3 = vpop.permute.xlu1 %1745  ;;  %v1765_v42 = vpop.permute.xlu0 %1764 }
 0x247   : > { %v1770_v14 = vadd.f32 %v1765_v42, %v1749_v26  ;;  %v1750_v7 = vadd.f32 %v1746_v3, %v1736_v47 }
 0x24a   : > { %v1767_v10 = vpop.permute.xlu1 %1766  ;;  %v1786_v63 = vpop.permute.xlu0 %1785 }
 0x24b   : > { %v1791_v8 = vadd.f32 %v1786_v63, %v1770_v14  ;;  %v1771_v55 = vadd.f32 %v1767_v10, %v1750_v7 }
 0x24e   : > { %v1788_v34 = vpop.permute.xlu1 %1787  ;;  %v1807_v33 = vpop.permute.xlu0 %1806 }
 0x24f   : > { %v1812_v0 = vadd.f32 %v1807_v33, %v1791_v8  ;;  %v1792_v29 = vadd.f32 %v1788_v34, %v1771_v55 }
 0x252   : > { %v1809_v23 = vpop.permute.xlu1 %1808  ;;  %v1828_v21 = vpop.permute.xlu0 %1827 }
 0x253   : > { %v1833_v52 = vadd.f32 %v1828_v21, %v1812_v0  ;;  %v1813_v46 = vadd.f32 %v1809_v23, %v1792_v29 }
 0x256   : > { %v1830_v4 = vpop.permute.xlu1 %1829  ;;  %v1849_v5 = vpop.permute.xlu0 %1848 }
 0x257   : > { %v1854_v6 = vadd.f32 %v1849_v5, %v1833_v52  ;;  %v1834_v51 = vadd.f32 %v1830_v4, %v1813_v46 }
 0x25a   : > { %v1851_v22 = vpop.permute.xlu1 %1850  ;;  %v1870_v11 = vpop.permute.xlu0 %1869 }
 0x25b   : > { %v1875_v48 = vadd.f32 %v1870_v11, %v1854_v6  ;;  %v1855_v61 = vadd.f32 %v1851_v22, %v1834_v51 }
 0x25e   : > { %v1872_v15 = vpop.permute.xlu1 %1871  ;;  %v1884_v25 = vpop.permute.xlu0 %1883 }
 0x25f   : > { %v1889_v24 = vadd.f32 %v1884_v25, %v1875_v48  ;;  %v1876_v42 = vadd.f32 %v1872_v15, %v1855_v61 }
 0x262   : > { %v1886_v32 = vpop.permute.xlu1 %1885  ;;  %v1905_v41 = vpop.permute.xlu0 %1904 }
 0x263   : > { %v1910_v27 = vadd.f32 %v1905_v41, %v1889_v24  ;;  %v1890_v3 = vadd.f32 %v1886_v32, %v1876_v42 }
 0x266   : > { %v1907_v57 = vpop.permute.xlu1 %1906  ;;  %v1926_v50 = vpop.permute.xlu0 %1925 }
 0x267   : > { %v1931_v63 = vadd.f32 %v1926_v50, %v1910_v27  ;;  %v1911_v60 = vadd.f32 %v1907_v57, %v1890_v3 }
 0x26a   : > { %v1928_v20 = vpop.permute.xlu1 %1927  ;;  %v1947_v62 = vpop.permute.xlu0 %1946 }
 0x26b   : > { %v1952_v45 = vadd.f32 %v1947_v62, %v1931_v63  ;;  %v1932_v34 = vadd.f32 %v1928_v20, %v1911_v60 }
 0x26e   : > { %v1949_v53 = vpop.permute.xlu1 %1948  ;;  %v1968_v54 = vpop.permute.xlu0 %1967 }
 0x26f   : > { %v1973_v21 = vadd.f32 %v1968_v54, %v1952_v45  ;;  %v1953_v16 = vadd.f32 %v1949_v53, %v1932_v34 }
 0x272   : > { %v1970_v12 = vpop.permute.xlu1 %1969  ;;  %v1989_v49 = vpop.permute.xlu0 %1988 }
 0x273   : > { %v1994_v35 = vadd.f32 %v1989_v49, %v1973_v21  ;;  %v1974_v4 = vadd.f32 %v1970_v12, %v1953_v16 }
 0x276   : > { %v1991_v58 = vpop.permute.xlu1 %1990  ;;  %v2010_v37 = vpop.permute.xlu0 %2009 }
 0x277   : > { %v2015_v11 = vadd.f32 %v2010_v37, %v1994_v35  ;;  %v1995_v19 = vadd.f32 %v1991_v58, %v1974_v4 }
 0x27a   : > { %v2012_v2 = vpop.permute.xlu1 %2011  ;;  %v2024_v44 = vpop.permute.xlu0 %2023 }
 0x27b   : > { %v2029_v9 = vadd.f32 %v2024_v44, %v2015_v11  ;;  %v2016_v15 = vadd.f32 %v2012_v2, %v1995_v19 }
 0x27e   : > { %v2026_v10 = vpop.permute.xlu1 %2025  ;;  %v2045_v33 = vpop.permute.xlu0 %2044 }
 0x27f   : > { %v2050_v25 = vadd.f32 %v2045_v33, %v2029_v9  ;;  %v2030_v30 = vadd.f32 %v2026_v10, %v2016_v15 }
 0x282   : > { %v2047_v23 = vpop.permute.xlu1 %2046  ;;  %v2066_v5 = vpop.permute.xlu0 %2065 }
 0x283   : > { %v2071_v36 = vadd.f32 %v2066_v5, %v2050_v25  ;;  %v2051_v32 = vadd.f32 %v2047_v23, %v2030_v30 }
 0x286   : > { %v2068_v22 = vpop.permute.xlu1 %2067  ;;  %v2087_v38 = vpop.permute.xlu0 %2086 }
 0x287   : > { %v2092_v41 = vadd.f32 %v2087_v38, %v2071_v36  ;;  %v2072_v40 = vadd.f32 %v2068_v22, %v2051_v32 }
 0x28a   : > { %v2089_v13 = vpop.permute.xlu1 %2088  ;;  %v2108_v56 = vpop.permute.xlu0 %2107 }
 0x28b   : > { %v2113_v18 = vadd.f32 %v2108_v56, %v2092_v41  ;;  %v2093_v57 = vadd.f32 %v2089_v13, %v2072_v40 }
 0x28e   : > { %v2110_v59 = vpop.permute.xlu1 %2109  ;;  %v2129_v1 = vpop.permute.xlu0 %2128 }
 0x28f   : > { %v2134_v50 = vadd.f32 %v2129_v1, %v2113_v18  ;;  %v2114_v17 = vadd.f32 %v2110_v59, %v2093_v57 }
 0x292   : > { %v2131_v39 = vpop.permute.xlu1 %2130  ;;  %v2150_v43 = vpop.permute.xlu0 %2149 }
 0x293   : > { %v2155_v31 = vadd.f32 %v2150_v43, %v2134_v50  ;;  %v2135_v20 = vadd.f32 %v2131_v39, %v2114_v17 }
 0x295   : > { %v2394_v62 = vmul.f32 -1.442695, %v2155_v31 }
 0x296   : > { %v2152_v28 = vpop.permute.xlu1 %2151 }
 0x297   : > { %2488 = vpow2.f32 %v2394_v62  ;;  %v2156_v26 = vadd.f32 %v2152_v28, %v2135_v20 }
 0x299   : > { %v2395_v47 = vmul.f32 -1.442695, %v2156_v26 }
 0x29b   : > { %2490 = vpow2.f32 %v2395_v47 }
 0x2a1   : > { %v2489_v14 = vpop.eup %2488 }
 0x2a2   : > { %v2163_v53 = vadd.f32 1.0, %v2489_v14 }
 0x2a4   : > { %2492 = vrcp.f32 %v2163_v53 }
 0x2a5   : > { %v2491_v54 = vpop.eup %2490 }
 0x2a6   : > { %v2164_v7 = vadd.f32 1.0, %v2491_v54 }
 0x2a8   : > { %2494 = vrcp.f32 %v2164_v7 }
 0x2ae   : > { %v2493_v8 = vpop.eup %2492 }
 0x2af   : > { %2170 = vst.msk [vmem:[%s192_s8] sm:$0xff] %vm2169_vm7, %v2493_v8 }
 0x2b2   : > { %v2495_v55 = vpop.eup %2494 }
 0x2b3   : > { %2171 = vst.msk [vmem:[%s192_s8 + $0x8] sm:$0xff] %vm2169_vm7, %v2495_v55 }
 0x2b4   : > { %2560 = shalt.err (!%p2557_p8)
}
 0x2b5   : > { %s2561_s23 = scalar_lea.hbm %s4016_s30, 256  ;;  %s2565_s27 = scalar_lea.hbm %s4069_s2, 512 }
 0x2b6   : > { %p2562_p4 = scmp.ne.s32.totalorder %s4016_s30, %s2561_s23  ;;  %p2566_p5 = scmp.lt.u32.totalorder %s4016_s30, %s4069_s2 }
 0x2b7   : > { %p2567_p3 = scmp.lt.u32.totalorder %s2565_s27, %s2561_s23  ;;  %p2569_p12 = scmp.lt.u32.totalorder %s2561_s23, %s4016_s30 }
 0x2b8   : > { %p2563_p10 = pnand %p2562_p4, %p4091_p2 }
 0x2b9   : > { %p2568_p7 = por %p2567_p3, %p2566_p5 }
 0x2ba   : > { %p2564_p11 = pneg %p2563_p10 }
 0x2bb   : > { %p2570_p13 = por %p2569_p12, %p2568_p7 }
 0x2bd   : > { %p2571_p6 = pnand %p2570_p13, %p2564_p11 }
 0x2bf   : > { %2574 = shalt.err (!%p2571_p6)
}
 0x2c0   : > { %s2648_s20 = smov 128   ;;  %s2649_s28 = smov 8  }
 0x2c1   : > { %2409 = dma.vmem_to_hbm [thread:$0]  (%p4091_p2), %s4018_s17, 256, %s4016_s30, %s2173_s6, %s2648_s20, %s2648_s20, %s2649_s28  }
 0x2c2 PF: > { %s2201_s8 = sand.u32 1, %s2613_s9   ;;  %p4092_p0 = scmp.ne.s32.totalorder %s4082_s22, 0 }
 0x2c3   : > { %p4093_p1 = scmp.ge.s32.totalorder %s2633_s14, 2  ;;  %s2202_s3 = scalar_lea.sflag [#allocation5], %s2201_s8 }
 0x2c5   : > { %p2420_p9 = pnand %p4093_p1, %p4092_p0 }
 0x2c7   : > { %2608 = dma.done.wait (!%p2420_p9), %s2202_s3, 256  }
 0x2c8   : > { %2610 = vsyncadd (!%p2420_p9), %s2202_s3, 4294967040  ;;  %s19_s14 = sadd.s32 1, %s2633_s14   ;;  %s4094_s9 = smov %s2617_s10 }
 0x2c9   : > { %p16_p8 = scmp.ge.s32.totalorder %s19_s14, 4   ;;  %s4095_s10 = smov %s2621_s11 }
 0x2ca   : > { %s4096_s11 = smov %s2775_s25  ;;  %s4097_s12 = smov %s2629_s13 }
 0x2cb   : > { %s4098_s13 = smov %s4100_s29  ;;  %18 = sbr.rel (!%p16_p8) target bundleno = 7 (0x7), region = 82 }
 0x2d2   :  { %2207 = vsyncpa [#allocation4], 1 }
 0x2d3   :  { %2209 = vsyncpa [#allocation4 + $0x1], 1 }
 0x2d4   :  { %2210 = vsyncpa [#allocation5], 1 }
 0x2d5   :  { %2212 = vsyncpa [#allocation5 + $0x1], 1 }
 0x2d6   :  { %2213 = vsyncpa [#allocation6], 1 }
 0x2d7   :  { %2215 = vsyncpa [#allocation6 + $0x1], 1 }

</bundles_post_ra>
